<compile_context>
chip_gen: v7x
topology: tpu7x:2x2x1
jax: 0.10.0
libtpu: 0.0.40
codegen_flags: <defaults>
</compile_context>

<pallas_src>
import math

import jax
import jax.numpy as jnp
from jax.experimental import pallas as pl
from jax.experimental.pallas import tpu as pltpu


# ----------------------------------------------------------------------------
# Small helpers
# ----------------------------------------------------------------------------

def _round_up(v, m):
    return ((v + m - 1) // m) * m


def _vmem_cap_bytes():
    # Never request all of physical VMEM (v7x has only 64 MiB/TC): leave ~25%
    # headroom for compiler scratch / spill.
    try:
        return int(pltpu.get_tpu_info().vmem_capacity_bytes * 3 // 4)
    except Exception:
        return 48 * 1024 * 1024


_VMEM_CAP = _vmem_cap_bytes()


def _vmem_limit_bytes(*terms):
    """terms: (shape, bytes_per_element) for operand blocks AND the large
    in-kernel temporaries.  2x covers double-buffered pipelined operands."""
    total = sum(math.prod(s) * b for s, b in terms)
    return int(min(_VMEM_CAP, max(8 * 1024 * 1024, 2 * total + (1 << 20))))


# ----------------------------------------------------------------------------
# Hop branch kernels (GCN stack + folded fc_hop)
# ----------------------------------------------------------------------------

def gcn_hop_fused_kernel(a_ref, x_ref, w1_ref, b1_ref, w2_ref, b2_ref,
                         whf_ref, bh_ref, out_ref):
    """One timestep, fully fused: A read once, h1/h2 never leave VMEM."""
    a = a_ref[...]                                          # (N, N) bf16
    xw = jnp.dot(x_ref[...], w1_ref[...], preferred_element_type=jnp.float32)
    h1 = jnp.maximum(
        jnp.dot(a, xw.astype(jnp.bfloat16),
                preferred_element_type=jnp.float32) + b1_ref[...], 0.0)
    hw = jnp.dot(h1.astype(jnp.bfloat16), w2_ref[...],
                 preferred_element_type=jnp.float32)
    h2 = jnp.maximum(
        jnp.dot(a, hw.astype(jnp.bfloat16),
                preferred_element_type=jnp.float32) + b2_ref[...], 0.0)
    out_ref[...] = (jnp.dot(h2.astype(jnp.bfloat16), whf_ref[...],
                            preferred_element_type=jnp.float32)
                    + bh_ref[...]).astype(out_ref.dtype)


def gcn_hop_fused(a_bf, x_bf, w1_bf, b1, w2_bf, b2, whf_bf, bh_pad):
    T, N, _ = a_bf.shape
    Fin = x_bf.shape[-1]
    H = w1_bf.shape[-1]
    Np = whf_bf.shape[-1]
    return pl.pallas_call(
        gcn_hop_fused_kernel,
        out_shape=jax.ShapeDtypeStruct((T, N, Np), jnp.bfloat16),
        grid=(T,),
        in_specs=[
            pl.BlockSpec((None, N, N), lambda t: (t, 0, 0)),
            pl.BlockSpec((None, N, Fin), lambda t: (t, 0, 0)),
            pl.BlockSpec((Fin, H), lambda t: (0, 0)),
            pl.BlockSpec((1, H), lambda t: (0, 0)),
            pl.BlockSpec((H, H), lambda t: (0, 0)),
            pl.BlockSpec((1, H), lambda t: (0, 0)),
            pl.BlockSpec((H, Np), lambda t: (0, 0)),
            pl.BlockSpec((1, Np), lambda t: (0, 0)),
        ],
        out_specs=pl.BlockSpec((None, N, Np), lambda t: (t, 0, 0)),
        compiler_params=pltpu.CompilerParams(
            dimension_semantics=("parallel",),
            vmem_limit_bytes=_vmem_limit_bytes(
                ((N, N), 2), ((N, Fin), 2), ((Fin, H), 2), ((1, H), 4),
                ((H, H), 2), ((1, H), 4), ((H, Np), 2), ((1, Np), 4),
                ((N, Np), 2),
                # in-kernel f32 temporaries: xw, h1, hw, h2
                ((N, H), 4), ((N, H), 4), ((N, H), 4), ((N, H), 4))),
    )(a_bf, x_bf, w1_bf, b1, w2_bf, b2, whf_bf, bh_pad)


# --- split fallback (A too large for VMEM): projections hoisted out ----------

def matmul_kernel(x_ref, w_ref, o_ref):
    o_ref[...] = jnp.dot(x_ref[...], w_ref[...],
                         preferred_element_type=jnp.float32).astype(o_ref.dtype)


def matmul_rows(x_bf, w_bf, *, out_dtype=jnp.bfloat16, tile_rows=512):
    M, K = x_bf.shape
    _, Nc = w_bf.shape
    tm = M if M <= tile_rows else tile_rows
    assert M % tm == 0, "row tile must divide M"
    return pl.pallas_call(
        matmul_kernel,
        out_shape=jax.ShapeDtypeStruct((M, Nc), out_dtype),
        grid=(M // tm,),
        in_specs=[pl.BlockSpec((tm, K), lambda i: (i, 0)),
                  pl.BlockSpec((K, Nc), lambda i: (0, 0))],
        out_specs=pl.BlockSpec((tm, Nc), lambda i: (i, 0)),
        compiler_params=pltpu.CompilerParams(
            dimension_semantics=("parallel",),
            vmem_limit_bytes=_vmem_limit_bytes(
                ((tm, K), 2), ((K, Nc), 2), ((tm, Nc), 4))),
    )(x_bf, w_bf)


def gcn_layer1_split_kernel(a_ref, xw_ref, b1_ref, h1_ref):
    h = jnp.dot(a_ref[...], xw_ref[...],
                preferred_element_type=jnp.float32) + b1_ref[...]
    h1_ref[...] = jnp.maximum(h, 0.0).astype(h1_ref.dtype)


def gcn_layer2_split_kernel(a_ref, hw_ref, b2_ref, whf_ref, bh_ref, out_ref):
    h2 = jnp.maximum(
        jnp.dot(a_ref[...], hw_ref[...],
                preferred_element_type=jnp.float32) + b2_ref[...], 0.0)
    out_ref[...] = (jnp.dot(h2.astype(jnp.bfloat16), whf_ref[...],
                            preferred_element_type=jnp.float32)
                    + bh_ref[...]).astype(out_ref.dtype)


def gcn_layer1_split(a_bf, xw_bf, b1, *, tile_rows=512):
    T, N, _ = a_bf.shape
    H = xw_bf.shape[-1]
    tm = N if N <= tile_rows else tile_rows
    assert N % tm == 0, "row tile must divide N"
    return pl.pallas_call(
        gcn_layer1_split_kernel,
        out_shape=jax.ShapeDtypeStruct((T, N, H), jnp.bfloat16),
        grid=(T, N // tm),
        in_specs=[
            pl.BlockSpec((None, tm, N), lambda t, i: (t, i, 0)),
            pl.BlockSpec((None, N, H), lambda t, i: (t, 0, 0)),
            pl.BlockSpec((1, H), lambda t, i: (0, 0)),
        ],
        out_specs=pl.BlockSpec((None, tm, H), lambda t, i: (t, i, 0)),
        compiler_params=pltpu.CompilerParams(
            dimension_semantics=("parallel", "parallel"),
            vmem_limit_bytes=_vmem_limit_bytes(
                ((tm, N), 2), ((N, H), 2), ((1, H), 4), ((tm, H), 2),
                ((tm, H), 4))),
    )(a_bf, xw_bf, b1)


def gcn_layer2_split(a_bf, hw_bf, b2, whf_bf, bh_pad, *, tile_rows=512):
    T, N, _ = a_bf.shape
    H = hw_bf.shape[-1]
    Np = whf_bf.shape[-1]
    tm = N if N <= tile_rows else tile_rows
    assert N % tm == 0, "row tile must divide N"
    return pl.pallas_call(
        gcn_layer2_split_kernel,
        out_shape=jax.ShapeDtypeStruct((T, N, Np), jnp.bfloat16),
        grid=(T, N // tm),
        in_specs=[
            pl.BlockSpec((None, tm, N), lambda t, i: (t, i, 0)),
            pl.BlockSpec((None, N, H), lambda t, i: (t, 0, 0)),
            pl.BlockSpec((1, H), lambda t, i: (0, 0)),
            pl.BlockSpec((H, Np), lambda t, i: (0, 0)),
            pl.BlockSpec((1, Np), lambda t, i: (0, 0)),
        ],
        out_specs=pl.BlockSpec((None, tm, Np), lambda t, i: (t, i, 0)),
        compiler_params=pltpu.CompilerParams(
            dimension_semantics=("parallel", "parallel"),
            vmem_limit_bytes=_vmem_limit_bytes(
                ((tm, N), 2), ((N, H), 2), ((1, H), 4), ((H, Np), 2),
                ((1, Np), 4), ((tm, Np), 2), ((tm, H), 4), ((tm, Np), 4))),
    )(a_bf, hw_bf, b2, whf_bf, bh_pad)


# ----------------------------------------------------------------------------
# GAT kernels
# ----------------------------------------------------------------------------

def gat_proj_kernel(x_ref, w_ref, wsc_ref, xw_ref, sc_ref):
    """xw = x @ W (stored bf16) and per-node attention scores = xw @ Wsc."""
    xw = jnp.dot(x_ref[...], w_ref[...], preferred_element_type=jnp.float32)
    xw_bf = xw.astype(jnp.bfloat16)
    xw_ref[...] = xw_bf
    sc_ref[...] = jnp.dot(xw_bf, wsc_ref[...],
                          preferred_element_type=jnp.float32)


def gat_project(x_bf, w_bf, wsc_bf, *, tile_rows=512):
    M, K = x_bf.shape
    fout = w_bf.shape[1]
    Sp = wsc_bf.shape[1]
    tm = M if M <= tile_rows else tile_rows
    assert M % tm == 0, "row tile must divide M"
    return pl.pallas_call(
        gat_proj_kernel,
        out_shape=(jax.ShapeDtypeStruct((M, fout), jnp.bfloat16),
                   jax.ShapeDtypeStruct((M, Sp), jnp.float32)),
        grid=(M // tm,),
        in_specs=[pl.BlockSpec((tm, K), lambda i: (i, 0)),
                  pl.BlockSpec((K, fout), lambda i: (0, 0)),
                  pl.BlockSpec((fout, Sp), lambda i: (0, 0))],
        out_specs=(pl.BlockSpec((tm, fout), lambda i: (i, 0)),
                   pl.BlockSpec((tm, Sp), lambda i: (i, 0))),
        compiler_params=pltpu.CompilerParams(
            dimension_semantics=("parallel",),
            vmem_limit_bytes=_vmem_limit_bytes(
                ((tm, K), 2), ((K, fout), 2), ((fout, Sp), 2),
                ((tm, fout), 2), ((tm, Sp), 4), ((tm, fout), 4))),
    )(x_bf, w_bf, wsc_bf)


def make_gat_attn_kernel(heads, head_dim, concat, apply_relu):
    """Flash-style (source-tiled, online softmax) masked GAT attention.

    Masking uses the edge-count matrix: logits of non-edges are set to a large
    negative BEFORE the running max (removes the NaN hazard), and exp weights
    are multiplied by counts so duplicate edges are counted exactly.
    """
    neg_inf = -1e30

    def kernel(asrc_ref, adst_ref, xw_ref, c_ref, b_ref, out_ref,
               m_sc, l_sc, acc_sc):
        ks = pl.program_id(1)

        @pl.when(ks == 0)
        def _():
            m_sc[...] = jnp.full(m_sc.shape, neg_inf, m_sc.dtype)
            l_sc[...] = jnp.zeros(l_sc.shape, l_sc.dtype)
            acc_sc[...] = jnp.zeros(acc_sc.shape, acc_sc.dtype)

        # int8 counts -> f32 (two-step widen), mask of real edges.
        c = c_ref[...].astype(jnp.int32).astype(jnp.float32)      # (tm, tk)
        cmask = c > 0.0
        xw_src = xw_ref[...]                                      # (tk, F) bf16

        for h in range(heads):
            sl = slice(h * head_dim, (h + 1) * head_dim)
            a_s = asrc_ref[h:h + 1, :]                            # (1, tk)
            a_d = adst_ref[:, h:h + 1]                            # (tm, 1)
            logits = a_d + a_s                                    # (tm, tk)
            logits = jnp.where(logits > 0.0, logits, 0.2 * logits)
            logits = jnp.where(cmask, logits, neg_inf)            # masked max
            m_tile = jnp.max(logits, axis=-1, keepdims=True)      # (tm, 1)
            m_old = m_sc[:, h:h + 1]
            m_new = jnp.maximum(m_old, m_tile)
            alpha = jnp.exp(jnp.maximum(m_old - m_new, -60.0))
            p = jnp.exp(jnp.maximum(logits - m_new, -60.0)) * c
            l_sc[:, h:h + 1] = (alpha * l_sc[:, h:h + 1]
                                + jnp.sum(p, axis=-1, keepdims=True))
            acc_sc[:, sl] = alpha * acc_sc[:, sl] + jnp.dot(
                p.astype(jnp.bfloat16), xw_src[:, sl],
                preferred_element_type=jnp.float32)
            m_sc[:, h:h + 1] = m_new

        @pl.when(ks == pl.num_programs(1) - 1)
        def _():
            if concat:
                for h in range(heads):
                    sl = slice(h * head_dim, (h + 1) * head_dim)
                    o = acc_sc[:, sl] / l_sc[:, h:h + 1] + b_ref[:, sl]
                    if apply_relu:
                        o = jnp.maximum(o, 0.0)
                    out_ref[:, sl] = o
            else:
                acc = None
                for h in range(heads):
                    sl = slice(h * head_dim, (h + 1) * head_dim)
                    o = acc_sc[:, sl] / l_sc[:, h:h + 1]
                    acc = o if acc is None else acc + o
                o = acc / float(heads) + b_ref[...]
                if apply_relu:
                    o = jnp.maximum(o, 0.0)
                out_ref[...] = o

    return kernel


def gat_layer(x, w, a_src, a_dst, bias, counts_i8, *, heads, head_dim, concat,
              apply_relu, tile_dst=256, tile_src=512):
    """One GATConv layer = projection (+ hoisted scores) + source-tiled
    online-softmax attention."""
    Ntot = x.shape[0]
    fout = w.shape[1]
    assert fout == heads * head_dim
    out_dim = heads * head_dim if concat else head_dim

    # Block-diagonal score weights: col h <- a_src[h], col heads+h <- a_dst[h],
    # padded to 128 so the projection kernel's score output is lane-dense.
    Sp = 128
    assert 2 * heads <= Sp
    wsc = jnp.zeros((fout, Sp), jnp.float32)
    for h in range(heads):
        wsc = wsc.at[h * head_dim:(h + 1) * head_dim, h].set(a_src[h])
        wsc = wsc.at[h * head_dim:(h + 1) * head_dim, heads + h].set(a_dst[h])
    wsc_bf = wsc.astype(jnp.bfloat16)

    xw, scores = gat_project(x.astype(jnp.bfloat16), w.astype(jnp.bfloat16),
                             wsc_bf)
    asrc_t = jnp.transpose(scores[:, :heads])          # (heads, Ntot)
    adst = scores[:, heads:2 * heads]                  # (Ntot, heads)

    tm = Ntot if Ntot <= tile_dst else tile_dst
    assert Ntot % tm == 0, "dst tile must divide Ntot"
    tk = Ntot if Ntot <= tile_src else tile_src
    assert Ntot % tk == 0, "src tile must divide Ntot"
    nbd, nbs = Ntot // tm, Ntot // tk

    return pl.pallas_call(
        make_gat_attn_kernel(heads, head_dim, concat, apply_relu),
        out_shape=jax.ShapeDtypeStruct((Ntot, out_dim), jnp.float32),
        grid=(nbd, nbs),
        in_specs=[
            pl.BlockSpec((heads, tk), lambda i, k: (0, k)),   # src scores
            pl.BlockSpec((tm, heads), lambda i, k: (i, 0)),   # dst scores
            pl.BlockSpec((tk, fout), lambda i, k: (k, 0)),    # xw (bf16)
            pl.BlockSpec((tm, tk), lambda i, k: (i, k)),      # counts (int8)
            pl.BlockSpec((1, out_dim), lambda i, k: (0, 0)),  # bias
        ],
        out_specs=pl.BlockSpec((tm, out_dim), lambda i, k: (i, 0)),
        scratch_shapes=[
            pltpu.VMEM((tm, heads), jnp.float32),   # running max
            pltpu.VMEM((tm, heads), jnp.float32),   # running denom
            pltpu.VMEM((tm, fout), jnp.float32),    # running numerator
        ],
        compiler_params=pltpu.CompilerParams(
            dimension_semantics=("parallel", "arbitrary"),
            vmem_limit_bytes=_vmem_limit_bytes(
                ((heads, tk), 4), ((tm, heads), 4), ((tk, fout), 2),
                ((tm, tk), 1), ((1, out_dim), 4), ((tm, out_dim), 4),
                ((tm, heads), 4), ((tm, heads), 4), ((tm, fout), 4),
                # in-kernel f32 temporaries: logits / p / mask
                ((tm, tk), 4), ((tm, tk), 4), ((tm, tk), 4))),
    )(asrc_t, adst, xw, counts_i8, bias)


# ----------------------------------------------------------------------------
# Graph preprocessing (plain JAX glue: sparse scatter -> dense matrices)
# ----------------------------------------------------------------------------

def build_gcn_norm_adj(edge_index_t, edge_attr_t, n):
    src, dst = edge_index_t[0], edge_index_t[1]
    a = jnp.zeros((n, n), jnp.float32).at[dst, src].add(edge_attr_t)
    a = a + jnp.eye(n, dtype=jnp.float32)            # self loops, weight 1
    deg = jnp.sum(a, axis=1)
    dis = jnp.where(deg > 0, 1.0 / jnp.sqrt(deg), 0.0)
    return dis[:, None] * a * dis[None, :]


def build_gat_counts(edge_index_flat, ntot):
    """Edge-multiplicity matrix in int8 (duplicates > 127 are clipped)."""
    src, dst = edge_index_flat[0], edge_index_flat[1]
    c = jnp.zeros((ntot, ntot), jnp.float32).at[dst, src].add(1.0)
    eye = jnp.eye(ntot, dtype=jnp.float32)
    # GATConv: remove_self_loops then add exactly one self loop per node.
    c = c * (1.0 - eye) + eye
    return jnp.clip(c, 0.0, 127.0).astype(jnp.int8)


# ----------------------------------------------------------------------------
# Full model forward
# ----------------------------------------------------------------------------

def gnn_routing_forward(params, x, edge_index, edge_attr, edge_label_index,
                        *, force_split_gcn=False):
    T, N, Fin = x.shape
    H = params["w_conv1"].shape[1]

    # --- hop branch -----------------------------------------------------
    a_norm = jax.vmap(build_gcn_norm_adj, in_axes=(0, 0, None))(
        edge_index, edge_attr, N)
    a_bf = a_norm.astype(jnp.bfloat16)
    x_bf = x.astype(jnp.bfloat16)
    w1_bf = params["w_conv1"].astype(jnp.bfloat16)
    w2_bf = params["w_conv2"].astype(jnp.bfloat16)

    # x_high == x_low  =>  cat([h, h]) @ W_hop == h @ (W_hop[:H] + W_hop[H:])
    whf = params["w_hop"][:H] + params["w_hop"][H:]
    Nout = whf.shape[1]
    Np = _round_up(Nout, 128)                        # lane-dense output stores
    whf_pad = (jnp.zeros((H, Np), jnp.float32).at[:, :Nout].set(whf)
               .astype(jnp.bfloat16))
    bh_pad = jnp.zeros((1, Np), jnp.float32).at[:, :Nout].set(params["b_hop"])

    # Fuse both GCN layers (A read once) when the per-timestep working set
    # fits a conservative VMEM budget; otherwise split (A streamed twice).
    fused_bytes = (2 * (N * N * 2 + N * Fin * 2 + N * Np * 2)
                   + 4 * (N * H * 4))
    use_fused = (not force_split_gcn) and fused_bytes < 40 * 1024 * 1024

    if use_fused:
        hop_pad = gcn_hop_fused(a_bf, x_bf, w1_bf, params["b_conv1"],
                                w2_bf, params["b_conv2"], whf_pad, bh_pad)
    else:
        # Projections hoisted: computed once, not per row tile.
        xw1 = matmul_rows(x_bf.reshape(T * N, Fin), w1_bf).reshape(T, N, H)
        h1 = gcn_layer1_split(a_bf, xw1, params["b_conv1"])
        hw = matmul_rows(h1.reshape(T * N, H), w2_bf).reshape(T, N, H)
        hop_pad = gcn_layer2_split(a_bf, hw, params["b_conv2"],
                                   whf_pad, bh_pad)

    hop_out = hop_pad[:, :, :Nout].astype(jnp.float32)

    # --- encode branch (GAT over flattened nodes / flattened edges) ------
    Ntot = T * N
    x_flat = x.reshape(Ntot, Fin)
    ei_flat = jnp.transpose(edge_index, (1, 0, 2)).reshape(2, -1)
    counts = build_gat_counts(ei_flat, Ntot)

    z1 = gat_layer(x_flat, params["w_gat1"], params["a_src1"],
                   params["a_dst1"], params["b_gat1"], counts,
                   heads=4, head_dim=H, concat=True, apply_relu=True)
    # TODO(synk): dropout implemented as identity (eval mode).

    # Pad gat2 to a 128-wide output (zero-padded weights leave the attention
    # logits and the real output columns unchanged).
    Dout = params["w_gat2"].shape[1]
    Dp = _round_up(Dout, 128)
    w2p = (jnp.zeros((params["w_gat2"].shape[0], Dp), jnp.float32)
           .at[:, :Dout].set(params["w_gat2"]))
    as2p = jnp.zeros((1, Dp), jnp.float32).at[:, :Dout].set(params["a_src2"])
    ad2p = jnp.zeros((1, Dp), jnp.float32).at[:, :Dout].set(params["a_dst2"])
    b2p = jnp.zeros((1, Dp), jnp.float32).at[:, :Dout].set(params["b_gat2"])

    z_pad = gat_layer(z1, w2p, as2p, ad2p, b2p, counts,
                      heads=1, head_dim=Dp, concat=False, apply_relu=False)
    z = z_pad[:, :Dout]

    # --- decode (plain JAX; a kernel here is pure launch overhead) -------
    link_pred = jnp.sum(z[edge_label_index[0]] * z[edge_label_index[1]],
                        axis=-1)
    return link_pred, hop_out


# ----------------------------------------------------------------------------
# Pure-JAX reference (same math / same cast points, no Pallas)
# ----------------------------------------------------------------------------

def _ref_gat(x, w, a_src, a_dst, b, counts_i8, heads, hd, concat, relu):
    c = counts_i8.astype(jnp.float32)
    xw = jnp.dot(x.astype(jnp.bfloat16), w.astype(jnp.bfloat16),
                 preferred_element_type=jnp.float32)
    xw_bf = xw.astype(jnp.bfloat16)
    outs = []
    for h in range(heads):
        xh = xw_bf[:, h * hd:(h + 1) * hd]
        s = jnp.dot(xh, a_src[h].astype(jnp.bfloat16)[:, None],
                    preferred_element_type=jnp.float32)
        d = jnp.dot(xh, a_dst[h].astype(jnp.bfloat16)[:, None],
                    preferred_element_type=jnp.float32)
        logits = d + jnp.transpose(s)
        logits = jnp.where(logits > 0.0, logits, 0.2 * logits)
        logits = jnp.where(c > 0.0, logits, -1e30)
        m = jnp.max(logits, axis=-1, keepdims=True)
        wgt = jnp.exp(logits - m) * c
        num = jnp.dot(wgt.astype(jnp.bfloat16), xh,
                      preferred_element_type=jnp.float32)
        outs.append(num / jnp.sum(wgt, axis=-1, keepdims=True))
    out = jnp.concatenate(outs, -1) if concat else sum(outs) / float(heads)
    out = out + b
    return jnp.maximum(out, 0.0) if relu else out


def reference_forward(params, x, edge_index, edge_attr, edge_label_index):
    T, N, Fin = x.shape
    H = params["w_conv1"].shape[1]
    a_norm = jax.vmap(build_gcn_norm_adj, in_axes=(0, 0, None))(
        edge_index, edge_attr, N)
    a_bf = a_norm.astype(jnp.bfloat16)
    x_bf = x.astype(jnp.bfloat16)
    w1 = params["w_conv1"].astype(jnp.bfloat16)
    w2 = params["w_conv2"].astype(jnp.bfloat16)
    whf = (params["w_hop"][:H] + params["w_hop"][H:]).astype(jnp.bfloat16)

    def per_t(a, xt):
        xw = jnp.dot(xt, w1, preferred_element_type=jnp.float32)
        h1 = jnp.maximum(
            jnp.dot(a, xw.astype(jnp.bfloat16),
                    preferred_element_type=jnp.float32) + params["b_conv1"],
            0.0)
        hw = jnp.dot(h1.astype(jnp.bfloat16), w2,
                     preferred_element_type=jnp.float32)
        h2 = jnp.maximum(
            jnp.dot(a, hw.astype(jnp.bfloat16),
                    preferred_element_type=jnp.float32) + params["b_conv2"],
            0.0)
        return jnp.dot(h2.astype(jnp.bfloat16), whf,
                       preferred_element_type=jnp.float32) + params["b_hop"]

    hop_out = (jax.vmap(per_t)(a_bf, x_bf)
               .astype(jnp.bfloat16).astype(jnp.float32))

    Ntot = T * N
    x_flat = x.reshape(Ntot, Fin)
    ei_flat = jnp.transpose(edge_index, (1, 0, 2)).reshape(2, -1)
    counts = build_gat_counts(ei_flat, Ntot)
    z1 = _ref_gat(x_flat, params["w_gat1"], params["a_src1"],
                  params["a_dst1"], params["b_gat1"], counts, 4, H, True, True)
    z = _ref_gat(z1, params["w_gat2"], params["a_src2"], params["a_dst2"],
                 params["b_gat2"], counts, 1, params["w_gat2"].shape[1],
                 False, False)
    link_pred = jnp.sum(z[edge_label_index[0]] * z[edge_label_index[1]], -1)
    return link_pred, hop_out


# ----------------------------------------------------------------------------
# Deterministic parameter construction
# ----------------------------------------------------------------------------

def init_params(key, input_dim, hidden_dim, output_dim, num_nodes):
    ks = jax.random.split(key, 16)

    def w(k, shape):
        return (jax.random.normal(k, shape, jnp.float32)
                * (1.0 / math.sqrt(shape[0])))

    return {
        # GCNConv conv1 / conv2
        "w_conv1": w(ks[0], (input_dim, hidden_dim)),
        "b_conv1": jnp.zeros((1, hidden_dim), jnp.float32),
        "w_conv2": w(ks[1], (hidden_dim, hidden_dim)),
        "b_conv2": jnp.zeros((1, hidden_dim), jnp.float32),
        # fc_hop : Linear(2*hidden, num_nodes)  (stored transposed)
        "w_hop": w(ks[2], (2 * hidden_dim, num_nodes)),
        "b_hop": w(ks[3], (1, num_nodes)),
        # GATConv gat1 (heads=4, concat)
        "w_gat1": w(ks[4], (input_dim, 4 * hidden_dim)),
        "a_src1": w(ks[5], (4, hidden_dim)),
        "a_dst1": w(ks[6], (4, hidden_dim)),
        "b_gat1": jnp.zeros((1, 4 * hidden_dim), jnp.float32),
        # GATConv gat2 (heads=1, mean)
        "w_gat2": w(ks[7], (4 * hidden_dim, output_dim)),
        "a_src2": w(ks[8], (1, output_dim)),
        "a_dst2": w(ks[9], (1, output_dim)),
        "b_gat2": jnp.zeros((1, output_dim), jnp.float32),
        # fc1 / fc2 exist in __init__ but are unused in forward -> omitted
    }


if __name__ == "__main__":
    T, N, Fin, H, Dout, E, EL = 4, 16, 8, 32, 16, 24, 8

    key = jax.random.PRNGKey(0)
    k_in, k_par = jax.random.split(key)
    ks = jax.random.split(k_in, 6)

    x = jax.random.normal(ks[0], (T, N, Fin), jnp.float32)
    src = jax.random.randint(ks[1], (T, E), 0, N)
    off = jax.random.randint(ks[2], (T, E), 1, N)
    dst = (src + off) % N                       # no self loops in raw graph
    edge_index = jnp.stack([src, dst], axis=1)  # (T, 2, E) int32
    edge_attr = jax.random.uniform(ks[3], (T, E), jnp.float32, 0.1, 1.0)
    edge_label_index = jax.random.randint(ks[4], (2, EL), 0, T * N)

    params = init_params(k_par, Fin, H, Dout, N)

    fwd = jax.jit(gnn_routing_forward, static_argnames=("force_split_gcn",))
    link_pred, hop_out = fwd(params, x, edge_index, edge_attr,
                             edge_label_index)
    jax.block_until_ready((link_pred, hop_out))

    ref_link, ref_hop = jax.jit(reference_forward)(
        params, x, edge_index, edge_attr, edge_label_index)
    jax.block_until_ready((ref_link, ref_hop))

    assert link_pred.shape == (EL,)
    assert hop_out.shape == (T, N, N)
    assert jnp.allclose(link_pred, ref_link, rtol=2e-2, atol=2e-2)
    assert jnp.allclose(hop_out, ref_hop, rtol=2e-2, atol=2e-2)

    # Also exercise the split (A-too-big-for-VMEM) GCN fallback path.
    link2, hop2 = fwd(params, x, edge_index, edge_attr, edge_label_index,
                      force_split_gcn=True)
    jax.block_until_ready((link2, hop2))
    assert jnp.allclose(link2, ref_link, rtol=2e-2, atol=2e-2)
    assert jnp.allclose(hop2, ref_hop, rtol=2e-2, atol=2e-2)

    print("KERNEL_OK")
</pallas_src>

<mosaic_0001>
module attributes {stable_mosaic.version = 11 : i64} {
  func.func private @main(%arg0: i32) attributes {dimension_semantics = [#tpu.dimension_semantics<core_parallel>], iteration_bounds = array<i64: 2>, tpu.core_type = #tpu.core_type<sc_scalar_subcore>, window_params = []} {
    return
  }
}

module attributes {stable_mosaic.version = 11 : i64} {
  func.func private @main(%arg0: i32) attributes {dimension_semantics = [#tpu.dimension_semantics<core_parallel>], iteration_bounds = array<i64: 2>, tpu.core_type = #tpu.core_type<sc_scalar_subcore>, window_params = []} {
    return
  }
}

module attributes {stable_mosaic.version = 11 : i64} {
  func.func @gat_proj_kernel(%arg0: i32, %arg1: memref<64x8xbf16, #tpu.memory_space<vmem>>, %arg2: memref<8x128xbf16, #tpu.memory_space<vmem>>, %arg3: memref<128x128xbf16, #tpu.memory_space<vmem>>, %arg4: memref<64x128xbf16, #tpu.memory_space<vmem>>, %arg5: memref<64x128xf32, #tpu.memory_space<vmem>>) attributes {dimension_semantics = [#tpu.dimension_semantics<parallel>], iteration_bounds = array<i64: 1>, scalar_prefetch = 0 : i64, scratch_operands = 0 : i64, tpu.core_type = #tpu.core_type<tc>, window_params = [{transform_indices = @transform_0, window_bounds = array<i64: 64, 8>}, {pipeline_mode = #tpu.pipeline_mode<synchronous>, transform_indices = @transform_1, window_bounds = array<i64: 8, 128>}, {pipeline_mode = #tpu.pipeline_mode<synchronous>, transform_indices = @transform_2, window_bounds = array<i64: 128, 128>}, {transform_indices = @transform_3, window_bounds = array<i64: 64, 128>}, {transform_indices = @transform_4, window_bounds = array<i64: 64, 128>}]} {
    %c0 = arith.constant 0 : index
    %c0_0 = arith.constant 0 : index
    %0 = vector.load %arg1[%c0, %c0_0] : memref<64x8xbf16, #tpu.memory_space<vmem>>, vector<64x8xbf16>
    %c0_1 = arith.constant 0 : index
    %c0_2 = arith.constant 0 : index
    %1 = vector.load %arg2[%c0_1, %c0_2] : memref<8x128xbf16, #tpu.memory_space<vmem>>, vector<8x128xbf16>
    %cst = arith.constant dense<0.000000e+00> : vector<64x128xf32>
    %2 = tpu.matmul %0, %1, %cst {dimension_numbers = #tpu.dot_dimension_numbers<[1], [0], [0], [1], [0, 0, 1, 1], [], []>} : vector<64x8xbf16>, vector<8x128xbf16>, vector<64x128xf32> -> vector<64x128xf32>
    %3 = arith.truncf %2 : vector<64x128xf32> to vector<64x128xbf16>
    %c0_3 = arith.constant 0 : index
    %c0_4 = arith.constant 0 : index
    %4 = vector.load %arg4[%c0_3, %c0_4] : memref<64x128xbf16, #tpu.memory_space<vmem>>, vector<64x128xbf16>
    tpu.vector_store %arg4[%c0_3, %c0_4], %3 {strides = array<i32>} : memref<64x128xbf16, #tpu.memory_space<vmem>>, vector<64x128xbf16>,
    %c0_5 = arith.constant 0 : index
    %c0_6 = arith.constant 0 : index
    %5 = vector.load %arg3[%c0_5, %c0_6] : memref<128x128xbf16, #tpu.memory_space<vmem>>, vector<128x128xbf16>
    %cst_7 = arith.constant dense<0.000000e+00> : vector<64x128xf32>
    %6 = tpu.matmul %3, %5, %cst_7 {dimension_numbers = #tpu.dot_dimension_numbers<[1], [0], [0], [1], [0, 0, 1, 1], [], []>} : vector<64x128xbf16>, vector<128x128xbf16>, vector<64x128xf32> -> vector<64x128xf32>
    %c0_8 = arith.constant 0 : index
    %c0_9 = arith.constant 0 : index
    %7 = vector.load %arg5[%c0_8, %c0_9] : memref<64x128xf32, #tpu.memory_space<vmem>>, vector<64x128xf32>
    tpu.vector_store %arg5[%c0_8, %c0_9], %6 {strides = array<i32>} : memref<64x128xf32, #tpu.memory_space<vmem>>, vector<64x128xf32>,
    return
  }
  func.func @transform_0(%arg0: i32) -> (i32, i32) {
    %c0_i32 = arith.constant 0 : i32
    %c0_i32_0 = arith.constant 0 : i32
    return %arg0, %c0_i32 : i32, i32
  }
  func.func @transform_1(%arg0: i32) -> (i32, i32) {
    %c0_i32 = arith.constant 0 : i32
    %c0_i32_0 = arith.constant 0 : i32
    %c0_i32_1 = arith.constant 0 : i32
    return %c0_i32, %c0_i32_0 : i32, i32
  }
  func.func @transform_2(%arg0: i32) -> (i32, i32) {
    %c0_i32 = arith.constant 0 : i32
    %c0_i32_0 = arith.constant 0 : i32
    %c0_i32_1 = arith.constant 0 : i32
    return %c0_i32, %c0_i32_0 : i32, i32
  }
  func.func @transform_3(%arg0: i32) -> (i32, i32) {
    %c0_i32 = arith.constant 0 : i32
    %c0_i32_0 = arith.constant 0 : i32
    return %arg0, %c0_i32 : i32, i32
  }
  func.func @transform_4(%arg0: i32) -> (i32, i32) {
    %c0_i32 = arith.constant 0 : i32
    %c0_i32_0 = arith.constant 0 : i32
    return %arg0, %c0_i32 : i32, i32
  }
}

module attributes {stable_mosaic.version = 11 : i64} {
  func.func @kernel(%arg0: i32, %arg1: i32, %arg2: memref<4x64xf32, #tpu.memory_space<vmem>>, %arg3: memref<64x4xf32, #tpu.memory_space<vmem>>, %arg4: memref<64x128xbf16, #tpu.memory_space<vmem>>, %arg5: memref<64x64xi8, #tpu.memory_space<vmem>>, %arg6: memref<1x128xf32, #tpu.memory_space<vmem>>, %arg7: memref<64x128xf32, #tpu.memory_space<vmem>>, %arg8: memref<64x4xf32, #tpu.memory_space<vmem>>, %arg9: memref<64x4xf32, #tpu.memory_space<vmem>>, %arg10: memref<64x128xf32, #tpu.memory_space<vmem>>) attributes {dimension_semantics = [#tpu.dimension_semantics<parallel>, #tpu.dimension_semantics<arbitrary>], iteration_bounds = array<i64: 1, 1>, scalar_prefetch = 0 : i64, scratch_operands = 3 : i64, tpu.core_type = #tpu.core_type<tc>, window_params = [{transform_indices = @transform_0, window_bounds = array<i64: 4, 64>}, {transform_indices = @transform_1, window_bounds = array<i64: 64, 4>}, {transform_indices = @transform_2, window_bounds = array<i64: 64, 128>}, {transform_indices = @transform_3, window_bounds = array<i64: 64, 64>}, {pipeline_mode = #tpu.pipeline_mode<synchronous>, transform_indices = @transform_4, window_bounds = array<i64: 1, 128>}, {transform_indices = @transform_5, window_bounds = array<i64: 64, 128>}]} {
    %c0_i32 = arith.constant 0 : i32
    %0 = arith.cmpi eq, %arg1, %c0_i32 : i32
    %1 = arith.extui %0 : i1 to i32
    %c0_i32_0 = arith.constant 0 : i32
    %2 = arith.cmpi ne, %1, %c0_i32_0 : i32
    scf.if %2 {
      %cst_96 = arith.constant -1.000000e+30 : f32
      %176 = vector.broadcast %cst_96 : f32 to vector<64x4xf32>
      %c0_97 = arith.constant 0 : index
      %c0_98 = arith.constant 0 : index
      %177 = vector.load %arg8[%c0_97, %c0_98] : memref<64x4xf32, #tpu.memory_space<vmem>>, vector<64x4xf32>
      tpu.vector_store %arg8[%c0_97, %c0_98], %176 {strides = array<i32>} : memref<64x4xf32, #tpu.memory_space<vmem>>, vector<64x4xf32>,
      %cst_99 = arith.constant 0.000000e+00 : f32
      %178 = vector.broadcast %cst_99 : f32 to vector<64x4xf32>
      %c0_100 = arith.constant 0 : index
      %c0_101 = arith.constant 0 : index
      %179 = vector.load %arg9[%c0_100, %c0_101] : memref<64x4xf32, #tpu.memory_space<vmem>>, vector<64x4xf32>
      tpu.vector_store %arg9[%c0_100, %c0_101], %178 {strides = array<i32>} : memref<64x4xf32, #tpu.memory_space<vmem>>, vector<64x4xf32>,
      %cst_102 = arith.constant 0.000000e+00 : f32
      %180 = vector.broadcast %cst_102 : f32 to vector<64x128xf32>
      %c0_103 = arith.constant 0 : index
      %c0_104 = arith.constant 0 : index
      %181 = vector.load %arg10[%c0_103, %c0_104] : memref<64x128xf32, #tpu.memory_space<vmem>>, vector<64x128xf32>
      tpu.vector_store %arg10[%c0_103, %c0_104], %180 {strides = array<i32>} : memref<64x128xf32, #tpu.memory_space<vmem>>, vector<64x128xf32>,
    } else {
    }
    %c0 = arith.constant 0 : index
    %c0_1 = arith.constant 0 : index
    %3 = vector.load %arg5[%c0, %c0_1] : memref<64x64xi8, #tpu.memory_space<vmem>>, vector<64x64xi8>
    %4 = arith.extsi %3 : vector<64x64xi8> to vector<64x64xi32>
    %5 = arith.sitofp %4 : vector<64x64xi32> to vector<64x64xf32>
    %cst = arith.constant 0.000000e+00 : f32
    %6 = vector.broadcast %cst : f32 to vector<64x64xf32>
    %7 = arith.cmpf ogt, %5, %6 : vector<64x64xf32>
    %c0_2 = arith.constant 0 : index
    %c0_3 = arith.constant 0 : index
    %8 = vector.load %arg4[%c0_2, %c0_3] : memref<64x128xbf16, #tpu.memory_space<vmem>>, vector<64x128xbf16>
    %c0_4 = arith.constant 0 : index
    %c0_5 = arith.constant 0 : index
    %9 = vector.load %arg2[%c0_4, %c0_5] : memref<4x64xf32, #tpu.memory_space<vmem>>, vector<1x64xf32>
    %c0_6 = arith.constant 0 : index
    %c0_7 = arith.constant 0 : index
    %10 = vector.load %arg3[%c0_6, %c0_7] : memref<64x4xf32, #tpu.memory_space<vmem>>, vector<64x1xf32>
    %11 = vector.broadcast %10 : vector<64x1xf32> to vector<64x64xf32>
    %12 = vector.broadcast %9 : vector<1x64xf32> to vector<64x64xf32>
    %13 = arith.addf %11, %12 : vector<64x64xf32>
    %cst_8 = arith.constant 0.000000e+00 : f32
    %14 = vector.broadcast %cst_8 : f32 to vector<64x64xf32>
    %15 = arith.cmpf ogt, %13, %14 : vector<64x64xf32>
    %cst_9 = arith.constant 2.000000e-01 : f32
    %16 = vector.broadcast %cst_9 : f32 to vector<64x64xf32>
    %17 = arith.mulf %16, %13 : vector<64x64xf32>
    %18 = arith.select %15, %13, %17 : vector<64x64xi1>, vector<64x64xf32>
    %cst_10 = arith.constant -1.000000e+30 : f32
    %19 = vector.broadcast %cst_10 : f32 to vector<64x64xf32>
    %20 = arith.select %7, %18, %19 : vector<64x64xi1>, vector<64x64xf32>
    %cst_11 = arith.constant dense<0xFF800000> : vector<64xf32>
    %21 = vector.multi_reduction <maximumf>, %20, %cst_11 [1] : vector<64x64xf32> to vector<64xf32>
    %22 = vector.shape_cast %21 : vector<64xf32> to vector<64x1xf32>
    %c0_12 = arith.constant 0 : index
    %c0_13 = arith.constant 0 : index
    %23 = vector.load %arg8[%c0_12, %c0_13] : memref<64x4xf32, #tpu.memory_space<vmem>>, vector<64x1xf32>
    %24 = arith.maximumf %23, %22 : vector<64x1xf32>
    %25 = arith.subf %23, %24 : vector<64x1xf32>
    %cst_14 = arith.constant -6.000000e+01 : f32
    %26 = vector.broadcast %cst_14 : f32 to vector<64x1xf32>
    %27 = arith.maximumf %25, %26 : vector<64x1xf32>
    %28 = math.exp %27 : vector<64x1xf32>
    %29 = vector.broadcast %24 : vector<64x1xf32> to vector<64x64xf32>
    %30 = arith.subf %20, %29 : vector<64x64xf32>
    %cst_15 = arith.constant -6.000000e+01 : f32
    %31 = vector.broadcast %cst_15 : f32 to vector<64x64xf32>
    %32 = arith.maximumf %30, %31 : vector<64x64xf32>
    %33 = math.exp %32 : vector<64x64xf32>
    %34 = arith.mulf %33, %5 : vector<64x64xf32>
    %c0_16 = arith.constant 0 : index
    %c0_17 = arith.constant 0 : index
    %35 = vector.load %arg9[%c0_16, %c0_17] : memref<64x4xf32, #tpu.memory_space<vmem>>, vector<64x1xf32>
    %36 = arith.mulf %28, %35 : vector<64x1xf32>
    %cst_18 = arith.constant dense<0.000000e+00> : vector<64xf32>
    %37 = vector.multi_reduction <add>, %34, %cst_18 [1] : vector<64x64xf32> to vector<64xf32>
    %38 = vector.shape_cast %37 : vector<64xf32> to vector<64x1xf32>
    %39 = arith.addf %36, %38 : vector<64x1xf32>
    %c0_19 = arith.constant 0 : index
    %c0_20 = arith.constant 0 : index
    %40 = vector.load %arg9[%c0_19, %c0_20] : memref<64x4xf32, #tpu.memory_space<vmem>>, vector<64x1xf32>
    tpu.vector_store %arg9[%c0_19, %c0_20], %39 {strides = array<i32>} : memref<64x4xf32, #tpu.memory_space<vmem>>, vector<64x1xf32>,
    %c0_21 = arith.constant 0 : index
    %c0_22 = arith.constant 0 : index
    %41 = vector.load %arg10[%c0_21, %c0_22] : memref<64x128xf32, #tpu.memory_space<vmem>>, vector<64x32xf32>
    %42 = vector.broadcast %28 : vector<64x1xf32> to vector<64x32xf32>
    %43 = arith.mulf %42, %41 : vector<64x32xf32>
    %44 = arith.truncf %34 : vector<64x64xf32> to vector<64x64xbf16>
    %45 = vector.extract_strided_slice %8 {offsets = [0, 0], sizes = [64, 32], strides = [1, 1]} : vector<64x128xbf16> to vector<64x32xbf16>
    %cst_23 = arith.constant dense<0.000000e+00> : vector<64x32xf32>
    %46 = tpu.matmul %44, %45, %cst_23 {dimension_numbers = #tpu.dot_dimension_numbers<[1], [0], [0], [1], [0, 0, 1, 1], [], []>} : vector<64x64xbf16>, vector<64x32xbf16>, vector<64x32xf32> -> vector<64x32xf32>
    %47 = arith.addf %43, %46 : vector<64x32xf32>
    %c0_24 = arith.constant 0 : index
    %c0_25 = arith.constant 0 : index
    %48 = vector.load %arg10[%c0_24, %c0_25] : memref<64x128xf32, #tpu.memory_space<vmem>>, vector<64x32xf32>
    tpu.vector_store %arg10[%c0_24, %c0_25], %47 {strides = array<i32>} : memref<64x128xf32, #tpu.memory_space<vmem>>, vector<64x32xf32>,
    %c0_26 = arith.constant 0 : index
    %c0_27 = arith.constant 0 : index
    %49 = vector.load %arg8[%c0_26, %c0_27] : memref<64x4xf32, #tpu.memory_space<vmem>>, vector<64x1xf32>
    tpu.vector_store %arg8[%c0_26, %c0_27], %24 {strides = array<i32>} : memref<64x4xf32, #tpu.memory_space<vmem>>, vector<64x1xf32>,
    %c1 = arith.constant 1 : index
    %c0_28 = arith.constant 0 : index
    %50 = vector.load %arg2[%c1, %c0_28] : memref<4x64xf32, #tpu.memory_space<vmem>>, vector<1x64xf32>
    %c0_29 = arith.constant 0 : index
    %c1_30 = arith.constant 1 : index
    %51 = vector.load %arg3[%c0_29, %c1_30] : memref<64x4xf32, #tpu.memory_space<vmem>>, vector<64x1xf32>
    %52 = vector.broadcast %51 : vector<64x1xf32> to vector<64x64xf32>
    %53 = vector.broadcast %50 : vector<1x64xf32> to vector<64x64xf32>
    %54 = arith.addf %52, %53 : vector<64x64xf32>
    %cst_31 = arith.constant 0.000000e+00 : f32
    %55 = vector.broadcast %cst_31 : f32 to vector<64x64xf32>
    %56 = arith.cmpf ogt, %54, %55 : vector<64x64xf32>
    %cst_32 = arith.constant 2.000000e-01 : f32
    %57 = vector.broadcast %cst_32 : f32 to vector<64x64xf32>
    %58 = arith.mulf %57, %54 : vector<64x64xf32>
    %59 = arith.select %56, %54, %58 : vector<64x64xi1>, vector<64x64xf32>
    %cst_33 = arith.constant -1.000000e+30 : f32
    %60 = vector.broadcast %cst_33 : f32 to vector<64x64xf32>
    %61 = arith.select %7, %59, %60 : vector<64x64xi1>, vector<64x64xf32>
    %cst_34 = arith.constant dense<0xFF800000> : vector<64xf32>
    %62 = vector.multi_reduction <maximumf>, %61, %cst_34 [1] : vector<64x64xf32> to vector<64xf32>
    %63 = vector.shape_cast %62 : vector<64xf32> to vector<64x1xf32>
    %c0_35 = arith.constant 0 : index
    %c1_36 = arith.constant 1 : index
    %64 = vector.load %arg8[%c0_35, %c1_36] : memref<64x4xf32, #tpu.memory_space<vmem>>, vector<64x1xf32>
    %65 = arith.maximumf %64, %63 : vector<64x1xf32>
    %66 = arith.subf %64, %65 : vector<64x1xf32>
    %cst_37 = arith.constant -6.000000e+01 : f32
    %67 = vector.broadcast %cst_37 : f32 to vector<64x1xf32>
    %68 = arith.maximumf %66, %67 : vector<64x1xf32>
    %69 = math.exp %68 : vector<64x1xf32>
    %70 = vector.broadcast %65 : vector<64x1xf32> to vector<64x64xf32>
    %71 = arith.subf %61, %70 : vector<64x64xf32>
    %cst_38 = arith.constant -6.000000e+01 : f32
    %72 = vector.broadcast %cst_38 : f32 to vector<64x64xf32>
    %73 = arith.maximumf %71, %72 : vector<64x64xf32>
    %74 = math.exp %73 : vector<64x64xf32>
    %75 = arith.mulf %74, %5 : vector<64x64xf32>
    %c0_39 = arith.constant 0 : index
    %c1_40 = arith.constant 1 : index
    %76 = vector.load %arg9[%c0_39, %c1_40] : memref<64x4xf32, #tpu.memory_space<vmem>>, vector<64x1xf32>
    %77 = arith.mulf %69, %76 : vector<64x1xf32>
    %cst_41 = arith.constant dense<0.000000e+00> : vector<64xf32>
    %78 = vector.multi_reduction <add>, %75, %cst_41 [1] : vector<64x64xf32> to vector<64xf32>
    %79 = vector.shape_cast %78 : vector<64xf32> to vector<64x1xf32>
    %80 = arith.addf %77, %79 : vector<64x1xf32>
    %c0_42 = arith.constant 0 : index
    %c1_43 = arith.constant 1 : index
    %81 = vector.load %arg9[%c0_42, %c1_43] : memref<64x4xf32, #tpu.memory_space<vmem>>, vector<64x1xf32>
    tpu.vector_store %arg9[%c0_42, %c1_43], %80 {strides = array<i32>} : memref<64x4xf32, #tpu.memory_space<vmem>>, vector<64x1xf32>,
    %c0_44 = arith.constant 0 : index
    %c32 = arith.constant 32 : index
    %82 = vector.load %arg10[%c0_44, %c32] : memref<64x128xf32, #tpu.memory_space<vmem>>, vector<64x32xf32>
    %83 = vector.broadcast %69 : vector<64x1xf32> to vector<64x32xf32>
    %84 = arith.mulf %83, %82 : vector<64x32xf32>
    %85 = arith.truncf %75 : vector<64x64xf32> to vector<64x64xbf16>
    %86 = vector.extract_strided_slice %8 {offsets = [0, 32], sizes = [64, 32], strides = [1, 1]} : vector<64x128xbf16> to vector<64x32xbf16>
    %cst_45 = arith.constant dense<0.000000e+00> : vector<64x32xf32>
    %87 = tpu.matmul %85, %86, %cst_45 {dimension_numbers = #tpu.dot_dimension_numbers<[1], [0], [0], [1], [0, 0, 1, 1], [], []>} : vector<64x64xbf16>, vector<64x32xbf16>, vector<64x32xf32> -> vector<64x32xf32>
    %88 = arith.addf %84, %87 : vector<64x32xf32>
    %c0_46 = arith.constant 0 : index
    %c32_47 = arith.constant 32 : index
    %89 = vector.load %arg10[%c0_46, %c32_47] : memref<64x128xf32, #tpu.memory_space<vmem>>, vector<64x32xf32>
    tpu.vector_store %arg10[%c0_46, %c32_47], %88 {strides = array<i32>} : memref<64x128xf32, #tpu.memory_space<vmem>>, vector<64x32xf32>,
    %c0_48 = arith.constant 0 : index
    %c1_49 = arith.constant 1 : index
    %90 = vector.load %arg8[%c0_48, %c1_49] : memref<64x4xf32, #tpu.memory_space<vmem>>, vector<64x1xf32>
    tpu.vector_store %arg8[%c0_48, %c1_49], %65 {strides = array<i32>} : memref<64x4xf32, #tpu.memory_space<vmem>>, vector<64x1xf32>,
    %c2 = arith.constant 2 : index
    %c0_50 = arith.constant 0 : index
    %91 = vector.load %arg2[%c2, %c0_50] : memref<4x64xf32, #tpu.memory_space<vmem>>, vector<1x64xf32>
    %c0_51 = arith.constant 0 : index
    %c2_52 = arith.constant 2 : index
    %92 = vector.load %arg3[%c0_51, %c2_52] : memref<64x4xf32, #tpu.memory_space<vmem>>, vector<64x1xf32>
    %93 = vector.broadcast %92 : vector<64x1xf32> to vector<64x64xf32>
    %94 = vector.broadcast %91 : vector<1x64xf32> to vector<64x64xf32>
    %95 = arith.addf %93, %94 : vector<64x64xf32>
    %cst_53 = arith.constant 0.000000e+00 : f32
    %96 = vector.broadcast %cst_53 : f32 to vector<64x64xf32>
    %97 = arith.cmpf ogt, %95, %96 : vector<64x64xf32>
    %cst_54 = arith.constant 2.000000e-01 : f32
    %98 = vector.broadcast %cst_54 : f32 to vector<64x64xf32>
    %99 = arith.mulf %98, %95 : vector<64x64xf32>
    %100 = arith.select %97, %95, %99 : vector<64x64xi1>, vector<64x64xf32>
    %cst_55 = arith.constant -1.000000e+30 : f32
    %101 = vector.broadcast %cst_55 : f32 to vector<64x64xf32>
    %102 = arith.select %7, %100, %101 : vector<64x64xi1>, vector<64x64xf32>
    %cst_56 = arith.constant dense<0xFF800000> : vector<64xf32>
    %103 = vector.multi_reduction <maximumf>, %102, %cst_56 [1] : vector<64x64xf32> to vector<64xf32>
    %104 = vector.shape_cast %103 : vector<64xf32> to vector<64x1xf32>
    %c0_57 = arith.constant 0 : index
    %c2_58 = arith.constant 2 : index
    %105 = vector.load %arg8[%c0_57, %c2_58] : memref<64x4xf32, #tpu.memory_space<vmem>>, vector<64x1xf32>
    %106 = arith.maximumf %105, %104 : vector<64x1xf32>
    %107 = arith.subf %105, %106 : vector<64x1xf32>
    %cst_59 = arith.constant -6.000000e+01 : f32
    %108 = vector.broadcast %cst_59 : f32 to vector<64x1xf32>
    %109 = arith.maximumf %107, %108 : vector<64x1xf32>
    %110 = math.exp %109 : vector<64x1xf32>
    %111 = vector.broadcast %106 : vector<64x1xf32> to vector<64x64xf32>
    %112 = arith.subf %102, %111 : vector<64x64xf32>
    %cst_60 = arith.constant -6.000000e+01 : f32
    %113 = vector.broadcast %cst_60 : f32 to vector<64x64xf32>
    %114 = arith.maximumf %112, %113 : vector<64x64xf32>
    %115 = math.exp %114 : vector<64x64xf32>
    %116 = arith.mulf %115, %5 : vector<64x64xf32>
    %c0_61 = arith.constant 0 : index
    %c2_62 = arith.constant 2 : index
    %117 = vector.load %arg9[%c0_61, %c2_62] : memref<64x4xf32, #tpu.memory_space<vmem>>, vector<64x1xf32>
    %118 = arith.mulf %110, %117 : vector<64x1xf32>
    %cst_63 = arith.constant dense<0.000000e+00> : vector<64xf32>
    %119 = vector.multi_reduction <add>, %116, %cst_63 [1] : vector<64x64xf32> to vector<64xf32>
    %120 = vector.shape_cast %119 : vector<64xf32> to vector<64x1xf32>
    %121 = arith.addf %118, %120 : vector<64x1xf32>
    %c0_64 = arith.constant 0 : index
    %c2_65 = arith.constant 2 : index
    %122 = vector.load %arg9[%c0_64, %c2_65] : memref<64x4xf32, #tpu.memory_space<vmem>>, vector<64x1xf32>
    tpu.vector_store %arg9[%c0_64, %c2_65], %121 {strides = array<i32>} : memref<64x4xf32, #tpu.memory_space<vmem>>, vector<64x1xf32>,
    %c0_66 = arith.constant 0 : index
    %c64 = arith.constant 64 : index
    %123 = vector.load %arg10[%c0_66, %c64] : memref<64x128xf32, #tpu.memory_space<vmem>>, vector<64x32xf32>
    %124 = vector.broadcast %110 : vector<64x1xf32> to vector<64x32xf32>
    %125 = arith.mulf %124, %123 : vector<64x32xf32>
    %126 = arith.truncf %116 : vector<64x64xf32> to vector<64x64xbf16>
    %127 = vector.extract_strided_slice %8 {offsets = [0, 64], sizes = [64, 32], strides = [1, 1]} : vector<64x128xbf16> to vector<64x32xbf16>
    %cst_67 = arith.constant dense<0.000000e+00> : vector<64x32xf32>
    %128 = tpu.matmul %126, %127, %cst_67 {dimension_numbers = #tpu.dot_dimension_numbers<[1], [0], [0], [1], [0, 0, 1, 1], [], []>} : vector<64x64xbf16>, vector<64x32xbf16>, vector<64x32xf32> -> vector<64x32xf32>
    %129 = arith.addf %125, %128 : vector<64x32xf32>
    %c0_68 = arith.constant 0 : index
    %c64_69 = arith.constant 64 : index
    %130 = vector.load %arg10[%c0_68, %c64_69] : memref<64x128xf32, #tpu.memory_space<vmem>>, vector<64x32xf32>
    tpu.vector_store %arg10[%c0_68, %c64_69], %129 {strides = array<i32>} : memref<64x128xf32, #tpu.memory_space<vmem>>, vector<64x32xf32>,
    %c0_70 = arith.constant 0 : index
    %c2_71 = arith.constant 2 : index
    %131 = vector.load %arg8[%c0_70, %c2_71] : memref<64x4xf32, #tpu.memory_space<vmem>>, vector<64x1xf32>
    tpu.vector_store %arg8[%c0_70, %c2_71], %106 {strides = array<i32>} : memref<64x4xf32, #tpu.memory_space<vmem>>, vector<64x1xf32>,
    %c3 = arith.constant 3 : index
    %c0_72 = arith.constant 0 : index
    %132 = vector.load %arg2[%c3, %c0_72] : memref<4x64xf32, #tpu.memory_space<vmem>>, vector<1x64xf32>
    %c0_73 = arith.constant 0 : index
    %c3_74 = arith.constant 3 : index
    %133 = vector.load %arg3[%c0_73, %c3_74] : memref<64x4xf32, #tpu.memory_space<vmem>>, vector<64x1xf32>
    %134 = vector.broadcast %133 : vector<64x1xf32> to vector<64x64xf32>
    %135 = vector.broadcast %132 : vector<1x64xf32> to vector<64x64xf32>
    %136 = arith.addf %134, %135 : vector<64x64xf32>
    %cst_75 = arith.constant 0.000000e+00 : f32
    %137 = vector.broadcast %cst_75 : f32 to vector<64x64xf32>
    %138 = arith.cmpf ogt, %136, %137 : vector<64x64xf32>
    %cst_76 = arith.constant 2.000000e-01 : f32
    %139 = vector.broadcast %cst_76 : f32 to vector<64x64xf32>
    %140 = arith.mulf %139, %136 : vector<64x64xf32>
    %141 = arith.select %138, %136, %140 : vector<64x64xi1>, vector<64x64xf32>
    %cst_77 = arith.constant -1.000000e+30 : f32
    %142 = vector.broadcast %cst_77 : f32 to vector<64x64xf32>
    %143 = arith.select %7, %141, %142 : vector<64x64xi1>, vector<64x64xf32>
    %cst_78 = arith.constant dense<0xFF800000> : vector<64xf32>
    %144 = vector.multi_reduction <maximumf>, %143, %cst_78 [1] : vector<64x64xf32> to vector<64xf32>
    %145 = vector.shape_cast %144 : vector<64xf32> to vector<64x1xf32>
    %c0_79 = arith.constant 0 : index
    %c3_80 = arith.constant 3 : index
    %146 = vector.load %arg8[%c0_79, %c3_80] : memref<64x4xf32, #tpu.memory_space<vmem>>, vector<64x1xf32>
    %147 = arith.maximumf %146, %145 : vector<64x1xf32>
    %148 = arith.subf %146, %147 : vector<64x1xf32>
    %cst_81 = arith.constant -6.000000e+01 : f32
    %149 = vector.broadcast %cst_81 : f32 to vector<64x1xf32>
    %150 = arith.maximumf %148, %149 : vector<64x1xf32>
    %151 = math.exp %150 : vector<64x1xf32>
    %152 = vector.broadcast %147 : vector<64x1xf32> to vector<64x64xf32>
    %153 = arith.subf %143, %152 : vector<64x64xf32>
    %cst_82 = arith.constant -6.000000e+01 : f32
    %154 = vector.broadcast %cst_82 : f32 to vector<64x64xf32>
    %155 = arith.maximumf %153, %154 : vector<64x64xf32>
    %156 = math.exp %155 : vector<64x64xf32>
    %157 = arith.mulf %156, %5 : vector<64x64xf32>
    %c0_83 = arith.constant 0 : index
    %c3_84 = arith.constant 3 : index
    %158 = vector.load %arg9[%c0_83, %c3_84] : memref<64x4xf32, #tpu.memory_space<vmem>>, vector<64x1xf32>
    %159 = arith.mulf %151, %158 : vector<64x1xf32>
    %cst_85 = arith.constant dense<0.000000e+00> : vector<64xf32>
    %160 = vector.multi_reduction <add>, %157, %cst_85 [1] : vector<64x64xf32> to vector<64xf32>
    %161 = vector.shape_cast %160 : vector<64xf32> to vector<64x1xf32>
    %162 = arith.addf %159, %161 : vector<64x1xf32>
    %c0_86 = arith.constant 0 : index
    %c3_87 = arith.constant 3 : index
    %163 = vector.load %arg9[%c0_86, %c3_87] : memref<64x4xf32, #tpu.memory_space<vmem>>, vector<64x1xf32>
    tpu.vector_store %arg9[%c0_86, %c3_87], %162 {strides = array<i32>} : memref<64x4xf32, #tpu.memory_space<vmem>>, vector<64x1xf32>,
    %c0_88 = arith.constant 0 : index
    %c96 = arith.constant 96 : index
    %164 = vector.load %arg10[%c0_88, %c96] : memref<64x128xf32, #tpu.memory_space<vmem>>, vector<64x32xf32>
    %165 = vector.broadcast %151 : vector<64x1xf32> to vector<64x32xf32>
    %166 = arith.mulf %165, %164 : vector<64x32xf32>
    %167 = arith.truncf %157 : vector<64x64xf32> to vector<64x64xbf16>
    %168 = vector.extract_strided_slice %8 {offsets = [0, 96], sizes = [64, 32], strides = [1, 1]} : vector<64x128xbf16> to vector<64x32xbf16>
    %cst_89 = arith.constant dense<0.000000e+00> : vector<64x32xf32>
    %169 = tpu.matmul %167, %168, %cst_89 {dimension_numbers = #tpu.dot_dimension_numbers<[1], [0], [0], [1], [0, 0, 1, 1], [], []>} : vector<64x64xbf16>, vector<64x32xbf16>, vector<64x32xf32> -> vector<64x32xf32>
    %170 = arith.addf %166, %169 : vector<64x32xf32>
    %c0_90 = arith.constant 0 : index
    %c96_91 = arith.constant 96 : index
    %171 = vector.load %arg10[%c0_90, %c96_91] : memref<64x128xf32, #tpu.memory_space<vmem>>, vector<64x32xf32>
    tpu.vector_store %arg10[%c0_90, %c96_91], %170 {strides = array<i32>} : memref<64x128xf32, #tpu.memory_space<vmem>>, vector<64x32xf32>,
    %c0_92 = arith.constant 0 : index
    %c3_93 = arith.constant 3 : index
    %172 = vector.load %arg8[%c0_92, %c3_93] : memref<64x4xf32, #tpu.memory_space<vmem>>, vector<64x1xf32>
    tpu.vector_store %arg8[%c0_92, %c3_93], %147 {strides = array<i32>} : memref<64x4xf32, #tpu.memory_space<vmem>>, vector<64x1xf32>,
    %c0_i32_94 = arith.constant 0 : i32
    %173 = arith.cmpi eq, %arg1, %c0_i32_94 : i32
    %174 = arith.extui %173 : i1 to i32
    %c0_i32_95 = arith.constant 0 : i32
    %175 = arith.cmpi ne, %174, %c0_i32_95 : i32
    scf.if %175 {
      %c0_96 = arith.constant 0 : index
      %c0_97 = arith.constant 0 : index
      %176 = vector.load %arg10[%c0_96, %c0_97] : memref<64x128xf32, #tpu.memory_space<vmem>>, vector<64x32xf32>
      %c0_98 = arith.constant 0 : index
      %c0_99 = arith.constant 0 : index
      %177 = vector.load %arg9[%c0_98, %c0_99] : memref<64x4xf32, #tpu.memory_space<vmem>>, vector<64x1xf32>
      %178 = vector.broadcast %177 : vector<64x1xf32> to vector<64x32xf32>
      %179 = arith.divf %176, %178 : vector<64x32xf32>
      %c0_100 = arith.constant 0 : index
      %c0_101 = arith.constant 0 : index
      %180 = vector.load %arg6[%c0_100, %c0_101] : memref<1x128xf32, #tpu.memory_space<vmem>>, vector<1x32xf32>
      %181 = vector.broadcast %180 : vector<1x32xf32> to vector<64x32xf32>
      %182 = arith.addf %179, %181 : vector<64x32xf32>
      %cst_102 = arith.constant 0.000000e+00 : f32
      %183 = vector.broadcast %cst_102 : f32 to vector<64x32xf32>
      %184 = arith.maximumf %182, %183 : vector<64x32xf32>
      %c0_103 = arith.constant 0 : index
      %c0_104 = arith.constant 0 : index
      %185 = vector.load %arg7[%c0_103, %c0_104] : memref<64x128xf32, #tpu.memory_space<vmem>>, vector<64x32xf32>
      tpu.vector_store %arg7[%c0_103, %c0_104], %184 {strides = array<i32>} : memref<64x128xf32, #tpu.memory_space<vmem>>, vector<64x32xf32>,
      %c0_105 = arith.constant 0 : index
      %c32_106 = arith.constant 32 : index
      %186 = vector.load %arg10[%c0_105, %c32_106] : memref<64x128xf32, #tpu.memory_space<vmem>>, vector<64x32xf32>
      %c0_107 = arith.constant 0 : index
      %c1_108 = arith.constant 1 : index
      %187 = vector.load %arg9[%c0_107, %c1_108] : memref<64x4xf32, #tpu.memory_space<vmem>>, vector<64x1xf32>
      %188 = vector.broadcast %187 : vector<64x1xf32> to vector<64x32xf32>
      %189 = arith.divf %186, %188 : vector<64x32xf32>
      %c0_109 = arith.constant 0 : index
      %c32_110 = arith.constant 32 : index
      %190 = vector.load %arg6[%c0_109, %c32_110] : memref<1x128xf32, #tpu.memory_space<vmem>>, vector<1x32xf32>
      %191 = vector.broadcast %190 : vector<1x32xf32> to vector<64x32xf32>
      %192 = arith.addf %189, %191 : vector<64x32xf32>
      %cst_111 = arith.constant 0.000000e+00 : f32
      %193 = vector.broadcast %cst_111 : f32 to vector<64x32xf32>
      %194 = arith.maximumf %192, %193 : vector<64x32xf32>
      %c0_112 = arith.constant 0 : index
      %c32_113 = arith.constant 32 : index
      %195 = vector.load %arg7[%c0_112, %c32_113] : memref<64x128xf32, #tpu.memory_space<vmem>>, vector<64x32xf32>
      tpu.vector_store %arg7[%c0_112, %c32_113], %194 {strides = array<i32>} : memref<64x128xf32, #tpu.memory_space<vmem>>, vector<64x32xf32>,
      %c0_114 = arith.constant 0 : index
      %c64_115 = arith.constant 64 : index
      %196 = vector.load %arg10[%c0_114, %c64_115] : memref<64x128xf32, #tpu.memory_space<vmem>>, vector<64x32xf32>
      %c0_116 = arith.constant 0 : index
      %c2_117 = arith.constant 2 : index
      %197 = vector.load %arg9[%c0_116, %c2_117] : memref<64x4xf32, #tpu.memory_space<vmem>>, vector<64x1xf32>
      %198 = vector.broadcast %197 : vector<64x1xf32> to vector<64x32xf32>
      %199 = arith.divf %196, %198 : vector<64x32xf32>
      %c0_118 = arith.constant 0 : index
      %c64_119 = arith.constant 64 : index
      %200 = vector.load %arg6[%c0_118, %c64_119] : memref<1x128xf32, #tpu.memory_space<vmem>>, vector<1x32xf32>
      %201 = vector.broadcast %200 : vector<1x32xf32> to vector<64x32xf32>
      %202 = arith.addf %199, %201 : vector<64x32xf32>
      %cst_120 = arith.constant 0.000000e+00 : f32
      %203 = vector.broadcast %cst_120 : f32 to vector<64x32xf32>
      %204 = arith.maximumf %202, %203 : vector<64x32xf32>
      %c0_121 = arith.constant 0 : index
      %c64_122 = arith.constant 64 : index
      %205 = vector.load %arg7[%c0_121, %c64_122] : memref<64x128xf32, #tpu.memory_space<vmem>>, vector<64x32xf32>
      tpu.vector_store %arg7[%c0_121, %c64_122], %204 {strides = array<i32>} : memref<64x128xf32, #tpu.memory_space<vmem>>, vector<64x32xf32>,
      %c0_123 = arith.constant 0 : index
      %c96_124 = arith.constant 96 : index
      %206 = vector.load %arg10[%c0_123, %c96_124] : memref<64x128xf32, #tpu.memory_space<vmem>>, vector<64x32xf32>
      %c0_125 = arith.constant 0 : index
      %c3_126 = arith.constant 3 : index
      %207 = vector.load %arg9[%c0_125, %c3_126] : memref<64x4xf32, #tpu.memory_space<vmem>>, vector<64x1xf32>
      %208 = vector.broadcast %207 : vector<64x1xf32> to vector<64x32xf32>
      %209 = arith.divf %206, %208 : vector<64x32xf32>
      %c0_127 = arith.constant 0 : index
      %c96_128 = arith.constant 96 : index
      %210 = vector.load %arg6[%c0_127, %c96_128] : memref<1x128xf32, #tpu.memory_space<vmem>>, vector<1x32xf32>
      %211 = vector.broadcast %210 : vector<1x32xf32> to vector<64x32xf32>
      %212 = arith.addf %209, %211 : vector<64x32xf32>
      %cst_129 = arith.constant 0.000000e+00 : f32
      %213 = vector.broadcast %cst_129 : f32 to vector<64x32xf32>
      %214 = arith.maximumf %212, %213 : vector<64x32xf32>
      %c0_130 = arith.constant 0 : index
      %c96_131 = arith.constant 96 : index
      %215 = vector.load %arg7[%c0_130, %c96_131] : memref<64x128xf32, #tpu.memory_space<vmem>>, vector<64x32xf32>
      tpu.vector_store %arg7[%c0_130, %c96_131], %214 {strides = array<i32>} : memref<64x128xf32, #tpu.memory_space<vmem>>, vector<64x32xf32>,
    } else {
    }
    return
  }
  func.func @transform_0(%arg0: i32, %arg1: i32) -> (i32, i32) {
    %c0_i32 = arith.constant 0 : i32
    %c0_i32_0 = arith.constant 0 : i32
    return %c0_i32, %arg1 : i32, i32
  }
  func.func @transform_1(%arg0: i32, %arg1: i32) -> (i32, i32) {
    %c0_i32 = arith.constant 0 : i32
    %c0_i32_0 = arith.constant 0 : i32
    return %arg0, %c0_i32 : i32, i32
  }
  func.func @transform_2(%arg0: i32, %arg1: i32) -> (i32, i32) {
    %c0_i32 = arith.constant 0 : i32
    %c0_i32_0 = arith.constant 0 : i32
    return %arg1, %c0_i32 : i32, i32
  }
  func.func @transform_3(%arg0: i32, %arg1: i32) -> (i32, i32) {
    %c0_i32 = arith.constant 0 : i32
    return %arg0, %arg1 : i32, i32
  }
  func.func @transform_4(%arg0: i32, %arg1: i32) -> (i32, i32) {
    %c0_i32 = arith.constant 0 : i32
    %c0_i32_0 = arith.constant 0 : i32
    %c0_i32_1 = arith.constant 0 : i32
    return %c0_i32, %c0_i32_0 : i32, i32
  }
  func.func @transform_5(%arg0: i32, %arg1: i32) -> (i32, i32) {
    %c0_i32 = arith.constant 0 : i32
    %c0_i32_0 = arith.constant 0 : i32
    return %arg0, %c0_i32 : i32, i32
  }
}

module attributes {stable_mosaic.version = 11 : i64} {
  func.func @gat_proj_kernel(%arg0: i32, %arg1: memref<64x128xbf16, #tpu.memory_space<vmem>>, %arg2: memref<128x128xbf16, #tpu.memory_space<vmem>>, %arg3: memref<128x128xbf16, #tpu.memory_space<vmem>>, %arg4: memref<64x128xbf16, #tpu.memory_space<vmem>>, %arg5: memref<64x128xf32, #tpu.memory_space<vmem>>) attributes {dimension_semantics = [#tpu.dimension_semantics<parallel>], iteration_bounds = array<i64: 1>, scalar_prefetch = 0 : i64, scratch_operands = 0 : i64, tpu.core_type = #tpu.core_type<tc>, window_params = [{transform_indices = @transform_0, window_bounds = array<i64: 64, 128>}, {pipeline_mode = #tpu.pipeline_mode<synchronous>, transform_indices = @transform_1, window_bounds = array<i64: 128, 128>}, {pipeline_mode = #tpu.pipeline_mode<synchronous>, transform_indices = @transform_2, window_bounds = array<i64: 128, 128>}, {transform_indices = @transform_3, window_bounds = array<i64: 64, 128>}, {transform_indices = @transform_4, window_bounds = array<i64: 64, 128>}]} {
    %c0 = arith.constant 0 : index
    %c0_0 = arith.constant 0 : index
    %0 = vector.load %arg1[%c0, %c0_0] : memref<64x128xbf16, #tpu.memory_space<vmem>>, vector<64x128xbf16>
    %c0_1 = arith.constant 0 : index
    %c0_2 = arith.constant 0 : index
    %1 = vector.load %arg2[%c0_1, %c0_2] : memref<128x128xbf16, #tpu.memory_space<vmem>>, vector<128x128xbf16>
    %cst = arith.constant dense<0.000000e+00> : vector<64x128xf32>
    %2 = tpu.matmul %0, %1, %cst {dimension_numbers = #tpu.dot_dimension_numbers<[1], [0], [0], [1], [0, 0, 1, 1], [], []>} : vector<64x128xbf16>, vector<128x128xbf16>, vector<64x128xf32> -> vector<64x128xf32>
    %3 = arith.truncf %2 : vector<64x128xf32> to vector<64x128xbf16>
    %c0_3 = arith.constant 0 : index
    %c0_4 = arith.constant 0 : index
    %4 = vector.load %arg4[%c0_3, %c0_4] : memref<64x128xbf16, #tpu.memory_space<vmem>>, vector<64x128xbf16>
    tpu.vector_store %arg4[%c0_3, %c0_4], %3 {strides = array<i32>} : memref<64x128xbf16, #tpu.memory_space<vmem>>, vector<64x128xbf16>,
    %c0_5 = arith.constant 0 : index
    %c0_6 = arith.constant 0 : index
    %5 = vector.load %arg3[%c0_5, %c0_6] : memref<128x128xbf16, #tpu.memory_space<vmem>>, vector<128x128xbf16>
    %cst_7 = arith.constant dense<0.000000e+00> : vector<64x128xf32>
    %6 = tpu.matmul %3, %5, %cst_7 {dimension_numbers = #tpu.dot_dimension_numbers<[1], [0], [0], [1], [0, 0, 1, 1], [], []>} : vector<64x128xbf16>, vector<128x128xbf16>, vector<64x128xf32> -> vector<64x128xf32>
    %c0_8 = arith.constant 0 : index
    %c0_9 = arith.constant 0 : index
    %7 = vector.load %arg5[%c0_8, %c0_9] : memref<64x128xf32, #tpu.memory_space<vmem>>, vector<64x128xf32>
    tpu.vector_store %arg5[%c0_8, %c0_9], %6 {strides = array<i32>} : memref<64x128xf32, #tpu.memory_space<vmem>>, vector<64x128xf32>,
    return
  }
  func.func @transform_0(%arg0: i32) -> (i32, i32) {
    %c0_i32 = arith.constant 0 : i32
    %c0_i32_0 = arith.constant 0 : i32
    return %arg0, %c0_i32 : i32, i32
  }
  func.func @transform_1(%arg0: i32) -> (i32, i32) {
    %c0_i32 = arith.constant 0 : i32
    %c0_i32_0 = arith.constant 0 : i32
    %c0_i32_1 = arith.constant 0 : i32
    return %c0_i32, %c0_i32_0 : i32, i32
  }
  func.func @transform_2(%arg0: i32) -> (i32, i32) {
    %c0_i32 = arith.constant 0 : i32
    %c0_i32_0 = arith.constant 0 : i32
    %c0_i32_1 = arith.constant 0 : i32
    return %c0_i32, %c0_i32_0 : i32, i32
  }
  func.func @transform_3(%arg0: i32) -> (i32, i32) {
    %c0_i32 = arith.constant 0 : i32
    %c0_i32_0 = arith.constant 0 : i32
    return %arg0, %c0_i32 : i32, i32
  }
  func.func @transform_4(%arg0: i32) -> (i32, i32) {
    %c0_i32 = arith.constant 0 : i32
    %c0_i32_0 = arith.constant 0 : i32
    return %arg0, %c0_i32 : i32, i32
  }
}

module attributes {stable_mosaic.version = 11 : i64} {
  func.func @kernel(%arg0: i32, %arg1: i32, %arg2: memref<1x64xf32, #tpu.memory_space<vmem>>, %arg3: memref<64x1xf32, #tpu.memory_space<vmem>>, %arg4: memref<64x128xbf16, #tpu.memory_space<vmem>>, %arg5: memref<64x64xi8, #tpu.memory_space<vmem>>, %arg6: memref<1x128xf32, #tpu.memory_space<vmem>>, %arg7: memref<64x128xf32, #tpu.memory_space<vmem>>, %arg8: memref<64x1xf32, #tpu.memory_space<vmem>>, %arg9: memref<64x1xf32, #tpu.memory_space<vmem>>, %arg10: memref<64x128xf32, #tpu.memory_space<vmem>>) attributes {dimension_semantics = [#tpu.dimension_semantics<parallel>, #tpu.dimension_semantics<arbitrary>], iteration_bounds = array<i64: 1, 1>, scalar_prefetch = 0 : i64, scratch_operands = 3 : i64, tpu.core_type = #tpu.core_type<tc>, window_params = [{transform_indices = @transform_0, window_bounds = array<i64: 1, 64>}, {transform_indices = @transform_1, window_bounds = array<i64: 64, 1>}, {transform_indices = @transform_2, window_bounds = array<i64: 64, 128>}, {transform_indices = @transform_3, window_bounds = array<i64: 64, 64>}, {pipeline_mode = #tpu.pipeline_mode<synchronous>, transform_indices = @transform_4, window_bounds = array<i64: 1, 128>}, {transform_indices = @transform_5, window_bounds = array<i64: 64, 128>}]} {
    %c0_i32 = arith.constant 0 : i32
    %0 = arith.cmpi eq, %arg1, %c0_i32 : i32
    %1 = arith.extui %0 : i1 to i32
    %c0_i32_0 = arith.constant 0 : i32
    %2 = arith.cmpi ne, %1, %c0_i32_0 : i32
    scf.if %2 {
      %cst_30 = arith.constant -1.000000e+30 : f32
      %52 = vector.broadcast %cst_30 : f32 to vector<64x1xf32>
      %c0_31 = arith.constant 0 : index
      %c0_32 = arith.constant 0 : index
      %53 = vector.load %arg8[%c0_31, %c0_32] : memref<64x1xf32, #tpu.memory_space<vmem>>, vector<64x1xf32>
      tpu.vector_store %arg8[%c0_31, %c0_32], %52 {strides = array<i32>} : memref<64x1xf32, #tpu.memory_space<vmem>>, vector<64x1xf32>,
      %cst_33 = arith.constant 0.000000e+00 : f32
      %54 = vector.broadcast %cst_33 : f32 to vector<64x1xf32>
      %c0_34 = arith.constant 0 : index
      %c0_35 = arith.constant 0 : index
      %55 = vector.load %arg9[%c0_34, %c0_35] : memref<64x1xf32, #tpu.memory_space<vmem>>, vector<64x1xf32>
      tpu.vector_store %arg9[%c0_34, %c0_35], %54 {strides = array<i32>} : memref<64x1xf32, #tpu.memory_space<vmem>>, vector<64x1xf32>,
      %cst_36 = arith.constant 0.000000e+00 : f32
      %56 = vector.broadcast %cst_36 : f32 to vector<64x128xf32>
      %c0_37 = arith.constant 0 : index
      %c0_38 = arith.constant 0 : index
      %57 = vector.load %arg10[%c0_37, %c0_38] : memref<64x128xf32, #tpu.memory_space<vmem>>, vector<64x128xf32>
      tpu.vector_store %arg10[%c0_37, %c0_38], %56 {strides = array<i32>} : memref<64x128xf32, #tpu.memory_space<vmem>>, vector<64x128xf32>,
    } else {
    }
    %c0 = arith.constant 0 : index
    %c0_1 = arith.constant 0 : index
    %3 = vector.load %arg5[%c0, %c0_1] : memref<64x64xi8, #tpu.memory_space<vmem>>, vector<64x64xi8>
    %4 = arith.extsi %3 : vector<64x64xi8> to vector<64x64xi32>
    %5 = arith.sitofp %4 : vector<64x64xi32> to vector<64x64xf32>
    %cst = arith.constant 0.000000e+00 : f32
    %6 = vector.broadcast %cst : f32 to vector<64x64xf32>
    %7 = arith.cmpf ogt, %5, %6 : vector<64x64xf32>
    %c0_2 = arith.constant 0 : index
    %c0_3 = arith.constant 0 : index
    %8 = vector.load %arg4[%c0_2, %c0_3] : memref<64x128xbf16, #tpu.memory_space<vmem>>, vector<64x128xbf16>
    %c0_4 = arith.constant 0 : index
    %c0_5 = arith.constant 0 : index
    %9 = vector.load %arg2[%c0_4, %c0_5] : memref<1x64xf32, #tpu.memory_space<vmem>>, vector<1x64xf32>
    %c0_6 = arith.constant 0 : index
    %c0_7 = arith.constant 0 : index
    %10 = vector.load %arg3[%c0_6, %c0_7] : memref<64x1xf32, #tpu.memory_space<vmem>>, vector<64x1xf32>
    %11 = vector.broadcast %10 : vector<64x1xf32> to vector<64x64xf32>
    %12 = vector.broadcast %9 : vector<1x64xf32> to vector<64x64xf32>
    %13 = arith.addf %11, %12 : vector<64x64xf32>
    %cst_8 = arith.constant 0.000000e+00 : f32
    %14 = vector.broadcast %cst_8 : f32 to vector<64x64xf32>
    %15 = arith.cmpf ogt, %13, %14 : vector<64x64xf32>
    %cst_9 = arith.constant 2.000000e-01 : f32
    %16 = vector.broadcast %cst_9 : f32 to vector<64x64xf32>
    %17 = arith.mulf %16, %13 : vector<64x64xf32>
    %18 = arith.select %15, %13, %17 : vector<64x64xi1>, vector<64x64xf32>
    %cst_10 = arith.constant -1.000000e+30 : f32
    %19 = vector.broadcast %cst_10 : f32 to vector<64x64xf32>
    %20 = arith.select %7, %18, %19 : vector<64x64xi1>, vector<64x64xf32>
    %cst_11 = arith.constant dense<0xFF800000> : vector<64xf32>
    %21 = vector.multi_reduction <maximumf>, %20, %cst_11 [1] : vector<64x64xf32> to vector<64xf32>
    %22 = vector.shape_cast %21 : vector<64xf32> to vector<64x1xf32>
    %c0_12 = arith.constant 0 : index
    %c0_13 = arith.constant 0 : index
    %23 = vector.load %arg8[%c0_12, %c0_13] : memref<64x1xf32, #tpu.memory_space<vmem>>, vector<64x1xf32>
    %24 = arith.maximumf %23, %22 : vector<64x1xf32>
    %25 = arith.subf %23, %24 : vector<64x1xf32>
    %cst_14 = arith.constant -6.000000e+01 : f32
    %26 = vector.broadcast %cst_14 : f32 to vector<64x1xf32>
    %27 = arith.maximumf %25, %26 : vector<64x1xf32>
    %28 = math.exp %27 : vector<64x1xf32>
    %29 = vector.broadcast %24 : vector<64x1xf32> to vector<64x64xf32>
    %30 = arith.subf %20, %29 : vector<64x64xf32>
    %cst_15 = arith.constant -6.000000e+01 : f32
    %31 = vector.broadcast %cst_15 : f32 to vector<64x64xf32>
    %32 = arith.maximumf %30, %31 : vector<64x64xf32>
    %33 = math.exp %32 : vector<64x64xf32>
    %34 = arith.mulf %33, %5 : vector<64x64xf32>
    %c0_16 = arith.constant 0 : index
    %c0_17 = arith.constant 0 : index
    %35 = vector.load %arg9[%c0_16, %c0_17] : memref<64x1xf32, #tpu.memory_space<vmem>>, vector<64x1xf32>
    %36 = arith.mulf %28, %35 : vector<64x1xf32>
    %cst_18 = arith.constant dense<0.000000e+00> : vector<64xf32>
    %37 = vector.multi_reduction <add>, %34, %cst_18 [1] : vector<64x64xf32> to vector<64xf32>
    %38 = vector.shape_cast %37 : vector<64xf32> to vector<64x1xf32>
    %39 = arith.addf %36, %38 : vector<64x1xf32>
    %c0_19 = arith.constant 0 : index
    %c0_20 = arith.constant 0 : index
    %40 = vector.load %arg9[%c0_19, %c0_20] : memref<64x1xf32, #tpu.memory_space<vmem>>, vector<64x1xf32>
    tpu.vector_store %arg9[%c0_19, %c0_20], %39 {strides = array<i32>} : memref<64x1xf32, #tpu.memory_space<vmem>>, vector<64x1xf32>,
    %c0_21 = arith.constant 0 : index
    %c0_22 = arith.constant 0 : index
    %41 = vector.load %arg10[%c0_21, %c0_22] : memref<64x128xf32, #tpu.memory_space<vmem>>, vector<64x128xf32>
    %42 = vector.broadcast %28 : vector<64x1xf32> to vector<64x128xf32>
    %43 = arith.mulf %42, %41 : vector<64x128xf32>
    %44 = arith.truncf %34 : vector<64x64xf32> to vector<64x64xbf16>
    %cst_23 = arith.constant dense<0.000000e+00> : vector<64x128xf32>
    %45 = tpu.matmul %44, %8, %cst_23 {dimension_numbers = #tpu.dot_dimension_numbers<[1], [0], [0], [1], [0, 0, 1, 1], [], []>} : vector<64x64xbf16>, vector<64x128xbf16>, vector<64x128xf32> -> vector<64x128xf32>
    %46 = arith.addf %43, %45 : vector<64x128xf32>
    %c0_24 = arith.constant 0 : index
    %c0_25 = arith.constant 0 : index
    %47 = vector.load %arg10[%c0_24, %c0_25] : memref<64x128xf32, #tpu.memory_space<vmem>>, vector<64x128xf32>
    tpu.vector_store %arg10[%c0_24, %c0_25], %46 {strides = array<i32>} : memref<64x128xf32, #tpu.memory_space<vmem>>, vector<64x128xf32>,
    %c0_26 = arith.constant 0 : index
    %c0_27 = arith.constant 0 : index
    %48 = vector.load %arg8[%c0_26, %c0_27] : memref<64x1xf32, #tpu.memory_space<vmem>>, vector<64x1xf32>
    tpu.vector_store %arg8[%c0_26, %c0_27], %24 {strides = array<i32>} : memref<64x1xf32, #tpu.memory_space<vmem>>, vector<64x1xf32>,
    %c0_i32_28 = arith.constant 0 : i32
    %49 = arith.cmpi eq, %arg1, %c0_i32_28 : i32
    %50 = arith.extui %49 : i1 to i32
    %c0_i32_29 = arith.constant 0 : i32
    %51 = arith.cmpi ne, %50, %c0_i32_29 : i32
    scf.if %51 {
      %c0_30 = arith.constant 0 : index
      %c0_31 = arith.constant 0 : index
      %52 = vector.load %arg10[%c0_30, %c0_31] : memref<64x128xf32, #tpu.memory_space<vmem>>, vector<64x128xf32>
      %c0_32 = arith.constant 0 : index
      %c0_33 = arith.constant 0 : index
      %53 = vector.load %arg9[%c0_32, %c0_33] : memref<64x1xf32, #tpu.memory_space<vmem>>, vector<64x1xf32>
      %54 = vector.broadcast %53 : vector<64x1xf32> to vector<64x128xf32>
      %55 = arith.divf %52, %54 : vector<64x128xf32>
      %cst_34 = arith.constant 1.000000e+00 : f32
      %56 = vector.broadcast %cst_34 : f32 to vector<64x128xf32>
      %57 = arith.divf %55, %56 : vector<64x128xf32>
      %c0_35 = arith.constant 0 : index
      %c0_36 = arith.constant 0 : index
      %58 = vector.load %arg6[%c0_35, %c0_36] : memref<1x128xf32, #tpu.memory_space<vmem>>, vector<1x128xf32>
      %59 = vector.broadcast %58 : vector<1x128xf32> to vector<64x128xf32>
      %60 = arith.addf %57, %59 : vector<64x128xf32>
      %c0_37 = arith.constant 0 : index
      %c0_38 = arith.constant 0 : index
      %61 = vector.load %arg7[%c0_37, %c0_38] : memref<64x128xf32, #tpu.memory_space<vmem>>, vector<64x128xf32>
      tpu.vector_store %arg7[%c0_37, %c0_38], %60 {strides = array<i32>} : memref<64x128xf32, #tpu.memory_space<vmem>>, vector<64x128xf32>,
    } else {
    }
    return
  }
  func.func @transform_0(%arg0: i32, %arg1: i32) -> (i32, i32) {
    %c0_i32 = arith.constant 0 : i32
    %c0_i32_0 = arith.constant 0 : i32
    return %c0_i32, %arg1 : i32, i32
  }
  func.func @transform_1(%arg0: i32, %arg1: i32) -> (i32, i32) {
    %c0_i32 = arith.constant 0 : i32
    %c0_i32_0 = arith.constant 0 : i32
    return %arg0, %c0_i32 : i32, i32
  }
  func.func @transform_2(%arg0: i32, %arg1: i32) -> (i32, i32) {
    %c0_i32 = arith.constant 0 : i32
    %c0_i32_0 = arith.constant 0 : i32
    return %arg1, %c0_i32 : i32, i32
  }
  func.func @transform_3(%arg0: i32, %arg1: i32) -> (i32, i32) {
    %c0_i32 = arith.constant 0 : i32
    return %arg0, %arg1 : i32, i32
  }
  func.func @transform_4(%arg0: i32, %arg1: i32) -> (i32, i32) {
    %c0_i32 = arith.constant 0 : i32
    %c0_i32_0 = arith.constant 0 : i32
    %c0_i32_1 = arith.constant 0 : i32
    return %c0_i32, %c0_i32_0 : i32, i32
  }
  func.func @transform_5(%arg0: i32, %arg1: i32) -> (i32, i32) {
    %c0_i32 = arith.constant 0 : i32
    %c0_i32_0 = arith.constant 0 : i32
    return %arg0, %c0_i32 : i32, i32
  }
}

module attributes {stable_mosaic.version = 11 : i64} {
  func.func @gcn_hop_fused_kernel(%arg0: i32, %arg1: memref<1x16x16xbf16, #tpu.memory_space<vmem>>, %arg2: memref<1x16x8xbf16, #tpu.memory_space<vmem>>, %arg3: memref<8x32xbf16, #tpu.memory_space<vmem>>, %arg4: memref<1x32xf32, #tpu.memory_space<vmem>>, %arg5: memref<32x32xbf16, #tpu.memory_space<vmem>>, %arg6: memref<1x32xf32, #tpu.memory_space<vmem>>, %arg7: memref<32x128xbf16, #tpu.memory_space<vmem>>, %arg8: memref<1x128xf32, #tpu.memory_space<vmem>>, %arg9: memref<1x16x128xbf16, #tpu.memory_space<vmem>>) attributes {dimension_semantics = [#tpu.dimension_semantics<parallel>], iteration_bounds = array<i64: 4>, scalar_prefetch = 0 : i64, scratch_operands = 0 : i64, tpu.core_type = #tpu.core_type<tc>, window_params = [{transform_indices = @transform_0, window_bounds = array<i64: 1, 16, 16>}, {transform_indices = @transform_1, window_bounds = array<i64: 1, 16, 8>}, {pipeline_mode = #tpu.pipeline_mode<synchronous>, transform_indices = @transform_2, window_bounds = array<i64: 8, 32>}, {pipeline_mode = #tpu.pipeline_mode<synchronous>, transform_indices = @transform_3, window_bounds = array<i64: 1, 32>}, {pipeline_mode = #tpu.pipeline_mode<synchronous>, transform_indices = @transform_4, window_bounds = array<i64: 32, 32>}, {pipeline_mode = #tpu.pipeline_mode<synchronous>, transform_indices = @transform_5, window_bounds = array<i64: 1, 32>}, {pipeline_mode = #tpu.pipeline_mode<synchronous>, transform_indices = @transform_6, window_bounds = array<i64: 32, 128>}, {pipeline_mode = #tpu.pipeline_mode<synchronous>, transform_indices = @transform_7, window_bounds = array<i64: 1, 128>}, {transform_indices = @transform_8, window_bounds = array<i64: 1, 16, 128>}]} {
    %c0 = arith.constant 0 : index
    %c0_0 = arith.constant 0 : index
    %c0_1 = arith.constant 0 : index
    %0 = vector.load %arg1[%c0, %c0_0, %c0_1] : memref<1x16x16xbf16, #tpu.memory_space<vmem>>, vector<1x16x16xbf16>
    %1 = vector.shape_cast %0 : vector<1x16x16xbf16> to vector<16x16xbf16>
    %c0_2 = arith.constant 0 : index
    %c0_3 = arith.constant 0 : index
    %c0_4 = arith.constant 0 : index
    %2 = vector.load %arg2[%c0_2, %c0_3, %c0_4] : memref<1x16x8xbf16, #tpu.memory_space<vmem>>, vector<1x16x8xbf16>
    %3 = vector.shape_cast %2 : vector<1x16x8xbf16> to vector<16x8xbf16>
    %c0_5 = arith.constant 0 : index
    %c0_6 = arith.constant 0 : index
    %4 = vector.load %arg3[%c0_5, %c0_6] : memref<8x32xbf16, #tpu.memory_space<vmem>>, vector<8x32xbf16>
    %cst = arith.constant dense<0.000000e+00> : vector<16x32xf32>
    %5 = tpu.matmul %3, %4, %cst {dimension_numbers = #tpu.dot_dimension_numbers<[1], [0], [0], [1], [0, 0, 1, 1], [], []>} : vector<16x8xbf16>, vector<8x32xbf16>, vector<16x32xf32> -> vector<16x32xf32>
    %6 = arith.truncf %5 : vector<16x32xf32> to vector<16x32xbf16>
    %cst_7 = arith.constant dense<0.000000e+00> : vector<16x32xf32>
    %7 = tpu.matmul %1, %6, %cst_7 {dimension_numbers = #tpu.dot_dimension_numbers<[1], [0], [0], [1], [0, 0, 1, 1], [], []>} : vector<16x16xbf16>, vector<16x32xbf16>, vector<16x32xf32> -> vector<16x32xf32>
    %c0_8 = arith.constant 0 : index
    %c0_9 = arith.constant 0 : index
    %8 = vector.load %arg4[%c0_8, %c0_9] : memref<1x32xf32, #tpu.memory_space<vmem>>, vector<1x32xf32>
    %9 = vector.broadcast %8 : vector<1x32xf32> to vector<16x32xf32>
    %10 = arith.addf %7, %9 : vector<16x32xf32>
    %cst_10 = arith.constant 0.000000e+00 : f32
    %11 = vector.broadcast %cst_10 : f32 to vector<16x32xf32>
    %12 = arith.maximumf %10, %11 : vector<16x32xf32>
    %13 = arith.truncf %12 : vector<16x32xf32> to vector<16x32xbf16>
    %c0_11 = arith.constant 0 : index
    %c0_12 = arith.constant 0 : index
    %14 = vector.load %arg5[%c0_11, %c0_12] : memref<32x32xbf16, #tpu.memory_space<vmem>>, vector<32x32xbf16>
    %cst_13 = arith.constant dense<0.000000e+00> : vector<16x32xf32>
    %15 = tpu.matmul %13, %14, %cst_13 {dimension_numbers = #tpu.dot_dimension_numbers<[1], [0], [0], [1], [0, 0, 1, 1], [], []>} : vector<16x32xbf16>, vector<32x32xbf16>, vector<16x32xf32> -> vector<16x32xf32>
    %16 = arith.truncf %15 : vector<16x32xf32> to vector<16x32xbf16>
    %cst_14 = arith.constant dense<0.000000e+00> : vector<16x32xf32>
    %17 = tpu.matmul %1, %16, %cst_14 {dimension_numbers = #tpu.dot_dimension_numbers<[1], [0], [0], [1], [0, 0, 1, 1], [], []>} : vector<16x16xbf16>, vector<16x32xbf16>, vector<16x32xf32> -> vector<16x32xf32>
    %c0_15 = arith.constant 0 : index
    %c0_16 = arith.constant 0 : index
    %18 = vector.load %arg6[%c0_15, %c0_16] : memref<1x32xf32, #tpu.memory_space<vmem>>, vector<1x32xf32>
    %19 = vector.broadcast %18 : vector<1x32xf32> to vector<16x32xf32>
    %20 = arith.addf %17, %19 : vector<16x32xf32>
    %cst_17 = arith.constant 0.000000e+00 : f32
    %21 = vector.broadcast %cst_17 : f32 to vector<16x32xf32>
    %22 = arith.maximumf %20, %21 : vector<16x32xf32>
    %23 = arith.truncf %22 : vector<16x32xf32> to vector<16x32xbf16>
    %c0_18 = arith.constant 0 : index
    %c0_19 = arith.constant 0 : index
    %24 = vector.load %arg7[%c0_18, %c0_19] : memref<32x128xbf16, #tpu.memory_space<vmem>>, vector<32x128xbf16>
    %cst_20 = arith.constant dense<0.000000e+00> : vector<16x128xf32>
    %25 = tpu.matmul %23, %24, %cst_20 {dimension_numbers = #tpu.dot_dimension_numbers<[1], [0], [0], [1], [0, 0, 1, 1], [], []>} : vector<16x32xbf16>, vector<32x128xbf16>, vector<16x128xf32> -> vector<16x128xf32>
    %c0_21 = arith.constant 0 : index
    %c0_22 = arith.constant 0 : index
    %26 = vector.load %arg8[%c0_21, %c0_22] : memref<1x128xf32, #tpu.memory_space<vmem>>, vector<1x128xf32>
    %27 = vector.broadcast %26 : vector<1x128xf32> to vector<16x128xf32>
    %28 = arith.addf %25, %27 : vector<16x128xf32>
    %29 = arith.truncf %28 : vector<16x128xf32> to vector<16x128xbf16>
    %c0_23 = arith.constant 0 : index
    %c0_24 = arith.constant 0 : index
    %c0_25 = arith.constant 0 : index
    %30 = vector.load %arg9[%c0_23, %c0_24, %c0_25] : memref<1x16x128xbf16, #tpu.memory_space<vmem>>, vector<1x16x128xbf16>
    %31 = vector.shape_cast %30 : vector<1x16x128xbf16> to vector<16x128xbf16>
    %32 = vector.shape_cast %29 : vector<16x128xbf16> to vector<1x16x128xbf16>
    tpu.vector_store %arg9[%c0_23, %c0_24, %c0_25], %32 {strides = array<i32>} : memref<1x16x128xbf16, #tpu.memory_space<vmem>>, vector<1x16x128xbf16>,
    return
  }
  func.func @transform_0(%arg0: i32) -> (i32, i32, i32) {
    %c0_i32 = arith.constant 0 : i32
    %c0_i32_0 = arith.constant 0 : i32
    %c0_i32_1 = arith.constant 0 : i32
    return %arg0, %c0_i32, %c0_i32_0 : i32, i32, i32
  }
  func.func @transform_1(%arg0: i32) -> (i32, i32, i32) {
    %c0_i32 = arith.constant 0 : i32
    %c0_i32_0 = arith.constant 0 : i32
    %c0_i32_1 = arith.constant 0 : i32
    return %arg0, %c0_i32, %c0_i32_0 : i32, i32, i32
  }
  func.func @transform_2(%arg0: i32) -> (i32, i32) {
    %c0_i32 = arith.constant 0 : i32
    %c0_i32_0 = arith.constant 0 : i32
    %c0_i32_1 = arith.constant 0 : i32
    return %c0_i32, %c0_i32_0 : i32, i32
  }
  func.func @transform_3(%arg0: i32) -> (i32, i32) {
    %c0_i32 = arith.constant 0 : i32
    %c0_i32_0 = arith.constant 0 : i32
    %c0_i32_1 = arith.constant 0 : i32
    return %c0_i32, %c0_i32_0 : i32, i32
  }
  func.func @transform_4(%arg0: i32) -> (i32, i32) {
    %c0_i32 = arith.constant 0 : i32
    %c0_i32_0 = arith.constant 0 : i32
    %c0_i32_1 = arith.constant 0 : i32
    return %c0_i32, %c0_i32_0 : i32, i32
  }
  func.func @transform_5(%arg0: i32) -> (i32, i32) {
    %c0_i32 = arith.constant 0 : i32
    %c0_i32_0 = arith.constant 0 : i32
    %c0_i32_1 = arith.constant 0 : i32
    return %c0_i32, %c0_i32_0 : i32, i32
  }
  func.func @transform_6(%arg0: i32) -> (i32, i32) {
    %c0_i32 = arith.constant 0 : i32
    %c0_i32_0 = arith.constant 0 : i32
    %c0_i32_1 = arith.constant 0 : i32
    return %c0_i32, %c0_i32_0 : i32, i32
  }
  func.func @transform_7(%arg0: i32) -> (i32, i32) {
    %c0_i32 = arith.constant 0 : i32
    %c0_i32_0 = arith.constant 0 : i32
    %c0_i32_1 = arith.constant 0 : i32
    return %c0_i32, %c0_i32_0 : i32, i32
  }
  func.func @transform_8(%arg0: i32) -> (i32, i32, i32) {
    %c0_i32 = arith.constant 0 : i32
    %c0_i32_0 = arith.constant 0 : i32
    %c0_i32_1 = arith.constant 0 : i32
    return %arg0, %c0_i32, %c0_i32_0 : i32, i32, i32
  }
}

</mosaic_0001>

<bundles_post_ra>
// kernel: gnn_routing_forward.6
= control target key start
LH: loop header
LB: loop body
LE: loop exit
PB: predicated region body
PF: predicated region fallthrough
CT: control target
= control target key end

     0   :  { %vm59_vm0 = vcmask 1043456   ;;  %vm46_vm1 = vcmask 64512   ;;  %s552_s1 = inlined_call_operand.vmem [shape: bf16[8,128], index: 1, kind: input, shape index: {}]   ;;  %s553_s0 = inlined_call_operand.vmem [shape: bf16[64,8], index: 0, kind: input, shape index: {}]   ;;  %s554_s2 = inlined_call_operand.vmem [shape: bf16[128,128], index: 2, kind: input, shape index: {}]   ;;  %s555_s3 = inlined_call_operand.vmem [shape: bf16[64,128], index: 3, kind: output, shape index: {0}]   ;;  %s556_s4 = inlined_call_operand.vmem [shape: f32[64,128], index: 4, kind: output, shape index: {1}]  }
   0x1   :  { %v25_v0 = vld [vmem:[%s552_s1] sm:$0xf]  ;;  %v437_v3 = vld [vmem:[%s553_s0 + $0x8] sm:$0xff]   ;;  %v438_v4 = vld [vmem:[%s553_s0 + $0x10] sm:$0xff]  }
   0x2   :  { %435 = vmatprep.subr.msk.bf16.mxu0 %vm59_vm0, %v25_v0  ;;  %v61_v1 = vsel %vm59_vm0, %v25_v0, 0  ;;  %v436_v2 = vld [vmem:[%s553_s0] sm:$0xff]   ;;  %v441_v6 = vld [vmem:[%s554_s2 + $0x8] sm:$0xff]   ;;  %v439_v7 = vld [vmem:[%s553_s0 + $0x18] sm:$0xff]  }
   0x3   :  { %386 = vmatpush3.bf16.msra.mxu0 %v61_v1  ;;  %387 = vmatprep.mubr.msk.bf16.mxu0 %vm46_vm1, %v436_v2  ;;  %v440_v5 = vld [vmem:[%s554_s2] sm:$0xff]   ;;  %v442_v8 = vld [vmem:[%s554_s2 + $0x10] sm:$0xff]   ;;  %v443_v9 = vld [vmem:[%s554_s2 + $0x18] sm:$0xff]  }
   0x4   :  { %395 = vmatprep.subr.bf16.mxu0 %v440_v5  ;;  %419 = vmatprep.subr.bf16.mxu1 %v440_v5  ;;  %v444_v10 = vld [vmem:[%s554_s2 + $0x20] sm:$0xff]   ;;  %v445_v11 = vld [vmem:[%s554_s2 + $0x28] sm:$0xff]   ;;  %v446_v12 = vld [vmem:[%s554_s2 + $0x30] sm:$0xff]  }
   0x5   :  { %427 = vmatpush3.bf16.msra.mxu1 %v440_v5  ;;  %v447_v13 = vld [vmem:[%s554_s2 + $0x38] sm:$0xff]  }
   0x6   :  { %388 = vmatmul.mubr.msk.bf16.vlgmr.msra.gmra.mrb[0].mxu0 %vm46_vm1, %v437_v3  ;;  %420 = vmatprep.subr.bf16.mxu1 %v441_v6 }
   0x7   :  { %391 = vmatprep.mubr.msk.bf16.mxu0 %vm46_vm1, %v438_v4  ;;  %396 = vmatpush3.bf16.msra.mxu0 %v440_v5 }
   0x8   :  { %397 = vmatprep.subr.bf16.mxu0 %v441_v6 }
   0x9   :  { %428 = vmatpush3.bf16.msra.mxu1 %v441_v6 }
   0xa   :  { %421 = vmatprep.subr.bf16.mxu1 %v442_v8 }
   0xb   :  { %398 = vmatpush3.bf16.msra.mxu0 %v441_v6 }
   0xc   :  { %399 = vmatprep.subr.bf16.mxu0 %v442_v8 }
   0xd   :  { %429 = vmatpush3.bf16.msra.mxu1 %v442_v8 }
   0xe   :  { %392 = vmatmul.mubr.msk.bf16.gmra.mrb[4].mxu0 %vm46_vm1, %v439_v7  ;;  %422 = vmatprep.subr.bf16.mxu1 %v443_v9 }
   0xf   :  { %400 = vmatpush3.bf16.msra.mxu0 %v442_v8 }
  0x10   :  { %401 = vmatprep.subr.bf16.mxu0 %v443_v9 }
  0x11   :  { %430 = vmatpush3.bf16.msra.mxu1 %v443_v9 }
  0x12   :  { %423 = vmatprep.subr.bf16.mxu1 %v444_v10 }
  0x13   :  { %402 = vmatpush3.bf16.msra.mxu0 %v443_v9 }
  0x14   :  { %403 = vmatprep.subr.bf16.mxu0 %v444_v10 }
  0x15   :  { %431 = vmatpush3.bf16.msra.mxu1 %v444_v10 }
  0x16   :  { %424 = vmatprep.subr.bf16.mxu1 %v445_v11 }
  0x17   :  { %404 = vmatpush3.bf16.msra.mxu0 %v444_v10 }
  0x18   :  { %405 = vmatprep.subr.bf16.mxu0 %v445_v11 }
  0x19   :  { %432 = vmatpush3.bf16.msra.mxu1 %v445_v11 }
  0x1a   :  { %425 = vmatprep.subr.bf16.mxu1 %v446_v12 }
  0x1b   :  { %406 = vmatpush3.bf16.msra.mxu0 %v445_v11 }
  0x1c   :  { %407 = vmatprep.subr.bf16.mxu0 %v446_v12 }
  0x1d   :  { %433 = vmatpush3.bf16.msra.mxu1 %v446_v12 }
  0x1e   :  { %426 = vmatprep.subr.bf16.mxu1 %v447_v13 }
  0x1f   :  { %408 = vmatpush3.bf16.msra.mxu0 %v446_v12 }
  0x20   :  { %409 = vmatprep.subr.bf16.mxu0 %v447_v13 }
  0x21   :  { %434 = vmatpush3.bf16.msra.mxu1 %v447_v13 }
  0x23   :  { %410 = vmatpush3.bf16.msra.mxu0 %v447_v13 }
  0xd9   :  { %v389_v14 = vpop.f32.mrb[0].mxu0 }
  0xda   :  { %v97_v15 = vpop.f32.mrb[1].mxu0 }
  0xdb   :  { %v390_v16 = vpop.f32.mrb[2].mxu0 }
  0xdc   :  { %v129_v17 = vpack.c.bf16 %v390_v16, %v389_v14  ;;  %v100_v18 = vpop.f32.mrb[3].mxu0 }
  0xdd   :  { %v128_v19 = vpack.c.bf16 %v100_v18, %v97_v15 }
  0xde   :  { %365 = vst [vmem:[%s555_s3 + $0x8] sm:$0xff] %v129_v17  }
  0xdf   :  { %349 = vst [vmem:[%s555_s3] sm:$0xff] %v128_v19   ;;  %411 = vmatprep.mubr.bf16.mxu0 %v128_v19 }
  0xe0   :  { %412 = vmatmul.mubr.bf16.vlgmr.msra.gmra.mrb[8].mxu0 %v129_v17 }
  0xe1   :  { %v393_v20 = vpop.f32.mrb[4].mxu0 }
  0xe2   :  { %v113_v21 = vpop.f32.mrb[5].mxu0 }
  0xe3   :  { %v394_v22 = vpop.f32.mrb[6].mxu0 }
  0xe4   :  { %v131_v23 = vpack.c.bf16 %v394_v22, %v393_v20  ;;  %v116_v24 = vpop.f32.mrb[7].mxu0 }
  0xe5   :  { %v130_v25 = vpack.c.bf16 %v116_v24, %v113_v21 }
  0xe6   :  { %367 = vst [vmem:[%s555_s3 + $0x18] sm:$0xff] %v131_v23  }
  0xe7   :  { %366 = vst [vmem:[%s555_s3 + $0x10] sm:$0xff] %v130_v25   ;;  %415 = vmatprep.mubr.bf16.mxu1 %v130_v25 }
  0xe8   :  { %416 = vmatmul.mubr.bf16.vlgmr.msra.gmra.mrb[0].mxu1 %v131_v23 }
 0x1b3   :  { %v413_v26 = vpop.f32.mrb[8].mxu0 }
 0x1b4   :  { %299 = vst [vmem:[%s556_s4 + $0x10] sm:$0xff] %v413_v26  ;;  %v266_v27 = vpop.f32.mrb[9].mxu0 }
 0x1b5   :  { %297 = vst [vmem:[%s556_s4] sm:$0xff] %v266_v27  ;;  %v414_v28 = vpop.f32.mrb[10].mxu0 }
 0x1b6   :  { %300 = vst [vmem:[%s556_s4 + $0x18] sm:$0xff] %v414_v28  ;;  %v269_v29 = vpop.f32.mrb[11].mxu0 }
 0x1b7   :  { %298 = vst [vmem:[%s556_s4 + $0x8] sm:$0xff] %v269_v29 }
 0x1bb   :  { %v417_v30 = vpop.f32.mrb[0].mxu1 }
 0x1bc   :  { %303 = vst [vmem:[%s556_s4 + $0x30] sm:$0xff] %v417_v30  ;;  %v282_v31 = vpop.f32.mrb[1].mxu1 }
 0x1bd   :  { %301 = vst [vmem:[%s556_s4 + $0x20] sm:$0xff] %v282_v31  ;;  %v418_v32 = vpop.f32.mrb[2].mxu1 }
 0x1be   :  { %304 = vst [vmem:[%s556_s4 + $0x38] sm:$0xff] %v418_v32  ;;  %v285_v33 = vpop.f32.mrb[3].mxu1 }
 0x1bf   :  { %302 = vst [vmem:[%s556_s4 + $0x28] sm:$0xff] %v285_v33 }

// kernel: gnn_routing_forward.8
= control target key start
LH: loop header
LB: loop body
LE: loop exit
PB: predicated region body
PF: predicated region fallthrough
CT: control target
= control target key end

     0   :  { %s635_s1 = inlined_call_operand.vmem [shape: bf16[128,128], index: 1, kind: input, shape index: {}]   ;;  %s636_s0 = inlined_call_operand.vmem [shape: bf16[64,128], index: 0, kind: input, shape index: {}]   ;;  %s637_s2 = inlined_call_operand.vmem [shape: bf16[128,128], index: 2, kind: input, shape index: {}]   ;;  %s638_s3 = inlined_call_operand.vmem [shape: bf16[64,128], index: 3, kind: output, shape index: {0}]   ;;  %s639_s4 = inlined_call_operand.vmem [shape: f32[64,128], index: 4, kind: output, shape index: {1}]  }
   0x1   :  { %v494_v0 = vld [vmem:[%s635_s1] sm:$0xff]   ;;  %v495_v1 = vld [vmem:[%s635_s1 + $0x8] sm:$0xff]   ;;  %v496_v2 = vld [vmem:[%s635_s1 + $0x10] sm:$0xff]  }
   0x2   :  { %446 = vmatprep.subr.bf16.mxu0 %v494_v0  ;;  %v497_v3 = vld [vmem:[%s635_s1 + $0x18] sm:$0xff]   ;;  %v502_v4 = vld [vmem:[%s636_s0] sm:$0xff]   ;;  %v507_v7 = vld [vmem:[%s637_s2 + $0x8] sm:$0xff]  }
   0x3   :  { %447 = vmatpush3.bf16.msra.mxu0 %v494_v0  ;;  %462 = vmatprep.mubr.bf16.mxu0 %v502_v4  ;;  %v498_v5 = vld [vmem:[%s635_s1 + $0x20] sm:$0xff]   ;;  %v499_v8 = vld [vmem:[%s635_s1 + $0x28] sm:$0xff]   ;;  %v508_v9 = vld [vmem:[%s637_s2 + $0x10] sm:$0xff]  }
   0x4   :  { %448 = vmatprep.subr.bf16.mxu0 %v495_v1  ;;  %v506_v6 = vld [vmem:[%s637_s2] sm:$0xff]   ;;  %v500_v10 = vld [vmem:[%s635_s1 + $0x30] sm:$0xff]   ;;  %v509_v11 = vld [vmem:[%s637_s2 + $0x18] sm:$0xff]  }
   0x5   :  { %470 = vmatprep.subr.bf16.mxu1 %v506_v6  ;;  %v501_v12 = vld [vmem:[%s635_s1 + $0x38] sm:$0xff]   ;;  %v510_v13 = vld [vmem:[%s637_s2 + $0x20] sm:$0xff]   ;;  %v511_v14 = vld [vmem:[%s637_s2 + $0x28] sm:$0xff]  }
   0x6   :  { %471 = vmatpush3.bf16.msra.mxu1 %v506_v6  ;;  %v503_v15 = vld [vmem:[%s636_s0 + $0x8] sm:$0xff]   ;;  %v504_v16 = vld [vmem:[%s636_s0 + $0x10] sm:$0xff]   ;;  %v505_v18 = vld [vmem:[%s636_s0 + $0x18] sm:$0xff]  }
   0x7   :  { %449 = vmatpush3.bf16.msra.mxu0 %v495_v1  ;;  %472 = vmatprep.subr.bf16.mxu1 %v507_v7  ;;  %v512_v17 = vld [vmem:[%s637_s2 + $0x30] sm:$0xff]   ;;  %v513_v19 = vld [vmem:[%s637_s2 + $0x38] sm:$0xff]  }
   0x8   :  { %450 = vmatprep.subr.bf16.mxu0 %v496_v2 }
   0xa   :  { %473 = vmatpush3.bf16.msra.mxu1 %v507_v7 }
   0xb   :  { %451 = vmatpush3.bf16.msra.mxu0 %v496_v2  ;;  %474 = vmatprep.subr.bf16.mxu1 %v508_v9 }
   0xc   :  { %452 = vmatprep.subr.bf16.mxu0 %v497_v3 }
   0xe   :  { %475 = vmatpush3.bf16.msra.mxu1 %v508_v9 }
   0xf   :  { %453 = vmatpush3.bf16.msra.mxu0 %v497_v3  ;;  %476 = vmatprep.subr.bf16.mxu1 %v509_v11 }
  0x10   :  { %454 = vmatprep.subr.bf16.mxu0 %v498_v5 }
  0x12   :  { %477 = vmatpush3.bf16.msra.mxu1 %v509_v11 }
  0x13   :  { %455 = vmatpush3.bf16.msra.mxu0 %v498_v5  ;;  %478 = vmatprep.subr.bf16.mxu1 %v510_v13 }
  0x14   :  { %456 = vmatprep.subr.bf16.mxu0 %v499_v8 }
  0x16   :  { %479 = vmatpush3.bf16.msra.mxu1 %v510_v13 }
  0x17   :  { %457 = vmatpush3.bf16.msra.mxu0 %v499_v8  ;;  %480 = vmatprep.subr.bf16.mxu1 %v511_v14 }
  0x18   :  { %458 = vmatprep.subr.bf16.mxu0 %v500_v10 }
  0x1a   :  { %481 = vmatpush3.bf16.msra.mxu1 %v511_v14 }
  0x1b   :  { %459 = vmatpush3.bf16.msra.mxu0 %v500_v10  ;;  %482 = vmatprep.subr.bf16.mxu1 %v512_v17 }
  0x1c   :  { %460 = vmatprep.subr.bf16.mxu0 %v501_v12 }
  0x1e   :  { %483 = vmatpush3.bf16.msra.mxu1 %v512_v17 }
  0x1f   :  { %461 = vmatpush3.bf16.msra.mxu0 %v501_v12  ;;  %484 = vmatprep.subr.bf16.mxu1 %v513_v19 }
  0x22   :  { %463 = vmatmul.mubr.bf16.vlgmr.msra.gmra.mrb[0].mxu0 %v503_v15  ;;  %485 = vmatpush3.bf16.msra.mxu1 %v513_v19 }
  0x23   :  { %466 = vmatprep.mubr.bf16.mxu0 %v504_v16 }
  0x2a   :  { %467 = vmatmul.mubr.bf16.gmra.mrb[4].mxu0 %v505_v18 }
  0xf5   :  { %v464_v20 = vpop.f32.mrb[0].mxu0 }
  0xf6   :  { %v147_v21 = vpop.f32.mrb[1].mxu0 }
  0xf7   :  { %v465_v22 = vpop.f32.mrb[2].mxu0 }
  0xf8   :  { %v179_v23 = vpack.c.bf16 %v465_v22, %v464_v20  ;;  %v150_v24 = vpop.f32.mrb[3].mxu0 }
  0xf9   :  { %v178_v25 = vpack.c.bf16 %v150_v24, %v147_v21 }
  0xfa   :  { %419 = vst [vmem:[%s638_s3 + $0x8] sm:$0xff] %v179_v23  }
  0xfb   :  { %403 = vst [vmem:[%s638_s3] sm:$0xff] %v178_v25   ;;  %486 = vmatprep.mubr.bf16.mxu1 %v178_v25 }
  0xfc   :  { %487 = vmatmul.mubr.bf16.vlgmr.msra.gmra.mrb[0].mxu1 %v179_v23 }
  0xfd   :  { %v468_v26 = vpop.f32.mrb[4].mxu0 }
  0xfe   :  { %v163_v27 = vpop.f32.mrb[5].mxu0 }
  0xff   :  { %v469_v28 = vpop.f32.mrb[6].mxu0 }
 0x100   :  { %v181_v29 = vpack.c.bf16 %v469_v28, %v468_v26  ;;  %v166_v30 = vpop.f32.mrb[7].mxu0 }
 0x101   :  { %v180_v31 = vpack.c.bf16 %v166_v30, %v163_v27 }
 0x102   :  { %421 = vst [vmem:[%s638_s3 + $0x18] sm:$0xff] %v181_v29  }
 0x103   :  { %420 = vst [vmem:[%s638_s3 + $0x10] sm:$0xff] %v180_v31   ;;  %490 = vmatprep.mubr.bf16.mxu1 %v180_v31 }
 0x104   :  { %491 = vmatmul.mubr.bf16.gmra.mrb[4].mxu1 %v181_v29 }
 0x1cf   :  { %v488_v32 = vpop.f32.mrb[0].mxu1 }
 0x1d0   :  { %349 = vst [vmem:[%s639_s4 + $0x10] sm:$0xff] %v488_v32  ;;  %v316_v33 = vpop.f32.mrb[1].mxu1 }
 0x1d1   :  { %347 = vst [vmem:[%s639_s4] sm:$0xff] %v316_v33  ;;  %v489_v34 = vpop.f32.mrb[2].mxu1 }
 0x1d2   :  { %350 = vst [vmem:[%s639_s4 + $0x18] sm:$0xff] %v489_v34  ;;  %v319_v35 = vpop.f32.mrb[3].mxu1 }
 0x1d3   :  { %348 = vst [vmem:[%s639_s4 + $0x8] sm:$0xff] %v319_v35 }
 0x1d7   :  { %v492_v36 = vpop.f32.mrb[4].mxu1 }
 0x1d8   :  { %353 = vst [vmem:[%s639_s4 + $0x30] sm:$0xff] %v492_v36  ;;  %v332_v37 = vpop.f32.mrb[5].mxu1 }
 0x1d9   :  { %351 = vst [vmem:[%s639_s4 + $0x20] sm:$0xff] %v332_v37  ;;  %v493_v38 = vpop.f32.mrb[6].mxu1 }
 0x1da   :  { %354 = vst [vmem:[%s639_s4 + $0x38] sm:$0xff] %v493_v38  ;;  %v335_v39 = vpop.f32.mrb[7].mxu1 }
 0x1db   :  { %352 = vst [vmem:[%s639_s4 + $0x28] sm:$0xff] %v335_v39 }

// kernel: gnn_routing_forward.9
= control target key start
LH: loop header
LB: loop body
LE: loop exit
PB: predicated region body
PF: predicated region fallthrough
CT: control target
= control target key end

     0   :  { %v775_v0 = vmov 0   ;;  %vm25_vm0 = vcmask 7168   ;;  %v776_v9 = vmov -1e+30   ;;  %vm179_vm5 = vcmask 523264   ;;  %s1116_s1 = inlined_call_operand.vmem [shape: f32[64,1], index: 1, kind: input, shape index: {}]   ;;  %s1117_s3 = inlined_call_operand.vmem [shape: s8[64,64], index: 3, kind: input, shape index: {}]   ;;  %s1118_s0 = inlined_call_operand.vmem [shape: f32[1,64], index: 0, kind: input, shape index: {}]   ;;  %s1119_s2 = inlined_call_operand.vmem [shape: bf16[64,128], index: 2, kind: input, shape index: {}]   ;;  %s1120_s4 = inlined_call_operand.vmem [shape: f32[1,128], index: 4, kind: input, shape index: {}]   ;;  %s1121_s5 = inlined_call_operand.vmem [shape: f32[64,128], index: 5, kind: output, shape index: {}]  }
   0x1   :  { %722 = vset.pattern.permute.xlu1 %v775_v0  ;;  %721 = vset.pattern.permute.xlu0 %v775_v0  ;;  %v89_v1 = vld [vmem:[%s1116_s1 + $0x20] sm:$0xff]  ;;  %v90_v3 = vld [vmem:[%s1116_s1 + $0x28] sm:$0xff]  ;;  %v88_v5 = vld [vmem:[%s1116_s1 + $0x18] sm:$0xff]  ;;  %26 = vst.msk [vmem:[#allocation2] sm:$0xff] %vm25_vm0, %v776_v9 }
   0x2   :  { %v85_v2 = vld [vmem:[%s1116_s1] sm:$0xff]  ;;  %115 = vperm.xlu1 %722, %v89_v1   ;;  %v86_v4 = vld [vmem:[%s1116_s1 + $0x8] sm:$0xff]  ;;  %v87_v6 = vld [vmem:[%s1116_s1 + $0x10] sm:$0xff]  ;;  %27 = vst.msk [vmem:[#allocation2 + $0x8] sm:$0xff] %vm25_vm0, %v776_v9 }
   0x3   :  { %95 = vperm.xlu0 %721, %v85_v2   ;;  %v92_v7 = vld [vmem:[%s1116_s1 + $0x38] sm:$0xff]  ;;  %v91_v8 = vld [vmem:[%s1116_s1 + $0x30] sm:$0xff]  ;;  %28 = vst.msk [vmem:[#allocation2 + $0x10] sm:$0xff] %vm25_vm0, %v776_v9  ;;  %29 = vst.msk [vmem:[#allocation2 + $0x18] sm:$0xff] %vm25_vm0, %v776_v9 }
   0x4   :  { %30 = vst.msk [vmem:[#allocation2 + $0x20] sm:$0xff] %vm25_vm0, %v776_v9  ;;  %31 = vst.msk [vmem:[#allocation2 + $0x28] sm:$0xff] %vm25_vm0, %v776_v9  ;;  %v50_v10 = vld [vmem:[%s1117_s3] sm:$0xff]  ;;  %v846_v11 = vld [vmem:[%s1117_s3 + $0x8] sm:$0xff] }
   0x5   :  { %32 = vst.msk [vmem:[#allocation2 + $0x30] sm:$0xff] %vm25_vm0, %v776_v9  ;;  %33 = vst.msk [vmem:[#allocation2 + $0x38] sm:$0xff] %vm25_vm0, %v776_v9  ;;  %v52_v12 = vunpack.c.0.s8 %v50_v10  ;;  %v56_v13 = vunpack.c.0.s8 %v846_v11  ;;  %v53_v14 = vunpack.c.1.s8 %v50_v10  ;;  %v676_v15 = vld [vmem:[%s1118_s0] ss:$0 sm:$0xff]  ;;  %v57_v18 = vunpack.c.1.s8 %v846_v11 }
   0x6   :  { %120 = vperm.xlu1 %722, %v90_v3   ;;  %v54_v22 = vunpack.c.2.s8 %v50_v10  ;;  %v55_v31 = vunpack.c.3.s8 %v50_v10  ;;  %v58_v38 = vunpack.c.2.s8 %v846_v11  ;;  %v59_v45 = vunpack.c.3.s8 %v846_v11 }
   0x7   :  { %100 = vperm.xlu0 %721, %v86_v4   ;;  %v852_v16 = vcvt.s32.f32 %v52_v12  ;;  %v854_v17 = vcvt.s32.f32 %v56_v13  ;;  %v857_v21 = vcvt.s32.f32 %v53_v14  ;;  %v861_v25 = vcvt.s32.f32 %v57_v18 }
   0x8   :  { %v864_v30 = vcvt.s32.f32 %v54_v22  ;;  %v879_v44 = vcvt.s32.f32 %v55_v31  ;;  %v892_v53 = vcvt.s32.f32 %v58_v38  ;;  %v897_v59 = vcvt.s32.f32 %v59_v45  ;;  %v931_v14 = vld [vmem:[#allocation2] sm:$0xff] }
   0x9   :  { %vm68_vm1 = vcmp.gt.f32.partialorder %v852_v16, 0.0  ;;  %vm72_vm2 = vcmp.gt.f32.partialorder %v854_v17, 0.0  ;;  %vm69_vm6 = vcmp.gt.f32.partialorder %v857_v21, 0.0  ;;  %vm73_vm7 = vcmp.gt.f32.partialorder %v861_v25, 0.0 }
   0xa   :  { %110 = vperm.xlu1 %722, %v88_v5   ;;  %vm70_vm9 = vcmp.gt.f32.partialorder %v864_v30, 0.0  ;;  %vm71_vm12 = vcmp.gt.f32.partialorder %v879_v44, 0.0  ;;  %vm74_vm14 = vcmp.gt.f32.partialorder %v892_v53, 0.0  ;;  %v777_v13 = vmov 0.0  }
   0xb   :  { %105 = vperm.xlu0 %721, %v87_v6   ;;  %34 = vst.msk [vmem:[#allocation3] sm:$0xff] %vm25_vm0, %v777_v13  ;;  %35 = vst.msk [vmem:[#allocation3 + $0x8] sm:$0xff] %vm25_vm0, %v777_v13 }
   0xc   :  { %36 = vst.msk [vmem:[#allocation3 + $0x10] sm:$0xff] %vm25_vm0, %v777_v13  ;;  %37 = vst.msk [vmem:[#allocation3 + $0x18] sm:$0xff] %vm25_vm0, %v777_v13 }
   0xd   :  { %38 = vst.msk [vmem:[#allocation3 + $0x20] sm:$0xff] %vm25_vm0, %v777_v13  ;;  %39 = vst.msk [vmem:[#allocation3 + $0x28] sm:$0xff] %vm25_vm0, %v777_v13 }
   0xe   :  { %130 = vperm.xlu1 %722, %v92_v7   ;;  %40 = vst.msk [vmem:[#allocation3 + $0x30] sm:$0xff] %vm25_vm0, %v777_v13  ;;  %41 = vst.msk [vmem:[#allocation3 + $0x38] sm:$0xff] %vm25_vm0, %v777_v13 }
   0xf   :  { %125 = vperm.xlu0 %721, %v91_v8  }
  0x81   :  { %v116_v19 = vpop.permute.xlu1 %115 }
  0x82   :  { %v96_v20 = vpop.permute.xlu0 %95  ;;  %v143_v23 = vadd.f32 %v676_v15, %v116_v19  ;;  %v936_v19 = vld [vmem:[#allocation2 + $0x8] sm:$0xff] }
  0x83   :  { %v139_v24 = vadd.f32 %v676_v15, %v96_v20  ;;  %v938_v20 = vld [vmem:[#allocation2 + $0x20] sm:$0xff] }
  0x84   :  { %v159_v26 = vmul.f32 0.2, %v143_v23  ;;  %vm151_vm4 = vcmp.gt.f32.partialorder %v143_v23, 0.0 }
  0x85   :  { %v155_v27 = vmul.f32 0.2, %v139_v24  ;;  %vm147_vm3 = vcmp.gt.f32.partialorder %v139_v24, 0.0  ;;  %v121_v28 = vpop.permute.xlu1 %120 }
  0x86   :  { %v101_v29 = vpop.permute.xlu0 %100  ;;  %v144_v32 = vadd.f32 %v676_v15, %v121_v28  ;;  %v167_v35 = vsel %vm151_vm4, %v143_v23, %v159_v26  ;;  %v951_v28 = vld [vmem:[#allocation2 + $0x10] sm:$0xff] }
  0x87   :  { %v140_v33 = vadd.f32 %v676_v15, %v101_v29  ;;  %v163_v34 = vsel %vm147_vm3, %v139_v24, %v155_v27  ;;  %v872_v37 = vsel %vm72_vm2, %v167_v35, -1e+30  ;;  %vm75_vm2 = vcmp.gt.f32.partialorder %v897_v59, 0.0 }
  0x88   :  { %v868_v36 = vsel %vm68_vm1, %v163_v34, -1e+30  ;;  %v160_v39 = vmul.f32 0.2, %v144_v32  ;;  %vm152_vm10 = vcmp.gt.f32.partialorder %v144_v32, 0.0  ;;  %v192_v51 = vsel %vm179_vm5, %v872_v37, -inf }
  0x89   :  { %v156_v40 = vmul.f32 0.2, %v140_v33  ;;  %v180_v41 = vsel %vm179_vm5, %v868_v36, -inf  ;;  %vm148_vm8 = vcmp.gt.f32.partialorder %v140_v33, 0.0  ;;  %v111_v42 = vpop.permute.xlu1 %110 }
  0x8a   :  { %v106_v43 = vpop.permute.xlu0 %105  ;;  %181 = vmax.xlane.f32.xlu0 %v180_v41  ;;  %v142_v46 = vadd.f32 %v676_v15, %v111_v42  ;;  %v168_v49 = vsel %vm152_vm10, %v144_v32, %v160_v39  ;;  %v963_v32 = vld [vmem:[#allocation2 + $0x28] sm:$0xff]  ;;  %v971_v39 = vld [vmem:[#allocation2 + $0x30] sm:$0xff] }
  0x8b   :  { %v141_v47 = vadd.f32 %v676_v15, %v106_v43  ;;  %v164_v48 = vsel %vm148_vm8, %v140_v33, %v156_v40  ;;  %v890_v52 = vsel %vm73_vm7, %v168_v49, -1e+30  ;;  %v973_v40 = vld [vmem:[#allocation2 + $0x18] sm:$0xff] }
  0x8c   :  { %v884_v50 = vsel %vm69_vm6, %v164_v48, -1e+30  ;;  %v158_v54 = vmul.f32 0.2, %v142_v46  ;;  %vm150_vm13 = vcmp.gt.f32.partialorder %v142_v46, 0.0  ;;  %v195_v1 = vsel %vm179_vm5, %v890_v52, -inf }
  0x8d   :  { %v157_v55 = vmul.f32 0.2, %v141_v47  ;;  %v183_v56 = vsel %vm179_vm5, %v884_v50, -inf  ;;  %vm149_vm11 = vcmp.gt.f32.partialorder %v141_v47, 0.0  ;;  %v131_v57 = vpop.permute.xlu1 %130  ;;  %v991_v48 = vld [vmem:[#allocation2 + $0x38] sm:$0xff] }
  0x8e   :  { %v126_v58 = vpop.permute.xlu0 %125  ;;  %184 = vmax.xlane.f32.xlu1 %v183_v56  ;;  %193 = vmax.xlane.f32.xlu0 %v192_v51  ;;  %v146_v60 = vadd.f32 %v676_v15, %v131_v57  ;;  %v166_v63 = vsel %vm150_vm13, %v142_v46, %v158_v54  ;;  %v723_v57 = vld [vmem:[%s1119_s2] sm:$0xff]  }
  0x8f   :  { %v145_v61 = vadd.f32 %v676_v15, %v126_v58  ;;  %v165_v62 = vsel %vm149_vm11, %v141_v47, %v157_v55  ;;  %v910_v5 = vsel %vm71_vm12, %v166_v63, -1e+30  ;;  %694 = vmatprep.subr.bf16.mxu0 %v723_v57  ;;  %710 = vmatprep.subr.bf16.mxu1 %v723_v57  ;;  %v724_v58 = vld [vmem:[%s1119_s2 + $0x8] sm:$0xff]  }
  0x90   :  { %v901_v0 = vsel %vm70_vm9, %v165_v62, -1e+30  ;;  %v162_v2 = vmul.f32 0.2, %v146_v60  ;;  %vm154_vm1 = vcmp.gt.f32.partialorder %v146_v60, 0.0  ;;  %v189_v10 = vsel %vm179_vm5, %v910_v5, -inf  ;;  %695 = vmatpush3.bf16.msra.mxu0 %v723_v57  ;;  %714 = vmatpush3.bf16.msra.mxu1 %v723_v57 }
  0x91   :  { %v161_v3 = vmul.f32 0.2, %v145_v61  ;;  %v186_v4 = vsel %vm179_vm5, %v901_v0, -inf  ;;  %vm153_vm15 = vcmp.gt.f32.partialorder %v145_v61, 0.0  ;;  %696 = vmatprep.subr.bf16.mxu0 %v724_v58  ;;  %711 = vmatprep.subr.bf16.mxu1 %v724_v58 }
  0x92   :  { %187 = vmax.xlane.f32.xlu1 %v186_v4  ;;  %196 = vmax.xlane.f32.xlu0 %v195_v1  ;;  %v170_v7 = vsel %vm154_vm1, %v146_v60, %v162_v2  ;;  %v725_v60 = vld [vmem:[%s1119_s2 + $0x10] sm:$0xff]  }
  0x93   :  { %v169_v6 = vsel %vm153_vm15, %v145_v61, %v161_v3  ;;  %v919_v11 = vsel %vm75_vm2, %v170_v7, -1e+30  ;;  %v726_v61 = vld [vmem:[%s1119_s2 + $0x18] sm:$0xff]  }
  0x94   :  { %v913_v8 = vsel %vm74_vm14, %v169_v6, -1e+30  ;;  %v201_v12 = vsel %vm179_vm5, %v919_v11, -inf  ;;  %697 = vmatpush3.bf16.msra.mxu0 %v724_v58  ;;  %715 = vmatpush3.bf16.msra.mxu1 %v724_v58 }
  0x95   :  { %v198_v9 = vsel %vm179_vm5, %v913_v8, -inf  ;;  %698 = vmatprep.subr.bf16.mxu0 %v725_v60  ;;  %712 = vmatprep.subr.bf16.mxu1 %v725_v60 }
  0x96   :  { %199 = vmax.xlane.f32.xlu1 %v198_v9  ;;  %190 = vmax.xlane.f32.xlu0 %v189_v10 }
  0x98   :  { %699 = vmatpush3.bf16.msra.mxu0 %v725_v60  ;;  %716 = vmatpush3.bf16.msra.mxu1 %v725_v60 }
  0x99   :  { %700 = vmatprep.subr.bf16.mxu0 %v726_v61  ;;  %713 = vmatprep.subr.bf16.mxu1 %v726_v61 }
  0x9a   :  { %202 = vmax.xlane.f32.xlu0 %v201_v12 }
  0x9c   :  { %701 = vmatpush3.bf16.msra.mxu0 %v726_v61  ;;  %717 = vmatpush3.bf16.msra.mxu1 %v726_v61 }
 0x117   :  { %v182_v15 = vpop.xlane.xlu0 %181 }
 0x118   :  { %v934_v18 = vmax.f32 %v931_v14, %v182_v15 }
 0x11a   :  { %v220_v22 = vsub.f32 %v931_v14, %v934_v18  ;;  %566 = vst.msk [vmem:[#allocation2] sm:$0xff] %vm25_vm0, %v934_v18  ;;  %254 = vperm.xlu1 %722, %v934_v18  }
 0x11b   :  { %v185_v23 = vpop.xlane.xlu1 %184  ;;  %v194_v24 = vpop.xlane.xlu0 %193 }
 0x11c   :  { %v946_v26 = vmax.f32 %v936_v19, %v185_v23  ;;  %v949_v27 = vmax.f32 %v938_v20, %v194_v24 }
 0x11e   :  { %v221_v29 = vsub.f32 %v936_v19, %v946_v26  ;;  %567 = vst.msk [vmem:[#allocation2 + $0x8] sm:$0xff] %vm25_vm0, %v946_v26  ;;  %v224_v31 = vsub.f32 %v938_v20, %v949_v27  ;;  %570 = vst.msk [vmem:[#allocation2 + $0x20] sm:$0xff] %vm25_vm0, %v949_v27  ;;  %259 = vperm.xlu0 %721, %v946_v26   ;;  %274 = vperm.xlu1 %722, %v949_v27  }
 0x11f   :  { %v188_v33 = vpop.xlane.xlu1 %187  ;;  %v197_v34 = vpop.xlane.xlu0 %196 }
 0x120   :  { %v966_v35 = vmax.f32 %v951_v28, %v188_v33  ;;  %v969_v38 = vmax.f32 %v963_v32, %v197_v34 }
 0x122   :  { %v222_v41 = vsub.f32 %v951_v28, %v966_v35  ;;  %568 = vst.msk [vmem:[#allocation2 + $0x10] sm:$0xff] %vm25_vm0, %v966_v35  ;;  %264 = vperm.xlu0 %721, %v966_v35   ;;  %v225_v42 = vsub.f32 %v963_v32, %v969_v38  ;;  %571 = vst.msk [vmem:[#allocation2 + $0x28] sm:$0xff] %vm25_vm0, %v969_v38  ;;  %279 = vperm.xlu1 %722, %v969_v38  }
 0x123   :  { %v200_v43 = vpop.xlane.xlu1 %199  ;;  %v191_v45 = vpop.xlane.xlu0 %190 }
 0x124   :  { %v986_v46 = vmax.f32 %v971_v39, %v200_v43  ;;  %v989_v47 = vmax.f32 %v973_v40, %v191_v45  ;;  %v230_v19 = vmax.f32 %v222_v41, -60.0  ;;  %v233_v35 = vmax.f32 %v225_v42, -60.0  ;;  %v336_v42 = vld [vmem:[#allocation3 + $0x20] sm:$0xff] }
 0x126   :  { %v226_v49 = vsub.f32 %v971_v39, %v986_v46  ;;  %572 = vst.msk [vmem:[#allocation2 + $0x30] sm:$0xff] %vm25_vm0, %v986_v46  ;;  %v223_v51 = vsub.f32 %v973_v40, %v989_v47  ;;  %569 = vst.msk [vmem:[#allocation2 + $0x18] sm:$0xff] %vm25_vm0, %v989_v47  ;;  %284 = vperm.xlu0 %721, %v986_v46   ;;  %269 = vperm.xlu1 %722, %v989_v47   ;;  %v240_v26 = vmul.f32 1.442695, %v230_v19 }
 0x127   :  { %v203_v54 = vpop.xlane.xlu0 %202  ;;  %v232_v47 = vmax.f32 %v224_v31, -60.0 }
 0x128   :  { %v1004_v55 = vmax.f32 %v991_v48, %v203_v54  ;;  %v234_v28 = vmax.f32 %v226_v49, -60.0  ;;  %v334_v49 = vld [vmem:[#allocation3 + $0x10] sm:$0xff] }
 0x12a   :  { %v227_v56 = vsub.f32 %v991_v48, %v1004_v55  ;;  %573 = vst.msk [vmem:[#allocation2 + $0x38] sm:$0xff] %vm25_vm0, %v1004_v55  ;;  %289 = vperm.xlu1 %722, %v1004_v55   ;;  %v248_v41 = vmul.f32 1.442695, %v234_v28 }
 0x199   :  { %v255_v62 = vpop.permute.xlu1 %254 }
 0x19a   :  { %v292_v63 = vsub.f32 %v868_v36, %v255_v62 }
 0x19c   :  { %v300_v1 = vmax.f32 %v292_v63, -60.0 }
 0x19d   :  { %v275_v2 = vpop.permute.xlu1 %274  ;;  %v260_v3 = vpop.permute.xlu0 %259 }
 0x19e   :  { %v308_v4 = vmul.f32 1.442695, %v300_v1  ;;  %v296_v6 = vsub.f32 %v872_v37, %v275_v2  ;;  %v293_v7 = vsub.f32 %v884_v50, %v260_v3 }
 0x1a0   :  { %727 = vpow2.f32 %v308_v4  ;;  %v304_v9 = vmax.f32 %v296_v6, -60.0  ;;  %v301_v10 = vmax.f32 %v293_v7, -60.0 }
 0x1a1   :  { %v265_v12 = vpop.permute.xlu0 %264  ;;  %v280_v23 = vpop.permute.xlu1 %279 }
 0x1a2   :  { %v316_v13 = vmul.f32 1.442695, %v304_v9  ;;  %v310_v15 = vmul.f32 1.442695, %v301_v10  ;;  %v294_v24 = vsub.f32 %v901_v0, %v265_v12  ;;  %v297_v33 = vsub.f32 %v890_v52, %v280_v23 }
 0x1a4   :  { %729 = vpow2.f32 %v316_v13  ;;  %v302_v36 = vmax.f32 %v294_v24, -60.0  ;;  %v305_v34 = vmax.f32 %v297_v33, -60.0 }
 0x1a5   :  { %731 = vpow2.f32 %v310_v15  ;;  %v285_v43 = vpop.permute.xlu0 %284  ;;  %v270_v37 = vpop.permute.xlu1 %269 }
 0x1a6   :  { %v312_v45 = vmul.f32 1.442695, %v302_v36  ;;  %v298_v50 = vsub.f32 %v913_v8, %v285_v43  ;;  %v318_v54 = vmul.f32 1.442695, %v305_v34  ;;  %v295_v57 = vsub.f32 %v910_v5, %v270_v37 }
 0x1a8   :  { %733 = vpow2.f32 %v312_v45  ;;  %v306_v58 = vmax.f32 %v298_v50, -60.0  ;;  %v303_v60 = vmax.f32 %v295_v57, -60.0 }
 0x1a9   :  { %735 = vpow2.f32 %v318_v54  ;;  %v290_v62 = vpop.permute.xlu1 %289 }
 0x1aa   :  { %v728_v61 = vpop.eup %727  ;;  %v320_v0 = vmul.f32 1.442695, %v306_v58  ;;  %v314_v52 = vmul.f32 1.442695, %v303_v60  ;;  %v299_v63 = vsub.f32 %v919_v11, %v290_v62  ;;  %v332_v60 = vld [vmem:[#allocation3] sm:$0xff]  ;;  %v333_v62 = vld [vmem:[#allocation3 + $0x8] sm:$0xff] }
 0x1ab   :  { %v324_v1 = vmul.f32 %v728_v61, %v852_v16  ;;  %v246_v61 = vmul.f32 1.442695, %v233_v35 }
 0x1ac   :  { %737 = vpow2.f32 %v320_v0  ;;  %v307_v2 = vmax.f32 %v299_v63, -60.0  ;;  %v235_v0 = vmax.f32 %v227_v56, -60.0 }
 0x1ad   :  { %739 = vpow2.f32 %v314_v52  ;;  %v348_v8 = vsel %vm179_vm5, %v324_v1, 0.0 }
 0x1ae   :  { %v730_v3 = vpop.eup %729  ;;  %349 = vadd.xlane.f32.xlu0 %v348_v8  ;;  %v322_v4 = vmul.f32 1.442695, %v307_v2  ;;  %v250_v39 = vmul.f32 1.442695, %v235_v0  ;;  %v338_v8 = vld [vmem:[#allocation3 + $0x30] sm:$0xff] }
 0x1af   :  { %v732_v5 = vpop.eup %731  ;;  %v328_v11 = vmul.f32 %v730_v3, %v854_v17  ;;  %v335_v3 = vld [vmem:[#allocation3 + $0x18] sm:$0xff] }
 0x1b0   :  { %v325_v6 = vmul.f32 %v732_v5, %v857_v21  ;;  %741 = vpow2.f32 %v322_v4 }
 0x1b1   :  { %v360_v21 = vsel %vm179_vm5, %v328_v11, 0.0 }
 0x1b2   :  { %v734_v7 = vpop.eup %733  ;;  %v351_v9 = vsel %vm179_vm5, %v325_v6, 0.0  ;;  %v445_v10 = vpack.c.bf16 %v325_v6, %v324_v1 }
 0x1b3   :  { %v736_v12 = vpop.eup %735  ;;  %352 = vadd.xlane.f32.xlu1 %v351_v9  ;;  %v326_v16 = vmul.f32 %v734_v7, %v864_v30  ;;  %v228_v30 = vmax.f32 %v220_v22, -60.0  ;;  %v231_v22 = vmax.f32 %v223_v51, -60.0  ;;  %v244_v51 = vmul.f32 1.442695, %v232_v47 }
 0x1b4   :  { %702 = vmatprep.mubr.msk.bf16.mxu0 %vm179_vm5, %v445_v10  ;;  %v329_v13 = vmul.f32 %v736_v12, %v861_v25  ;;  %v337_v12 = vld [vmem:[#allocation3 + $0x28] sm:$0xff] }
 0x1b5   :  { %v354_v15 = vsel %vm179_vm5, %v326_v16, 0.0  ;;  %v242_v54 = vmul.f32 1.442695, %v231_v22 }
 0x1b6   :  { %v738_v23 = vpop.eup %737  ;;  %355 = vadd.xlane.f32.xlu0 %v354_v15  ;;  %v447_v24 = vpack.c.bf16 %v329_v13, %v328_v11  ;;  %v363_v14 = vsel %vm179_vm5, %v329_v13, 0.0 }
 0x1b7   :  { %v740_v33 = vpop.eup %739  ;;  %361 = vadd.xlane.f32.xlu1 %v360_v21  ;;  %v330_v36 = vmul.f32 %v738_v23, %v892_v53  ;;  %v236_v53 = vmul.f32 1.442695, %v228_v30 }
 0x1b8   :  { %706 = vmatprep.mubr.msk.bf16.mxu1 %vm179_vm5, %v447_v24  ;;  %v327_v17 = vmul.f32 %v740_v33, %v879_v44  ;;  %v229_v44 = vmax.f32 %v221_v29, -60.0  ;;  %v339_v33 = vld [vmem:[#allocation3 + $0x38] sm:$0xff] }
 0x1b9   :  { %v366_v25 = vsel %vm179_vm5, %v330_v36, 0.0  ;;  %743 = vpow2.f32 %v236_v53 }
 0x1ba   :  { %v357_v34 = vsel %vm179_vm5, %v327_v17, 0.0  ;;  %v446_v43 = vpack.c.bf16 %v327_v17, %v326_v16  ;;  %v742_v45 = vpop.eup %741  ;;  %v238_v18 = vmul.f32 1.442695, %v229_v44 }
 0x1bb   :  { %358 = vadd.xlane.f32.xlu0 %v357_v34  ;;  %367 = vadd.xlane.f32.xlu1 %v366_v25  ;;  %v331_v37 = vmul.f32 %v742_v45, %v897_v59 }
 0x1bc   :  { %703 = vmatmul.mubr.msk.bf16.vlgmr.msra.gmra.mrb[0].mxu0 %vm179_vm5, %v446_v43  ;;  %745 = vpow2.f32 %v238_v18 }
 0x1bd   :  { %v448_v50 = vpack.c.bf16 %v331_v37, %v330_v36  ;;  %v369_v59 = vsel %vm179_vm5, %v331_v37, 0.0  ;;  %747 = vpow2.f32 %v242_v54 }
 0x1be   :  { %749 = vpow2.f32 %v240_v26 }
 0x1bf   :  { %364 = vadd.xlane.f32.xlu0 %v363_v14  ;;  %707 = vmatmul.mubr.msk.bf16.vlgmr.msra.gmra.mrb[0].mxu1 %vm179_vm5, %v448_v50  ;;  %751 = vpow2.f32 %v244_v51 }
 0x1c0   :  { %753 = vpow2.f32 %v248_v41 }
 0x1c1   :  { %755 = vpow2.f32 %v246_v61  ;;  %v685_v61 = vld [vmem:[%s1120_s4] ss:$0 sm:$0xff] }
 0x1c2   :  { %757 = vpow2.f32 %v250_v39 }
 0x1c3   :  { %370 = vadd.xlane.f32.xlu0 %v369_v59  ;;  %v744_v29 = vpop.eup %743 }
 0x1c4   :  { %v340_v20 = vmul.f32 %v744_v29, %v332_v60 }
 0x1c6   :  { %v746_v57 = vpop.eup %745 }
 0x1c7   :  { %v748_v58 = vpop.eup %747  ;;  %v341_v46 = vmul.f32 %v746_v57, %v333_v62 }
 0x1c8   :  { %v750_v40 = vpop.eup %749  ;;  %v343_v7 = vmul.f32 %v748_v58, %v335_v3 }
 0x1c9   :  { %v752_v32 = vpop.eup %751  ;;  %v342_v63 = vmul.f32 %v750_v40, %v334_v49 }
 0x1ca   :  { %v344_v48 = vmul.f32 %v752_v32, %v336_v42  ;;  %v754_v56 = vpop.eup %753 }
 0x1cb   :  { %v346_v6 = vmul.f32 %v754_v56, %v338_v8  ;;  %v756_v9 = vpop.eup %755 }
 0x1cc   :  { %399 = vperm.xlu1 %722, %v744_v29   ;;  %v345_v23 = vmul.f32 %v756_v9, %v337_v12  ;;  %v758_v21 = vpop.eup %757 }
 0x1cd   :  { %v347_v30 = vmul.f32 %v758_v21, %v339_v33 }
 0x1d0   :  { %404 = vperm.xlu1 %722, %v746_v57  }
 0x1d4   :  { %414 = vperm.xlu1 %722, %v748_v58  }
 0x1d9   :  { %409 = vperm.xlu0 %721, %v750_v40  }
 0x23b   :  { %v350_v27 = vpop.xlane.xlu0 %349 }
 0x23c   :  { %v372_v31 = vadd.f32 %v350_v27, %v340_v20 }
 0x23e   :  { %381 = vst.msk [vmem:[#allocation3] sm:$0xff] %vm25_vm0, %v372_v31 }
 0x240   :  { %v353_v38 = vpop.xlane.xlu1 %352 }
 0x241   :  { %v373_v52 = vadd.f32 %v353_v38, %v341_v46 }
 0x243   :  { %382 = vst.msk [vmem:[#allocation3 + $0x8] sm:$0xff] %vm25_vm0, %v373_v52  ;;  %v356_v55 = vpop.xlane.xlu0 %355 }
 0x244   :  { %v362_v1 = vpop.xlane.xlu1 %361  ;;  %v374_v2 = vadd.f32 %v356_v55, %v342_v63 }
 0x245   :  { %v376_v5 = vadd.f32 %v362_v1, %v344_v48  ;;  %v585_v4 = vld [vmem:[#allocation3] sm:$0xff] }
 0x246   :  { %383 = vst.msk [vmem:[#allocation3 + $0x10] sm:$0xff] %vm25_vm0, %v374_v2  ;;  %595 = vperm.xlu0 %721, %v585_v4  }
 0x247   :  { %385 = vst.msk [vmem:[#allocation3 + $0x20] sm:$0xff] %vm25_vm0, %v376_v5 }
 0x248   :  { %v368_v10 = vpop.xlane.xlu1 %367  ;;  %v359_v11 = vpop.xlane.xlu0 %358 }
 0x249   :  { %v378_v16 = vadd.f32 %v368_v10, %v346_v6  ;;  %v375_v13 = vadd.f32 %v359_v11, %v343_v7 }
 0x24a   :  { %v586_v15 = vld [vmem:[#allocation3 + $0x8] sm:$0xff] }
 0x24b   :  { %387 = vst.msk [vmem:[#allocation3 + $0x30] sm:$0xff] %vm25_vm0, %v378_v16  ;;  %384 = vst.msk [vmem:[#allocation3 + $0x18] sm:$0xff] %vm25_vm0, %v375_v13  ;;  %600 = vperm.xlu1 %722, %v586_v15  }
 0x24c   :  { %v365_v24 = vpop.xlane.xlu0 %364  ;;  %v400_v29 = vpop.permute.xlu1 %399 }
 0x24d   :  { %v377_v36 = vadd.f32 %v365_v24, %v345_v23  ;;  %v587_v17 = vld [vmem:[#allocation3 + $0x10] sm:$0xff]  ;;  %v437_v28 = vmul.f32 0.0, %v400_v29 }
 0x24e   :  { %v589_v43 = vld [vmem:[#allocation3 + $0x20] sm:$0xff] }
 0x24f   :  { %386 = vst.msk [vmem:[#allocation3 + $0x28] sm:$0xff] %vm25_vm0, %v377_v36  ;;  %605 = vperm.xlu1 %722, %v587_v17  }
 0x250   :  { %v371_v25 = vpop.xlane.xlu0 %370  ;;  %v405_v57 = vpop.permute.xlu1 %404 }
 0x251   :  { %v379_v34 = vadd.f32 %v371_v25, %v347_v30  ;;  %v438_v20 = vmul.f32 0.0, %v405_v57 }
 0x252   :  { %v588_v45 = vld [vmem:[#allocation3 + $0x18] sm:$0xff]  ;;  %v591_v37 = vld [vmem:[#allocation3 + $0x30] sm:$0xff] }
 0x253   :  { %388 = vst.msk [vmem:[#allocation3 + $0x38] sm:$0xff] %vm25_vm0, %v379_v34  ;;  %615 = vperm.xlu1 %722, %v589_v43   ;;  %610 = vperm.xlu0 %721, %v588_v45  }
 0x254   :  { %v415_v47 = vpop.permute.xlu1 %414 }
 0x255   :  { %v440_v2 = vmul.f32 0.0, %v415_v47 }
 0x256   :  { %v590_v53 = vld [vmem:[#allocation3 + $0x28] sm:$0xff] }
 0x257   :  { %625 = vperm.xlu1 %722, %v591_v37   ;;  %620 = vperm.xlu0 %721, %v590_v53  }
 0x258   :  { %v410_v58 = vpop.permute.xlu0 %409 }
 0x259   :  { %v439_v49 = vmul.f32 0.0, %v410_v58 }
 0x25a   :  { %v592_v44 = vld [vmem:[#allocation3 + $0x38] sm:$0xff] }
 0x25b   :  { %424 = vperm.xlu1 %722, %v756_v9   ;;  %630 = vperm.xlu0 %721, %v592_v44  }
 0x25f   :  { %434 = vperm.xlu1 %722, %v758_v21   ;;  %419 = vperm.xlu0 %721, %v752_v32  }
 0x263   :  { %429 = vperm.xlu0 %721, %v754_v56  }
 0x28f   :  { %v704_v50 = vpop.f32.mrb[0].mxu0 }
 0x290   :  { %v519_v14 = vpop.f32.mrb[1].mxu0  ;;  %v552_v52 = vadd.f32 %v704_v50, %v439_v49 }
 0x291   :  { %v705_v18 = vpop.f32.mrb[2].mxu0  ;;  %v550_v41 = vadd.f32 %v519_v14, %v437_v28 }
 0x292   :  { %v522_v22 = vpop.f32.mrb[3].mxu0  ;;  %v1083_v59 = vpop.f32.mrb[0].mxu1  ;;  %v553_v3 = vadd.f32 %v705_v18, %v440_v2 }
 0x293   :  { %v535_v54 = vpop.f32.mrb[1].mxu1  ;;  %v551_v39 = vadd.f32 %v522_v22, %v438_v20 }
 0x294   :  { %v1085_v19 = vpop.f32.mrb[2].mxu1 }
 0x295   :  { %v538_v26 = vpop.f32.mrb[3].mxu1 }
 0x2c5   :  { %v596_v40 = vpop.permute.xlu0 %595 }
 0x2c6   :  { %759 = vrcp.f32 %v596_v40 }
 0x2ca   :  { %v601_v51 = vpop.permute.xlu1 %600 }
 0x2cb   :  { %761 = vrcp.f32 %v601_v51 }
 0x2ce   :  { %v606_v35 = vpop.permute.xlu1 %605 }
 0x2cf   :  { %763 = vrcp.f32 %v606_v35 }
 0x2d0   :  { %v760_v60 = vpop.eup %759 }
 0x2d1   :  { %v634_v0 = vmul.f32 %v760_v60, %v550_v41 }
 0x2d2   :  { %v616_v27 = vpop.permute.xlu1 %615  ;;  %v611_v31 = vpop.permute.xlu0 %610 }
 0x2d3   :  { %v656_v62 = vadd.f32 %v685_v61, %v634_v0  ;;  %765 = vrcp.f32 %v611_v31 }
 0x2d4   :  { %767 = vrcp.f32 %v616_v27 }
 0x2d5   :  { %v762_v46 = vpop.eup %761  ;;  %664 = vst [vmem:[%s1121_s5] sm:$0xff] %v656_v62 }
 0x2d6   :  { %v636_v32 = vmul.f32 %v762_v46, %v551_v39  ;;  %v626_v38 = vpop.permute.xlu1 %625  ;;  %v621_v42 = vpop.permute.xlu0 %620 }
 0x2d7   :  { %769 = vrcp.f32 %v621_v42 }
 0x2d8   :  { %v657_v63 = vadd.f32 %v685_v61, %v636_v32 }
 0x2d9   :  { %v764_v48 = vpop.eup %763 }
 0x2da   :  { %665 = vst [vmem:[%s1121_s5 + $0x8] sm:$0xff] %v657_v63  ;;  %v638_v55 = vmul.f32 %v764_v48, %v552_v52  ;;  %v425_v56 = vpop.permute.xlu1 %424  ;;  %v631_v1 = vpop.permute.xlu0 %630 }
 0x2db   :  { %771 = vrcp.f32 %v631_v1  ;;  %v442_v5 = vmul.f32 0.0, %v425_v56 }
 0x2dc   :  { %v658_v8 = vadd.f32 %v685_v61, %v638_v55  ;;  %773 = vrcp.f32 %v626_v38 }
 0x2dd   :  { %v766_v4 = vpop.eup %765  ;;  %v555_v13 = vadd.f32 %v538_v26, %v442_v5 }
 0x2de   :  { %666 = vst [vmem:[%s1121_s5 + $0x10] sm:$0xff] %v658_v8  ;;  %v435_v6 = vpop.permute.xlu1 %434  ;;  %v420_v7 = vpop.permute.xlu0 %419  ;;  %v640_v9 = vmul.f32 %v766_v4, %v553_v3 }
 0x2df   :  { %v441_v10 = vmul.f32 0.0, %v420_v7  ;;  %v444_v11 = vmul.f32 0.0, %v435_v6  ;;  %v768_v12 = vpop.eup %767 }
 0x2e0   :  { %v659_v16 = vadd.f32 %v685_v61, %v640_v9 }
 0x2e1   :  { %v554_v15 = vadd.f32 %v535_v54, %v441_v10  ;;  %v770_v23 = vpop.eup %769  ;;  %v557_v17 = vadd.f32 %v1085_v19, %v444_v11 }
 0x2e2   :  { %v430_v21 = vpop.permute.xlu0 %429  ;;  %667 = vst [vmem:[%s1121_s5 + $0x18] sm:$0xff] %v659_v16  ;;  %v644_v24 = vmul.f32 %v770_v23, %v555_v13 }
 0x2e3   :  { %v642_v33 = vmul.f32 %v768_v12, %v554_v15  ;;  %v443_v36 = vmul.f32 0.0, %v430_v21 }
 0x2e4   :  { %v661_v25 = vadd.f32 %v685_v61, %v644_v24 }
 0x2e5   :  { %v772_v30 = vpop.eup %771  ;;  %v660_v34 = vadd.f32 %v685_v61, %v642_v33  ;;  %v556_v43 = vadd.f32 %v1083_v59, %v443_v36 }
 0x2e6   :  { %v774_v45 = vpop.eup %773  ;;  %v648_v37 = vmul.f32 %v772_v30, %v557_v17  ;;  %669 = vst [vmem:[%s1121_s5 + $0x28] sm:$0xff] %v661_v25 }
 0x2e7   :  { %668 = vst [vmem:[%s1121_s5 + $0x20] sm:$0xff] %v660_v34  ;;  %v646_v53 = vmul.f32 %v774_v45, %v556_v43 }
 0x2e8   :  { %v663_v44 = vadd.f32 %v685_v61, %v648_v37 }
 0x2e9   :  { %v662_v50 = vadd.f32 %v685_v61, %v646_v53 }
 0x2ea   :  { %671 = vst [vmem:[%s1121_s5 + $0x38] sm:$0xff] %v663_v44 }
 0x2eb   :  { %670 = vst [vmem:[%s1121_s5 + $0x30] sm:$0xff] %v662_v50 }

// kernel: gnn_routing_forward.7
= control target key start
LH: loop header
LB: loop body
LE: loop exit
PB: predicated region body
PF: predicated region fallthrough
CT: control target
= control target key end

     0   :  { %v4534_v0 = vmov 0   ;;  %v4532_v13 = vmov 1   ;;  %v4536_v14 = vmov 2   ;;  %vm25_vm0 = vcmask 31744   ;;  %s2886_s29 = smov 64   ;;  %s2887_s11 = smov 32   ;;  %s4524_s1 = inlined_call_operand.vmem [shape: f32[64,4], index: 1, kind: input, shape index: {}]   ;;  %s4525_s2 = inlined_call_operand.vmem [shape: bf16[64,128], index: 2, kind: input, shape index: {}]   ;;  %s4526_s3 = inlined_call_operand.vmem [shape: s8[64,64], index: 3, kind: input, shape index: {}]   ;;  %s4527_s0 = inlined_call_operand.vmem [shape: f32[4,64], index: 0, kind: input, shape index: {}]   ;;  %s4528_s4 = inlined_call_operand.vmem [shape: f32[1,128], index: 4, kind: input, shape index: {}]   ;;  %s4529_s5 = inlined_call_operand.vmem [shape: f32[64,128], index: 5, kind: output, shape index: {}]  }
   0x1   :  { %2649 = vset.pattern.permute.xlu0 %v4534_v0  ;;  %v2922_v1 = vld [vmem:[%s4524_s1] sm:$0xff]  ;;  %2650 = vset.pattern.permute.xlu1 %v4534_v0  ;;  %v2928_v2 = vld [vmem:[%s4524_s1 + $0x10] sm:$0xff]  ;;  %v2935_v3 = vld [vmem:[%s4524_s1 + $0x8] sm:$0xff]  ;;  %v2883_v31 = vmov -1e+30   ;;  %vm177_vm2 = vcmask 523264  }
   0x2   :  { %95 = vperm.xlu0 %2649, %v2922_v1   ;;  %105 = vperm.xlu1 %2650, %v2928_v2   ;;  %v2940_v4 = vld [vmem:[%s4524_s1 + $0x18] sm:$0xff]  ;;  %v2677_v5 = vld [vmem:[%s4525_s2] sm:$0xff]   ;;  %v2955_v7 = vld [vmem:[%s4524_s1 + $0x28] sm:$0xff]  ;;  %26 = vst.msk [vmem:[#allocation2] sm:$0xff] %vm25_vm0, %v2883_v31 }
   0x3   :  { %v2950_v6 = vld [vmem:[%s4524_s1 + $0x20] sm:$0xff]  ;;  %v2678_v8 = vld [vmem:[%s4525_s2 + $0x8] sm:$0xff]   ;;  %2576 = vmatprep.subr.bf16.mxu0 %v2677_v5  ;;  %v2965_v9 = vld [vmem:[%s4524_s1 + $0x30] sm:$0xff]  ;;  %27 = vst.msk [vmem:[#allocation2 + $0x8] sm:$0xff] %vm25_vm0, %v2883_v31 }
   0x4   :  { %2577 = vmatpush3.bf16.msra.mxu0 %v2677_v5  ;;  %v2970_v10 = vld [vmem:[%s4524_s1 + $0x38] sm:$0xff]  ;;  %v2679_v11 = vld [vmem:[%s4525_s2 + $0x10] sm:$0xff]   ;;  %s2881_s1 = smov 96   ;;  %v50_v15 = vld [vmem:[%s4526_s3] sm:$0xff]  ;;  %28 = vst.msk [vmem:[#allocation2 + $0x10] sm:$0xff] %vm25_vm0, %v2883_v31 }
   0x5   :  { %2578 = vmatprep.subr.bf16.mxu0 %v2678_v8  ;;  %v2680_v12 = vld [vmem:[%s4525_s2 + $0x18] sm:$0xff]   ;;  %v52_v16 = vunpack.c.0.s8 %v50_v15  ;;  %v54_v17 = vunpack.c.2.s8 %v50_v15  ;;  %v53_v18 = vunpack.c.1.s8 %v50_v15  ;;  %v51_v19 = vld [vmem:[%s4526_s3 + $0x8] sm:$0xff]  ;;  %v55_v20 = vunpack.c.3.s8 %v50_v15  ;;  %v3006_v21 = vld [vmem:[%s4527_s0] ss:$0 sm:$0xff]  ;;  %29 = vst.msk [vmem:[#allocation2 + $0x18] sm:$0xff] %vm25_vm0, %v2883_v31 }
   0x6   :  { %100 = vperm.xlu0 %2649, %v2935_v3   ;;  %110 = vperm.xlu1 %2650, %v2940_v4   ;;  %v56_v24 = vunpack.c.0.s8 %v51_v19  ;;  %30 = vst.msk [vmem:[#allocation2 + $0x20] sm:$0xff] %vm25_vm0, %v2883_v31  ;;  %31 = vst.msk [vmem:[#allocation2 + $0x28] sm:$0xff] %vm25_vm0, %v2883_v31  ;;  %v57_v32 = vunpack.c.1.s8 %v51_v19  ;;  %v58_v38 = vunpack.c.2.s8 %v51_v19  ;;  %v59_v46 = vunpack.c.3.s8 %v51_v19 }
   0x7   :  { %v3008_v22 = vcvt.s32.f32 %v52_v16  ;;  %v3010_v23 = vcvt.s32.f32 %v54_v17  ;;  %v3012_v27 = vcvt.s32.f32 %v53_v18  ;;  %v3014_v28 = vcvt.s32.f32 %v55_v20  ;;  %32 = vst.msk [vmem:[#allocation2 + $0x30] sm:$0xff] %vm25_vm0, %v2883_v31  ;;  %33 = vst.msk [vmem:[#allocation2 + $0x38] sm:$0xff] %vm25_vm0, %v2883_v31  ;;  %v3073_v17 = vld [vmem:[%s4527_s0 + $0x1] ss:$0 sm:$0xff] }
   0x8   :  { %2579 = vmatpush3.bf16.msra.mxu0 %v2678_v8  ;;  %v3029_v37 = vcvt.s32.f32 %v56_v24  ;;  %v3042_v45 = vcvt.s32.f32 %v57_v32  ;;  %v3049_v53 = vcvt.s32.f32 %v58_v38  ;;  %v3062_v60 = vcvt.s32.f32 %v59_v46 }
   0x9   :  { %2580 = vmatprep.subr.bf16.mxu0 %v2679_v11  ;;  %vm68_vm1 = vcmp.gt.f32.partialorder %v3008_v22, 0.0  ;;  %vm70_vm3 = vcmp.gt.f32.partialorder %v3010_v23, 0.0  ;;  %vm69_vm6 = vcmp.gt.f32.partialorder %v3012_v27, 0.0  ;;  %vm71_vm7 = vcmp.gt.f32.partialorder %v3014_v28, 0.0 }
   0xa   :  { %115 = vperm.xlu0 %2649, %v2950_v6   ;;  %120 = vperm.xlu1 %2650, %v2955_v7   ;;  %vm72_vm9 = vcmp.gt.f32.partialorder %v3029_v37, 0.0  ;;  %vm73_vm11 = vcmp.gt.f32.partialorder %v3042_v45, 0.0  ;;  %vm74_vm14 = vcmp.gt.f32.partialorder %v3049_v53, 0.0  ;;  %vm75_vm15 = vcmp.gt.f32.partialorder %v3062_v60, 0.0 }
   0xc   :  { %2581 = vmatpush3.bf16.msra.mxu0 %v2679_v11 }
   0xd   :  { %2582 = vmatprep.subr.bf16.mxu0 %v2680_v12 }
   0xe   :  { %125 = vperm.xlu0 %2649, %v2965_v9   ;;  %130 = vperm.xlu1 %2650, %v2970_v10  }
  0x10   :  { %2583 = vmatpush3.bf16.msra.mxu0 %v2680_v12 }
  0x12   :  { %2651 = vset.pattern.permute.xlu0 %v4532_v13  ;;  %2652 = vset.pattern.permute.xlu1 %v4532_v13 }
  0x13   :  { %584 = vperm.xlu0 %2651, %v2922_v1   ;;  %589 = vperm.xlu1 %2652, %v2935_v3  }
  0x17   :  { %599 = vperm.xlu0 %2651, %v2940_v4   ;;  %594 = vperm.xlu1 %2652, %v2928_v2  }
  0x1b   :  { %609 = vperm.xlu0 %2651, %v2955_v7   ;;  %604 = vperm.xlu1 %2652, %v2950_v6  }
  0x1f   :  { %619 = vperm.xlu0 %2651, %v2970_v10   ;;  %614 = vperm.xlu1 %2652, %v2965_v9  }
  0x23   :  { %935 = vrot.lane.b32.xlu1 %v2677_v5, %s2881_s1  ;;  %937 = vrot.lane.b32.xlu0 %v2678_v8, %s2881_s1 }
  0x24   :  { %2653 = vset.pattern.permute.xlu1 %v4536_v14  ;;  %2654 = vset.pattern.permute.xlu0 %v4536_v14 }
  0x27   :  { %939 = vrot.lane.b32.xlu1 %v2679_v11, %s2881_s1  ;;  %941 = vrot.lane.b32.xlu0 %v2680_v12, %s2881_s1 }
  0x2b   :  { %1092 = vperm.xlu1 %2653, %v2922_v1  }
  0x81   :  { %v96_v25 = vpop.permute.xlu0 %95  ;;  %v106_v26 = vpop.permute.xlu1 %105 }
  0x82   :  { %v137_v29 = vadd.f32 %v3006_v21, %v96_v25  ;;  %v139_v30 = vadd.f32 %v3006_v21, %v106_v26 }
  0x84   :  { %v153_v33 = vmul.f32 0.2, %v137_v29  ;;  %v155_v34 = vmul.f32 0.2, %v139_v30  ;;  %vm145_vm4 = vcmp.gt.f32.partialorder %v137_v29, 0.0  ;;  %vm147_vm5 = vcmp.gt.f32.partialorder %v139_v30, 0.0 }
  0x85   :  { %v101_v35 = vpop.permute.xlu0 %100  ;;  %v111_v36 = vpop.permute.xlu1 %110 }
  0x86   :  { %v138_v39 = vadd.f32 %v3006_v21, %v101_v35  ;;  %v140_v40 = vadd.f32 %v3006_v21, %v111_v36  ;;  %v161_v41 = vsel %vm145_vm4, %v137_v29, %v153_v33  ;;  %v163_v42 = vsel %vm147_vm5, %v139_v30, %v155_v34 }
  0x87   :  { %v3036_v43 = vsel %vm68_vm1, %v161_v41, -1e+30  ;;  %v3040_v44 = vsel %vm70_vm3, %v163_v42, -1e+30 }
  0x88   :  { %v154_v47 = vmul.f32 0.2, %v138_v39  ;;  %v156_v48 = vmul.f32 0.2, %v140_v40  ;;  %v178_v49 = vsel %vm177_vm2, %v3036_v43, -inf  ;;  %vm146_vm8 = vcmp.gt.f32.partialorder %v138_v39, 0.0 }
  0x89   :  { %v116_v50 = vpop.permute.xlu0 %115  ;;  %179 = vmax.xlane.f32.xlu0 %v178_v49  ;;  %v121_v51 = vpop.permute.xlu1 %120  ;;  %v184_v52 = vsel %vm177_vm2, %v3040_v44, -inf  ;;  %vm148_vm10 = vcmp.gt.f32.partialorder %v140_v40, 0.0 }
  0x8a   :  { %v141_v54 = vadd.f32 %v3006_v21, %v116_v50  ;;  %v142_v55 = vadd.f32 %v3006_v21, %v121_v51  ;;  %v162_v56 = vsel %vm146_vm8, %v138_v39, %v154_v47  ;;  %v164_v57 = vsel %vm148_vm10, %v140_v40, %v156_v48 }
  0x8b   :  { %v3055_v58 = vsel %vm69_vm6, %v162_v56, -1e+30  ;;  %v3059_v59 = vsel %vm71_vm7, %v164_v57, -1e+30 }
  0x8c   :  { %v157_v61 = vmul.f32 0.2, %v141_v54  ;;  %v158_v62 = vmul.f32 0.2, %v142_v55  ;;  %v181_v63 = vsel %vm177_vm2, %v3055_v58, -inf  ;;  %vm149_vm12 = vcmp.gt.f32.partialorder %v141_v54, 0.0 }
  0x8d   :  { %v126_v5 = vpop.permute.xlu0 %125  ;;  %182 = vmax.xlane.f32.xlu1 %v181_v63  ;;  %185 = vmax.xlane.f32.xlu0 %v184_v52  ;;  %v131_v8 = vpop.permute.xlu1 %130  ;;  %v187_v11 = vsel %vm177_vm2, %v3059_v59, -inf  ;;  %vm150_vm13 = vcmp.gt.f32.partialorder %v142_v55, 0.0 }
  0x8e   :  { %v143_v12 = vadd.f32 %v3006_v21, %v126_v5  ;;  %v144_v15 = vadd.f32 %v3006_v21, %v131_v8  ;;  %v165_v16 = vsel %vm149_vm12, %v141_v54, %v157_v61  ;;  %v166_v18 = vsel %vm150_vm13, %v142_v55, %v158_v62 }
  0x8f   :  { %v3077_v19 = vsel %vm72_vm9, %v165_v16, -1e+30  ;;  %v3082_v20 = vsel %vm73_vm11, %v166_v18, -1e+30 }
  0x90   :  { %v159_v21 = vmul.f32 0.2, %v143_v12  ;;  %v160_v24 = vmul.f32 0.2, %v144_v15  ;;  %v190_v25 = vsel %vm177_vm2, %v3077_v19, -inf  ;;  %vm151_vm4 = vcmp.gt.f32.partialorder %v143_v12, 0.0 }
  0x91   :  { %191 = vmax.xlane.f32.xlu1 %v190_v25  ;;  %188 = vmax.xlane.f32.xlu0 %v187_v11  ;;  %vm152_vm5 = vcmp.gt.f32.partialorder %v144_v15, 0.0  ;;  %v193_v31 = vsel %vm177_vm2, %v3082_v20, -inf }
  0x92   :  { %v585_v26 = vpop.permute.xlu0 %584  ;;  %v590_v29 = vpop.permute.xlu1 %589  ;;  %v167_v30 = vsel %vm151_vm4, %v143_v12, %v159_v21  ;;  %v168_v32 = vsel %vm152_vm5, %v144_v15, %v160_v24 }
  0x93   :  { %v626_v33 = vadd.f32 %v3073_v17, %v585_v26  ;;  %v627_v34 = vadd.f32 %v3073_v17, %v590_v29  ;;  %v3093_v35 = vsel %vm74_vm14, %v167_v30, -1e+30  ;;  %v3097_v36 = vsel %vm75_vm15, %v168_v32, -1e+30 }
  0x94   :  { %v196_v38 = vsel %vm177_vm2, %v3093_v35, -inf  ;;  %v199_v46 = vsel %vm177_vm2, %v3097_v36, -inf }
  0x95   :  { %v642_v39 = vmul.f32 0.2, %v626_v33  ;;  %v643_v40 = vmul.f32 0.2, %v627_v34  ;;  %197 = vmax.xlane.f32.xlu1 %v196_v38  ;;  %194 = vmax.xlane.f32.xlu0 %v193_v31  ;;  %vm634_vm8 = vcmp.gt.f32.partialorder %v626_v33, 0.0  ;;  %vm635_vm10 = vcmp.gt.f32.partialorder %v627_v34, 0.0 }
  0x96   :  { %v600_v41 = vpop.permute.xlu0 %599  ;;  %v595_v42 = vpop.permute.xlu1 %594 }
  0x97   :  { %v629_v47 = vadd.f32 %v3073_v17, %v600_v41  ;;  %v628_v48 = vadd.f32 %v3073_v17, %v595_v42  ;;  %v650_v49 = vsel %vm634_vm8, %v626_v33, %v642_v39  ;;  %v651_v50 = vsel %vm635_vm10, %v627_v34, %v643_v40 }
  0x98   :  { %v3107_v51 = vsel %vm68_vm1, %v650_v49, -1e+30  ;;  %v3111_v52 = vsel %vm69_vm6, %v651_v50, -1e+30  ;;  %vm378_vm10 = vcmask 7168  }
  0x99   :  { %v645_v54 = vmul.f32 0.2, %v629_v47  ;;  %v644_v55 = vmul.f32 0.2, %v628_v48  ;;  %200 = vmax.xlane.f32.xlu0 %v199_v46  ;;  %v666_v56 = vsel %vm177_vm2, %v3107_v51, -inf  ;;  %v669_v62 = vsel %vm177_vm2, %v3111_v52, -inf }
  0x9a   :  { %v610_v57 = vpop.permute.xlu0 %609  ;;  %667 = vmax.xlane.f32.xlu1 %v666_v56  ;;  %v605_v61 = vpop.permute.xlu1 %604  ;;  %vm637_vm12 = vcmp.gt.f32.partialorder %v629_v47, 0.0  ;;  %vm636_vm13 = vcmp.gt.f32.partialorder %v628_v48, 0.0  ;;  %v2884_v46 = vmov 0.0  }
  0x9b   :  { %v631_v63 = vadd.f32 %v3073_v17, %v610_v57  ;;  %v630_v5 = vadd.f32 %v3073_v17, %v605_v61  ;;  %v653_v8 = vsel %vm637_vm12, %v629_v47, %v645_v54  ;;  %v652_v11 = vsel %vm636_vm13, %v628_v48, %v644_v55  ;;  %42 = vst [vmem:[#allocation4] sm:$0xff] %v2884_v46 }
  0x9c   :  { %v3121_v12 = vsel %vm71_vm7, %v653_v8, -1e+30  ;;  %v3125_v15 = vsel %vm70_vm3, %v652_v11, -1e+30  ;;  %34 = vst.msk [vmem:[#allocation3] sm:$0xff] %vm25_vm0, %v2884_v46  ;;  %35 = vst.msk [vmem:[#allocation3 + $0x8] sm:$0xff] %vm25_vm0, %v2884_v46 }
  0x9d   :  { %v647_v16 = vmul.f32 0.2, %v631_v63  ;;  %v646_v18 = vmul.f32 0.2, %v630_v5  ;;  %670 = vmax.xlane.f32.xlu0 %v669_v62  ;;  %v675_v21 = vsel %vm177_vm2, %v3121_v12, -inf  ;;  %v672_v26 = vsel %vm177_vm2, %v3125_v15, -inf }
  0x9e   :  { %v620_v24 = vpop.permute.xlu0 %619  ;;  %676 = vmax.xlane.f32.xlu1 %v675_v21  ;;  %v615_v25 = vpop.permute.xlu1 %614  ;;  %vm639_vm4 = vcmp.gt.f32.partialorder %v631_v63, 0.0  ;;  %vm638_vm5 = vcmp.gt.f32.partialorder %v630_v5, 0.0  ;;  %36 = vst.msk [vmem:[#allocation3 + $0x10] sm:$0xff] %vm25_vm0, %v2884_v46  ;;  %37 = vst.msk [vmem:[#allocation3 + $0x18] sm:$0xff] %vm25_vm0, %v2884_v46  ;;  %v4530_v55 = vmov 3   ;;  %v3203_v11 = vld [vmem:[#allocation2 + $0x18] sm:$0xff] }
  0x9f   :  { %v632_v29 = vadd.f32 %v3073_v17, %v615_v25  ;;  %v655_v30 = vsel %vm639_vm4, %v631_v63, %v647_v16  ;;  %v654_v31 = vsel %vm638_vm5, %v630_v5, %v646_v18  ;;  %38 = vst.msk [vmem:[#allocation3 + $0x20] sm:$0xff] %vm25_vm0, %v2884_v46  ;;  %39 = vst.msk [vmem:[#allocation3 + $0x28] sm:$0xff] %vm25_vm0, %v2884_v46  ;;  %v3186_v63 = vld [vmem:[#allocation2 + $0x8] sm:$0xff]  ;;  %v3195_v5 = vld [vmem:[#allocation2 + $0x20] sm:$0xff]  ;;  %vm866_vm12 = vcmask 15368  }
  0xa0   :  { %v3134_v32 = vsel %vm73_vm11, %v655_v30, -1e+30  ;;  %v3138_v33 = vsel %vm72_vm9, %v654_v31, -1e+30  ;;  %40 = vst.msk [vmem:[#allocation3 + $0x30] sm:$0xff] %vm25_vm0, %v2884_v46  ;;  %41 = vst.msk [vmem:[#allocation3 + $0x38] sm:$0xff] %vm25_vm0, %v2884_v46  ;;  %v633_v54 = vadd.f32 %v3073_v17, %v620_v24 }
  0xa1   :  { %v648_v34 = vmul.f32 0.2, %v632_v29  ;;  %673 = vmax.xlane.f32.xlu0 %v672_v26  ;;  %v681_v38 = vsel %vm177_vm2, %v3134_v32, -inf  ;;  %v678_v39 = vsel %vm177_vm2, %v3138_v33, -inf  ;;  %vm640_vm8 = vcmp.gt.f32.partialorder %v632_v29, 0.0  ;;  %43 = vst [vmem:[#allocation4 + $0x8] sm:$0xff] %v2884_v46 }
  0xa2   :  { %682 = vmax.xlane.f32.xlu1 %v681_v38  ;;  %v936_v40 = vpop.permute.xlu1 %935  ;;  %v938_v41 = vpop.permute.xlu0 %937  ;;  %44 = vst [vmem:[#allocation4 + $0x10] sm:$0xff] %v2884_v46  ;;  %45 = vst [vmem:[#allocation4 + $0x18] sm:$0xff] %v2884_v46  ;;  %v649_v56 = vmul.f32 0.2, %v633_v54  ;;  %vm641_vm0 = vcmp.gt.f32.partialorder %v633_v54, 0.0  ;;  %v3211_v25 = vld [vmem:[#allocation2 + $0x30] sm:$0xff] }
  0xa3   :  { %v656_v42 = vsel %vm640_vm8, %v632_v29, %v648_v34  ;;  %2592 = vmatprep.subr.bf16.mxu1 %v936_v40  ;;  %46 = vst [vmem:[#allocation4 + $0x20] sm:$0xff] %v2884_v46  ;;  %47 = vst [vmem:[#allocation4 + $0x28] sm:$0xff] %v2884_v46  ;;  %v3213_v26 = vld [vmem:[#allocation2 + $0x28] sm:$0xff] }
  0xa4   :  { %48 = vst [vmem:[#allocation4 + $0x30] sm:$0xff] %v2884_v46  ;;  %49 = vst [vmem:[#allocation4 + $0x38] sm:$0xff] %v2884_v46  ;;  %v3154_v47 = vsel %vm74_vm14, %v656_v42, -1e+30  ;;  %2593 = vmatpush3.bf16.msra.mxu1 %v936_v40  ;;  %v657_v57 = vsel %vm641_vm0, %v633_v54, %v649_v56 }
  0xa5   :  { %679 = vmax.xlane.f32.xlu0 %v678_v39  ;;  %2594 = vmatprep.subr.bf16.mxu1 %v938_v41  ;;  %v684_v48 = vsel %vm177_vm2, %v3154_v47, -inf  ;;  %v3168_v61 = vsel %vm75_vm15, %v657_v57, -1e+30  ;;  %v3227_v39 = vld [vmem:[#allocation2 + $0x38] sm:$0xff] }
  0xa6   :  { %v940_v49 = vpop.permute.xlu1 %939  ;;  %v942_v50 = vpop.permute.xlu0 %941  ;;  %v687_v62 = vsel %vm177_vm2, %v3168_v61, -inf }
  0xa8   :  { %2595 = vmatpush3.bf16.msra.mxu1 %v938_v41 }
  0xa9   :  { %685 = vmax.xlane.f32.xlu0 %v684_v48  ;;  %2596 = vmatprep.subr.bf16.mxu1 %v940_v49 }
  0xaa   :  { %v3184_v17 = vpop.permute.xlu1 %1092 }
  0xac   :  { %2597 = vmatpush3.bf16.msra.mxu1 %v940_v49 }
  0xad   :  { %2598 = vmatprep.subr.bf16.mxu1 %v942_v50 }
  0xb0   :  { %2599 = vmatpush3.bf16.msra.mxu1 %v942_v50 }
  0xb3   :  { %1102 = vperm.xlu1 %2653, %v2928_v2  }
  0xbf   :  { %1097 = vperm.xlu0 %2654, %v2935_v3  }
  0xc3   :  { %1112 = vperm.xlu0 %2654, %v2950_v6  }
  0xc7   :  { %1122 = vperm.xlu0 %2654, %v2965_v9  }
  0xcb   :  { %2655 = vset.pattern.permute.xlu0 %v4530_v55 }
  0xcc   :  { %1600 = vperm.xlu0 %2655, %v2922_v1   ;;  %v202_v1 = vld [vmem:[#allocation2] sm:$0xff] }
  0xd0   :  { %1615 = vperm.xlu0 %2655, %v2940_v4  }
  0xd4   :  { %1625 = vperm.xlu0 %2655, %v2955_v7  }
  0xd7   :  { %688 = vmax.xlane.f32.xlu1 %v687_v62 }
  0xd8   :  { %1635 = vperm.xlu0 %2655, %v2970_v10  }
  0xdc   :  { %2658 = vset.pattern.permute.xlu0 %v4534_v0 }
  0xe8   :  { %1107 = vperm.xlu1 %2653, %v2940_v4  }
  0xec   :  { %1117 = vperm.xlu1 %2653, %v2955_v7  }
  0xf0   :  { %1127 = vperm.xlu1 %2653, %v2970_v10   ;;  %v3188_v10 = vld [vmem:[#allocation2 + $0x10] sm:$0xff] }
  0xf4   :  { %2656 = vset.pattern.permute.xlu1 %v4530_v55 }
  0xf5   :  { %1605 = vperm.xlu1 %2656, %v2935_v3  }
  0xf9   :  { %1610 = vperm.xlu1 %2656, %v2928_v2  }
  0xfd   :  { %1620 = vperm.xlu1 %2656, %v2950_v6  }
 0x101   :  { %1630 = vperm.xlu1 %2656, %v2965_v9  }
 0x105   :  { %2657 = vset.pattern.permute.xlu1 %v4534_v0 }
 0x116   :  { %v180_v4 = vpop.xlane.xlu0 %179 }
 0x117   :  { %v210_v7 = vmax.f32 %v202_v1, %v180_v4 }
 0x119   :  { %565 = vst.msk [vmem:[#allocation2] sm:$0xff] %vm378_vm10, %v210_v7  ;;  %252 = vperm.xlu1 %2657, %v210_v7   ;;  %v218_v50 = vsub.f32 %v202_v1, %v210_v7 }
 0x11a   :  { %v183_v2 = vpop.xlane.xlu1 %182  ;;  %v186_v3 = vpop.xlane.xlu0 %185 }
 0x11b   :  { %v3192_v6 = vmax.f32 %v3186_v63, %v183_v2  ;;  %v212_v9 = vmax.f32 %v3188_v10, %v186_v3 }
 0x11d   :  { %566 = vst.msk [vmem:[#allocation2 + $0x8] sm:$0xff] %vm378_vm10, %v3192_v6  ;;  %567 = vst.msk [vmem:[#allocation2 + $0x10] sm:$0xff] %vm378_vm10, %v212_v9  ;;  %257 = vperm.xlu0 %2658, %v3192_v6   ;;  %262 = vperm.xlu1 %2657, %v212_v9   ;;  %v220_v4 = vsub.f32 %v3188_v10, %v212_v9 }
 0x11e   :  { %v192_v16 = vpop.xlane.xlu1 %191  ;;  %v189_v18 = vpop.xlane.xlu0 %188 }
 0x11f   :  { %v3206_v21 = vmax.f32 %v3195_v5, %v192_v16  ;;  %v3209_v24 = vmax.f32 %v3203_v11, %v189_v18  ;;  %v226_v16 = vmax.f32 %v218_v50, -60.0  ;;  %v228_v9 = vmax.f32 %v220_v4, -60.0 }
 0x120   :  { %v3236_v48 = vld [vmem:[#allocation2] sm:$0xff] }
 0x121   :  { %569 = vst.msk [vmem:[#allocation2 + $0x20] sm:$0xff] %vm378_vm10, %v3206_v21  ;;  %272 = vperm.xlu0 %2658, %v3206_v21   ;;  %568 = vst.msk [vmem:[#allocation2 + $0x18] sm:$0xff] %vm378_vm10, %v3209_v24  ;;  %267 = vperm.xlu1 %2657, %v3209_v24   ;;  %v234_v50 = vmul.f32 1.442695, %v226_v16 }
 0x122   :  { %v198_v30 = vpop.xlane.xlu1 %197  ;;  %v195_v31 = vpop.xlane.xlu0 %194 }
 0x123   :  { %v3224_v34 = vmax.f32 %v3211_v25, %v198_v30  ;;  %v215_v38 = vmax.f32 %v3213_v26, %v195_v31  ;;  %v238_v30 = vmul.f32 1.442695, %v228_v9  ;;  %2681 = vpow2.f32 %v234_v50 }
 0x124   :  { %v691_v57 = vld [vmem:[#allocation2 + $0x8] sm:$0xff]  ;;  %v692_v3 = vld [vmem:[#allocation2 + $0x10] sm:$0xff] }
 0x125   :  { %571 = vst.msk [vmem:[#allocation2 + $0x30] sm:$0xff] %vm378_vm10, %v3224_v34  ;;  %570 = vst.msk [vmem:[#allocation2 + $0x28] sm:$0xff] %vm378_vm10, %v215_v38  ;;  %282 = vperm.xlu0 %2658, %v3224_v34   ;;  %277 = vperm.xlu1 %2657, %v215_v38   ;;  %v223_v56 = vsub.f32 %v3213_v26, %v215_v38  ;;  %2683 = vpow2.f32 %v238_v30 }
 0x126   :  { %v201_v41 = vpop.xlane.xlu0 %200 }
 0x127   :  { %v217_v42 = vmax.f32 %v3227_v39, %v201_v41  ;;  %v668_v46 = vpop.xlane.xlu1 %667  ;;  %v231_v55 = vmax.f32 %v223_v56, -60.0 }
 0x128   :  { %v3239_v49 = vmax.f32 %v3236_v48, %v668_v46  ;;  %v3243_v54 = vld [vmem:[#allocation2 + $0x18] sm:$0xff]  ;;  %v694_v4 = vld [vmem:[#allocation2 + $0x20] sm:$0xff] }
 0x129   :  { %572 = vst.msk [vmem:[#allocation2 + $0x38] sm:$0xff] %vm378_vm10, %v217_v42  ;;  %2659 = vset.pattern.permute.xlu0 %v4532_v13  ;;  %287 = vperm.xlu1 %2657, %v217_v42   ;;  %v225_v29 = vsub.f32 %v3227_v39, %v217_v42  ;;  %v244_v9 = vmul.f32 1.442695, %v231_v55 }
 0x12a   :  { %1073 = vst.msk [vmem:[#allocation2] sm:$0xff] %vm866_vm12, %v3239_v49  ;;  %740 = vperm.xlu0 %2659, %v3239_v49   ;;  %v671_v62 = vpop.xlane.xlu0 %670 }
 0x12b   :  { %v699_v1 = vmax.f32 %v691_v57, %v671_v62  ;;  %v677_v7 = vpop.xlane.xlu1 %676  ;;  %v221_v62 = vsub.f32 %v3203_v11, %v3209_v24  ;;  %v233_v50 = vmax.f32 %v225_v29, -60.0 }
 0x12c   :  { %v3252_v2 = vmax.f32 %v3243_v54, %v677_v7  ;;  %v3255_v18 = vld [vmem:[#allocation2 + $0x28] sm:$0xff]  ;;  %v696_v11 = vld [vmem:[#allocation2 + $0x30] sm:$0xff] }
 0x12d   :  { %1074 = vst.msk [vmem:[#allocation2 + $0x8] sm:$0xff] %vm866_vm12, %v699_v1  ;;  %4574 = vst [vmem:[#allocation5_spill] sm:$0xff] %v3255_v18  ;;  %2660 = vset.pattern.permute.xlu1 %v4532_v13  ;;  %v229_v16 = vmax.f32 %v221_v62, -60.0  ;;  %v707_v62 = vsub.f32 %v691_v57, %v699_v1  ;;  %v248_v38 = vmul.f32 1.442695, %v233_v50 }
 0x12e   :  { %1076 = vst.msk [vmem:[#allocation2 + $0x18] sm:$0xff] %vm866_vm12, %v3252_v2  ;;  %755 = vperm.xlu0 %2659, %v3252_v2   ;;  %v674_v10 = vpop.xlane.xlu0 %673  ;;  %745 = vperm.xlu1 %2660, %v699_v1  }
 0x12f   :  { %v700_v31 = vmax.f32 %v692_v3, %v674_v10  ;;  %v683_v41 = vpop.xlane.xlu1 %682  ;;  %v240_v40 = vmul.f32 1.442695, %v229_v16  ;;  %v715_v56 = vmax.f32 %v707_v62, -60.0 }
 0x130   :  { %v3264_v46 = vmax.f32 %v3255_v18, %v683_v41 }
 0x131   :  { %1075 = vst.msk [vmem:[#allocation2 + $0x10] sm:$0xff] %vm866_vm12, %v700_v31  ;;  %2685 = vpow2.f32 %v240_v40  ;;  %v708_v30 = vsub.f32 %v692_v3, %v700_v31  ;;  %v724_v39 = vmul.f32 1.442695, %v715_v56 }
 0x132   :  { %4575 = vst [vmem:[#allocation6_spill] sm:$0xff] %v3264_v46  ;;  %1078 = vst.msk [vmem:[#allocation2 + $0x28] sm:$0xff] %vm866_vm12, %v3264_v46  ;;  %765 = vperm.xlu0 %2659, %v3264_v46   ;;  %v680_v10 = vpop.xlane.xlu0 %679  ;;  %750 = vperm.xlu1 %2660, %v700_v31   ;;  %2687 = vpow2.f32 %v244_v9 }
 0x133   :  { %v702_v41 = vmax.f32 %v694_v4, %v680_v10  ;;  %v3278_v10 = vpop.eup %2681  ;;  %2689 = vpow2.f32 %v248_v38  ;;  %v716_v40 = vmax.f32 %v708_v30, -60.0  ;;  %v1103_v50 = vpop.permute.xlu1 %1102  ;;  %v3307_v38 = vld [vmem:[#allocation2 + $0x38] sm:$0xff] }
 0x134   :  { %v3282_v26 = vpop.eup %2683  ;;  %2691 = vpow2.f32 %v724_v39  ;;  %4583 = vst [vmem:[#allocation14_spill] sm:$0xff] %v3307_v38 }
 0x135   :  { %1077 = vst.msk [vmem:[#allocation2 + $0x20] sm:$0xff] %vm866_vm12, %v702_v41  ;;  %v710_v55 = vsub.f32 %v694_v4, %v702_v41  ;;  %v726_v42 = vmul.f32 1.442695, %v716_v40 }
 0x136   :  { %v686_v24 = vpop.xlane.xlu0 %685  ;;  %760 = vperm.xlu1 %2660, %v702_v41  }
 0x137   :  { %v704_v7 = vmax.f32 %v696_v11, %v686_v24  ;;  %v718_v57 = vmax.f32 %v710_v55, -60.0  ;;  %2693 = vpow2.f32 %v726_v42  ;;  %v2530_v55 = vld [vmem:[%s4527_s0 + $0x2] ss:$0 sm:$0xff] }
 0x139   :  { %1079 = vst.msk [vmem:[#allocation2 + $0x30] sm:$0xff] %vm866_vm12, %v704_v7  ;;  %v712_v1 = vsub.f32 %v696_v11, %v704_v7  ;;  %v730_v3 = vmul.f32 1.442695, %v718_v57 }
 0x13a   :  { %770 = vperm.xlu1 %2660, %v704_v7  }
 0x13b   :  { %v3285_v29 = vpop.eup %2685  ;;  %v720_v31 = vmax.f32 %v712_v1, -60.0  ;;  %2695 = vpow2.f32 %v730_v3  ;;  %v1134_v1 = vadd.f32 %v2530_v55, %v3184_v17 }
 0x13c   :  { %4576 = vst [vmem:[#allocation7_spill] sm:$0xff] %v3285_v29  ;;  %v3288_v16 = vpop.eup %2687 }
 0x13d   :  { %4577 = vst [vmem:[#allocation8_spill] sm:$0xff] %v3288_v16  ;;  %v3291_v24 = vpop.eup %2689  ;;  %v734_v4 = vmul.f32 1.442695, %v720_v31  ;;  %vm1142_vm4 = vcmp.gt.f32.partialorder %v1134_v1, 0.0 }
 0x13e   :  { %2661 = vset.pattern.permute.xlu1 %v4534_v0  ;;  %4578 = vst [vmem:[#allocation9_spill] sm:$0xff] %v3291_v24  ;;  %v3294_v41 = vpop.eup %2691  ;;  %v1098_v40 = vpop.permute.xlu0 %1097 }
 0x13f   :  { %397 = vperm.xlu1 %2661, %v3278_v10   ;;  %4579 = vst [vmem:[#allocation10_spill] sm:$0xff] %v3294_v41  ;;  %2697 = vpow2.f32 %v734_v4  ;;  %v1135_v42 = vadd.f32 %v2530_v55, %v1098_v40  ;;  %v1150_v4 = vmul.f32 0.2, %v1134_v1 }
 0x141   :  { %v3298_v7 = vpop.eup %2693  ;;  %v1151_v31 = vmul.f32 0.2, %v1135_v42  ;;  %vm1143_vm13 = vcmp.gt.f32.partialorder %v1135_v42, 0.0 }
 0x142   :  { %4580 = vst [vmem:[#allocation11_spill] sm:$0xff] %v3298_v7  ;;  %v1113_v57 = vpop.permute.xlu0 %1112 }
 0x143   :  { %407 = vperm.xlu1 %2661, %v3282_v26   ;;  %v1159_v8 = vsel %vm1143_vm13, %v1135_v42, %v1151_v31  ;;  %v3334_v42 = vld [vmem:[%s4527_s0 + $0x3] ss:$0 sm:$0xff] }
 0x144   :  { %v3325_v40 = vsel %vm69_vm6, %v1159_v8, -1e+30 }
 0x145   :  { %v3301_v11 = vpop.eup %2695  ;;  %v1177_v8 = vsel %vm177_vm2, %v3325_v40, -inf }
 0x146   :  { %4581 = vst [vmem:[#allocation12_spill] sm:$0xff] %v3301_v11  ;;  %v1123_v30 = vpop.permute.xlu0 %1122 }
 0x147   :  { %412 = vperm.xlu1 %2661, %v3285_v29  }
 0x149   :  { %v3304_v9 = vpop.eup %2697 }
 0x14a   :  { %4582 = vst [vmem:[#allocation13_spill] sm:$0xff] %v3304_v9 }
 0x14b   :  { %422 = vperm.xlu1 %2661, %v3288_v16  }
 0x14f   :  { %432 = vperm.xlu1 %2661, %v3291_v24  }
 0x153   :  { %2662 = vset.pattern.permute.xlu1 %v4532_v13  ;;  %v1136_v13 = vadd.f32 %v2530_v55, %v1103_v50 }
 0x154   :  { %890 = vperm.xlu1 %2662, %v3294_v41  }
 0x155   :  { %v1152_v41 = vmul.f32 0.2, %v1136_v13  ;;  %vm1144_vm8 = vcmp.gt.f32.partialorder %v1136_v13, 0.0 }
 0x157   :  { %v1160_v24 = vsel %vm1144_vm8, %v1136_v13, %v1152_v41 }
 0x158   :  { %895 = vperm.xlu1 %2662, %v3298_v7   ;;  %v1158_v7 = vsel %vm1142_vm4, %v1134_v1, %v1150_v4  ;;  %v1601_v1 = vpop.permute.xlu0 %1600 }
 0x159   :  { %v1642_v16 = vadd.f32 %v3334_v42, %v1601_v1 }
 0x15b   :  { %v1658_v1 = vmul.f32 0.2, %v1642_v16  ;;  %vm1650_vm8 = vcmp.gt.f32.partialorder %v1642_v16, 0.0 }
 0x15c   :  { %905 = vperm.xlu1 %2662, %v3301_v11  }
 0x160   :  { %915 = vperm.xlu1 %2662, %v3304_v9  }
 0x164   :  { %v689_v62 = vpop.xlane.xlu1 %688  ;;  %2664 = vset.pattern.permute.xlu1 %v4536_v14 }
 0x165   :  { %v3310_v56 = vmax.f32 %v3307_v38, %v689_v62 }
 0x167   :  { %4584 = vst [vmem:[#allocation15_spill] sm:$0xff] %v3310_v56  ;;  %1080 = vst.msk [vmem:[#allocation2 + $0x38] sm:$0xff] %vm866_vm12, %v3310_v56  ;;  %775 = vperm.xlu0 %2659, %v3310_v56  }
 0x168   :  { %v1108_v39 = vpop.permute.xlu1 %1107 }
 0x169   :  { %v1137_v62 = vadd.f32 %v2530_v55, %v1108_v39  ;;  %v3329_v39 = vsel %vm68_vm1, %v1158_v7, -1e+30 }
 0x16a   :  { %v1174_v7 = vsel %vm177_vm2, %v3329_v39, -inf }
 0x16b   :  { %2663 = vset.pattern.permute.xlu0 %v4536_v14  ;;  %v1138_v14 = vadd.f32 %v2530_v55, %v1113_v57  ;;  %v1153_v9 = vmul.f32 0.2, %v1137_v62  ;;  %vm1145_vm5 = vcmp.gt.f32.partialorder %v1137_v62, 0.0  ;;  %v1140_v57 = vadd.f32 %v2530_v55, %v1123_v30 }
 0x16c   :  { %v1118_v3 = vpop.permute.xlu1 %1117 }
 0x16d   :  { %v1139_v11 = vadd.f32 %v2530_v55, %v1118_v3  ;;  %v1154_v50 = vmul.f32 0.2, %v1138_v14  ;;  %v1161_v4 = vsel %vm1145_vm5, %v1137_v62, %v1153_v9  ;;  %vm1146_vm0 = vcmp.gt.f32.partialorder %v1138_v14, 0.0 }
 0x16e   :  { %v3343_v56 = vsel %vm71_vm7, %v1161_v4, -1e+30  ;;  %v1156_v30 = vmul.f32 0.2, %v1140_v57  ;;  %v3347_v9 = vsel %vm70_vm3, %v1160_v24, -1e+30 }
 0x16f   :  { %v1155_v3 = vmul.f32 0.2, %v1139_v11  ;;  %vm1147_vm13 = vcmp.gt.f32.partialorder %v1139_v11, 0.0  ;;  %4585 = vst [vmem:[#allocation16_spill] sm:$0xff] %v3343_v56  ;;  %v1162_v38 = vsel %vm1146_vm0, %v1138_v14, %v1154_v50  ;;  %4586 = vst [vmem:[#allocation17_spill] sm:$0xff] %v3347_v9  ;;  %vm1148_vm4 = vcmp.gt.f32.partialorder %v1140_v57, 0.0 }
 0x170   :  { %v1128_v0 = vpop.permute.xlu1 %1127  ;;  %v1183_v62 = vsel %vm177_vm2, %v3343_v56, -inf  ;;  %v3356_v14 = vsel %vm72_vm9, %v1162_v38, -1e+30  ;;  %v1180_v24 = vsel %vm177_vm2, %v3347_v9, -inf }
 0x171   :  { %v1141_v31 = vadd.f32 %v2530_v55, %v1128_v0  ;;  %v1163_v41 = vsel %vm1147_vm13, %v1139_v11, %v1155_v3  ;;  %v1164_v11 = vsel %vm1148_vm4, %v1140_v57, %v1156_v30  ;;  %v3364_v3 = vpop.permute.xlu0 %1615  ;;  %v1186_v4 = vsel %vm177_vm2, %v3356_v14, -inf }
 0x172   :  { %v3362_v50 = vsel %vm73_vm11, %v1163_v41, -1e+30  ;;  %v1666_v41 = vsel %vm1650_vm8, %v1642_v16, %v1658_v1 }
 0x173   :  { %v1157_v0 = vmul.f32 0.2, %v1141_v31  ;;  %vm1149_vm5 = vcmp.gt.f32.partialorder %v1141_v31, 0.0  ;;  %4587 = vst [vmem:[#allocation18_spill] sm:$0xff] %v3362_v50  ;;  %v1189_v38 = vsel %vm177_vm2, %v3362_v50, -inf }
 0x174   :  { %v1606_v17 = vpop.permute.xlu1 %1605  ;;  %v3384_v30 = vsel %vm68_vm1, %v1666_v41, -1e+30 }
 0x175   :  { %v1643_v55 = vadd.f32 %v3334_v42, %v1606_v17  ;;  %v1165_v17 = vsel %vm1149_vm5, %v1141_v31, %v1157_v0  ;;  %4589 = vst [vmem:[#allocation20_spill] sm:$0xff] %v3384_v30 }
 0x176   :  { %v3378_v57 = vsel %vm75_vm15, %v1165_v17, -1e+30 }
 0x177   :  { %4588 = vst [vmem:[#allocation19_spill] sm:$0xff] %v3378_v57  ;;  %vm1651_vm0 = vcmp.gt.f32.partialorder %v1643_v55, 0.0  ;;  %v1195_v0 = vsel %vm177_vm2, %v3378_v57, -inf }
 0x178   :  { %v3349_v13 = vpop.permute.xlu1 %1610 }
 0x184   :  { %1175 = vmax.xlane.f32.xlu1 %v1174_v7  ;;  %v3370_v7 = vpop.permute.xlu1 %1620 }
 0x186   :  { %1178 = vmax.xlane.f32.xlu0 %v1177_v8  ;;  %v1659_v8 = vmul.f32 0.2, %v1643_v55 }
 0x188   :  { %1184 = vmax.xlane.f32.xlu1 %v1183_v62  ;;  %v3374_v62 = vsel %vm74_vm14, %v1164_v11, -1e+30  ;;  %v1667_v16 = vsel %vm1651_vm0, %v1643_v55, %v1659_v8  ;;  %v3390_v1 = vpop.permute.xlu1 %1630  ;;  %v1682_v11 = vsel %vm177_vm2, %v3384_v30, -inf }
 0x189   :  { %v1192_v31 = vsel %vm177_vm2, %v3374_v62, -inf  ;;  %v3396_v17 = vsel %vm69_vm6, %v1667_v16, -1e+30 }
 0x18a   :  { %1181 = vmax.xlane.f32.xlu0 %v1180_v24  ;;  %v3388_v24 = vpop.permute.xlu0 %1625  ;;  %4590 = vst [vmem:[#allocation21_spill] sm:$0xff] %v3396_v17 }
 0x18c   :  { %1190 = vmax.xlane.f32.xlu1 %v1189_v38 }
 0x18e   :  { %1187 = vmax.xlane.f32.xlu0 %v1186_v4  ;;  %v1685_v4 = vsel %vm177_vm2, %v3396_v17, -inf  ;;  %v3400_v38 = vpop.permute.xlu0 %1635 }
 0x190   :  { %1196 = vmax.xlane.f32.xlu1 %v1195_v0 }
 0x192   :  { %1193 = vmax.xlane.f32.xlu0 %v1192_v31 }
 0x194   :  { %1683 = vmax.xlane.f32.xlu1 %v1682_v11 }
 0x198   :  { %v253_v41 = vpop.permute.xlu1 %252  ;;  %1686 = vmax.xlane.f32.xlu1 %v1685_v4 }
 0x199   :  { %v290_v55 = vsub.f32 %v3036_v43, %v253_v41 }
 0x19b   :  { %v298_v8 = vmax.f32 %v290_v55, -60.0 }
 0x19c   :  { %v263_v31 = vpop.permute.xlu1 %262  ;;  %v258_v0 = vpop.permute.xlu0 %257 }
 0x19d   :  { %v292_v57 = vsub.f32 %v3040_v44, %v263_v31  ;;  %v291_v30 = vsub.f32 %v3055_v58, %v258_v0  ;;  %v306_v50 = vmul.f32 1.442695, %v298_v8 }
 0x19f   :  { %v300_v16 = vmax.f32 %v292_v57, -60.0  ;;  %v299_v56 = vmax.f32 %v291_v30, -60.0  ;;  %2699 = vpow2.f32 %v306_v50 }
 0x1a0   :  { %v273_v11 = vpop.permute.xlu0 %272  ;;  %v268_v29 = vpop.permute.xlu1 %267 }
 0x1a1   :  { %v308_v9 = vmul.f32 1.442695, %v299_v56  ;;  %v294_v17 = vsub.f32 %v3077_v19, %v273_v11  ;;  %v310_v46 = vmul.f32 1.442695, %v300_v16  ;;  %v293_v43 = vsub.f32 %v3059_v59, %v268_v29 }
 0x1a3   :  { %v302_v4 = vmax.f32 %v294_v17, -60.0  ;;  %2701 = vpow2.f32 %v308_v9  ;;  %v301_v41 = vmax.f32 %v293_v43, -60.0 }
 0x1a4   :  { %v283_v55 = vpop.permute.xlu0 %282  ;;  %v278_v44 = vpop.permute.xlu1 %277  ;;  %2703 = vpow2.f32 %v310_v46 }
 0x1a5   :  { %v314_v18 = vmul.f32 1.442695, %v302_v4  ;;  %v296_v58 = vsub.f32 %v3093_v35, %v283_v55  ;;  %v312_v57 = vmul.f32 1.442695, %v301_v41  ;;  %v295_v30 = vsub.f32 %v3082_v20, %v278_v44 }
 0x1a7   :  { %2705 = vpow2.f32 %v314_v18  ;;  %v304_v56 = vmax.f32 %v296_v58, -60.0  ;;  %v303_v19 = vmax.f32 %v295_v30, -60.0 }
 0x1a8   :  { %2707 = vpow2.f32 %v312_v57  ;;  %v288_v8 = vpop.permute.xlu1 %287 }
 0x1a9   :  { %v318_v50 = vmul.f32 1.442695, %v304_v56  ;;  %v741_v31 = vpop.permute.xlu0 %740  ;;  %v316_v59 = vmul.f32 1.442695, %v303_v19  ;;  %v297_v29 = vsub.f32 %v3097_v36, %v288_v8  ;;  %v2700_v17 = vpop.eup %2699 }
 0x1aa   :  { %v778_v9 = vsub.f32 %v3107_v51, %v741_v31  ;;  %v3415_v36 = vmul.f32 %v2700_v17, %v3008_v22 }
 0x1ab   :  { %2709 = vpow2.f32 %v318_v50  ;;  %v305_v35 = vmax.f32 %v297_v29, -60.0 }
 0x1ac   :  { %2711 = vpow2.f32 %v316_v59  ;;  %v786_v46 = vmax.f32 %v778_v9, -60.0 }
 0x1ad   :  { %v756_v0 = vpop.permute.xlu0 %755  ;;  %v2702_v16 = vpop.eup %2701  ;;  %v320_v20 = vmul.f32 1.442695, %v305_v35 }
 0x1ae   :  { %v794_v18 = vmul.f32 1.442695, %v786_v46  ;;  %v746_v11 = vpop.permute.xlu1 %745  ;;  %v781_v43 = vsub.f32 %v3121_v12, %v756_v0  ;;  %v323_v41 = vmul.f32 %v2702_v16, %v3012_v27  ;;  %v2704_v51 = vpop.eup %2703 }
 0x1af   :  { %v779_v4 = vsub.f32 %v3111_v52, %v746_v11  ;;  %2713 = vpow2.f32 %v320_v20  ;;  %v3424_v29 = vmul.f32 %v2704_v51, %v3010_v23 }
 0x1b0   :  { %v789_v55 = vmax.f32 %v781_v43, -60.0  ;;  %2715 = vpow2.f32 %v794_v18  ;;  %v349_v57 = vsel %vm177_vm2, %v323_v41, 0.0  ;;  %v443_v56 = vpack.c.bf16 %v323_v41, %v3415_v36 }
 0x1b1   :  { %v2706_v44 = vpop.eup %2705  ;;  %v787_v58 = vmax.f32 %v779_v4, -60.0  ;;  %v766_v30 = vpop.permute.xlu0 %765  ;;  %350 = vadd.xlane.f32.xlu1 %v349_v57 }
 0x1b2   :  { %v2708_v19 = vpop.eup %2707  ;;  %v800_v12 = vmul.f32 1.442695, %v789_v55  ;;  %v751_v50 = vpop.permute.xlu1 %750  ;;  %v783_v52 = vsub.f32 %v3134_v32, %v766_v30  ;;  %v326_v8 = vmul.f32 %v2706_v44, %v3029_v37  ;;  %2584 = vmatprep.mubr.msk.bf16.mxu0 %vm177_vm2, %v443_v56 }
 0x1b3   :  { %v796_v31 = vmul.f32 1.442695, %v787_v58  ;;  %v780_v59 = vsub.f32 %v3125_v15, %v751_v50  ;;  %v3427_v9 = vmul.f32 %v2708_v19, %v3014_v28 }
 0x1b4   :  { %2717 = vpow2.f32 %v800_v12  ;;  %v791_v17 = vmax.f32 %v783_v52, -60.0  ;;  %v358_v35 = vsel %vm177_vm2, %v326_v8, 0.0 }
 0x1b5   :  { %v2710_v46 = vpop.eup %2709  ;;  %2719 = vpow2.f32 %v796_v31  ;;  %v788_v32 = vmax.f32 %v780_v59, -60.0  ;;  %v444_v0 = vpack.c.bf16 %v3427_v9, %v3424_v29  ;;  %359 = vadd.xlane.f32.xlu1 %v358_v35 }
 0x1b6   :  { %v2712_v16 = vpop.eup %2711  ;;  %v804_v15 = vmul.f32 1.442695, %v791_v17  ;;  %v761_v20 = vpop.permute.xlu1 %760  ;;  %v328_v18 = vmul.f32 %v2710_v46, %v3049_v53 }
 0x1b7   :  { %v798_v11 = vmul.f32 1.442695, %v788_v32  ;;  %v782_v43 = vsub.f32 %v3138_v33, %v761_v20  ;;  %v3435_v4 = vmul.f32 %v2712_v16, %v3042_v45  ;;  %2585 = vmatmul.mubr.msk.bf16.vlgmr.msra.gmra.mrb[0].mxu0 %vm177_vm2, %v444_v0 }
 0x1b8   :  { %2721 = vpow2.f32 %v804_v15  ;;  %v364_v41 = vsel %vm177_vm2, %v328_v18, 0.0 }
 0x1b9   :  { %2723 = vpow2.f32 %v798_v11  ;;  %v790_v51 = vmax.f32 %v782_v43, -60.0  ;;  %v445_v55 = vpack.c.bf16 %v3435_v4, %v326_v8  ;;  %v2714_v44 = vpop.eup %2713  ;;  %365 = vadd.xlane.f32.xlu1 %v364_v41 }
 0x1ba   :  { %v2716_v58 = vpop.eup %2715  ;;  %v3441_v30 = vmul.f32 %v2714_v44, %v3062_v60  ;;  %v771_v11 = vpop.permute.xlu1 %770 }
 0x1bb   :  { %v802_v57 = vmul.f32 1.442695, %v790_v51  ;;  %2588 = vmatprep.mubr.msk.bf16.mxu0 %vm177_vm2, %v445_v55  ;;  %v810_v33 = vmul.f32 %v2716_v58, %v3008_v22  ;;  %v784_v41 = vsub.f32 %v3154_v47, %v771_v11  ;;  %v1645_v47 = vadd.f32 %v3334_v42, %v3364_v3 }
 0x1bc   :  { %v446_v56 = vpack.c.bf16 %v3441_v30, %v328_v18 }
 0x1bd   :  { %2725 = vpow2.f32 %v802_v57  ;;  %v834_v12 = vsel %vm177_vm2, %v810_v33, 0.0  ;;  %v792_v51 = vmax.f32 %v784_v41, -60.0  ;;  %vm1653_vm6 = vcmp.gt.f32.partialorder %v1645_v47, 0.0 }
 0x1be   :  { %v2718_v19 = vpop.eup %2717  ;;  %835 = vadd.xlane.f32.xlu1 %v834_v12  ;;  %v3467_v43 = vpop.permute.xlu1 %397  ;;  %v1644_v12 = vadd.f32 %v3334_v42, %v3349_v13 }
 0x1bf   :  { %v2720_v50 = vpop.eup %2719  ;;  %2589 = vmatmul.mubr.msk.bf16.gmra.mrb[4].mxu0 %vm177_vm2, %v446_v56  ;;  %v813_v52 = vmul.f32 %v2718_v19, %v3014_v28  ;;  %v806_v58 = vmul.f32 1.442695, %v792_v51 }
 0x1c0   :  { %v3450_v8 = vmul.f32 %v2720_v50, %v3012_v27  ;;  %vm1652_vm1 = vcmp.gt.f32.partialorder %v1644_v12, 0.0 }
 0x1c1   :  { %v843_v31 = vsel %vm177_vm2, %v813_v52, 0.0  ;;  %2727 = vpow2.f32 %v806_v58  ;;  %v1648_v58 = vadd.f32 %v3334_v42, %v3390_v1 }
 0x1c2   :  { %v2722_v59 = vpop.eup %2721  ;;  %v931_v17 = vpack.c.bf16 %v3450_v8, %v810_v33  ;;  %844 = vadd.xlane.f32.xlu1 %v843_v31  ;;  %v3470_v55 = vpop.permute.xlu1 %407 }
 0x1c3   :  { %v2724_v35 = vpop.eup %2723  ;;  %v815_v46 = vmul.f32 %v2722_v59, %v3042_v45 }
 0x1c4   :  { %v3456_v32 = vmul.f32 %v2724_v35, %v3010_v23  ;;  %2600 = vmatprep.mubr.msk.bf16.mxu1 %vm177_vm2, %v931_v17  ;;  %v1661_v17 = vmul.f32 0.2, %v1645_v47  ;;  %v1646_v35 = vadd.f32 %v3334_v42, %v3370_v7  ;;  %v1647_v7 = vadd.f32 %v3334_v42, %v3388_v24 }
 0x1c5   :  { %v849_v0 = vsel %vm177_vm2, %v815_v46, 0.0 }
 0x1c6   :  { %v932_v16 = vpack.c.bf16 %v813_v52, %v3456_v32  ;;  %850 = vadd.xlane.f32.xlu1 %v849_v0  ;;  %v3473_v56 = vpop.permute.xlu1 %412  ;;  %v1660_v52 = vmul.f32 0.2, %v1644_v12  ;;  %v1669_v41 = vsel %vm1653_vm6, %v1645_v47, %v1661_v17  ;;  %vm1654_vm13 = vcmp.gt.f32.partialorder %v1646_v35, 0.0 }
 0x1c7   :  { %v2726_v15 = vpop.eup %2725  ;;  %v1664_v47 = vmul.f32 0.2, %v1648_v58 }
 0x1c8   :  { %v3462_v20 = vmul.f32 %v2726_v15, %v3029_v37  ;;  %2601 = vmatmul.mubr.msk.bf16.vlgmr.msra.gmra.mrb[0].mxu1 %vm177_vm2, %v932_v16  ;;  %v1668_v0 = vsel %vm1652_vm1, %v1644_v12, %v1660_v52  ;;  %v1649_v52 = vadd.f32 %v3334_v42, %v3400_v38 }
 0x1c9   :  { %v3493_v15 = vsel %vm70_vm3, %v1668_v0, -1e+30  ;;  %vm1655_vm3 = vcmp.gt.f32.partialorder %v1647_v7, 0.0 }
 0x1ca   :  { %v933_v18 = vpack.c.bf16 %v815_v46, %v3462_v20  ;;  %v3477_v50 = vpop.permute.xlu1 %422  ;;  %4591 = vst [vmem:[#allocation22_spill] sm:$0xff] %v3493_v15  ;;  %v1688_v51 = vsel %vm177_vm2, %v3493_v15, -inf  ;;  %v1665_v17 = vmul.f32 0.2, %v1649_v52 }
 0x1cb   :  { %v2728_v31 = vpop.eup %2727 }
 0x1cc   :  { %2604 = vmatprep.mubr.msk.bf16.mxu1 %vm177_vm2, %v933_v18  ;;  %v3486_v46 = vmul.f32 %v2728_v31, %v3049_v53  ;;  %v1662_v18 = vmul.f32 0.2, %v1646_v35 }
 0x1ce   :  { %v3481_v59 = vpop.permute.xlu1 %432 }
 0x1d3   :  { %v3497_v11 = vpop.permute.xlu1 %890 }
 0x1d4   :  { %4592 = vst [vmem:[#allocation23_spill] sm:$0xff] %v3497_v11 }
 0x1d7   :  { %v3508_v24 = vpop.permute.xlu1 %895 }
 0x1d8   :  { %4593 = vst [vmem:[#allocation24_spill] sm:$0xff] %v3508_v24 }
 0x1e6   :  { %v776_v44 = vpop.permute.xlu0 %775 }
 0x1e7   :  { %v785_v57 = vsub.f32 %v3168_v61, %v776_v44  ;;  %v3504_v44 = vsel %vm71_vm7, %v1669_v41, -1e+30  ;;  %vm1656_vm7 = vcmp.gt.f32.partialorder %v1648_v58, 0.0 }
 0x1e9   :  { %v793_v33 = vmax.f32 %v785_v57, -60.0  ;;  %v1663_v57 = vmul.f32 0.2, %v1647_v7 }
 0x1eb   :  { %v808_v19 = vmul.f32 1.442695, %v793_v33  ;;  %v1670_v33 = vsel %vm1654_vm13, %v1646_v35, %v1662_v18  ;;  %v1671_v31 = vsel %vm1655_vm3, %v1647_v7, %v1663_v57  ;;  %v3524_v35 = vpop.permute.xlu1 %905  ;;  %v3540_v7 = vld [vmem:[#allocation2] sm:$0xff]  ;;  %v3547_v57 = vld [vmem:[#allocation2 + $0x8] sm:$0xff] }
 0x1ec   :  { %v3514_v12 = vsel %vm72_vm9, %v1670_v33, -1e+30  ;;  %4596 = vst [vmem:[#allocation27_spill] sm:$0xff] %v3524_v35  ;;  %vm1657_vm9 = vcmp.gt.f32.partialorder %v1649_v52, 0.0  ;;  %4600 = vst [vmem:[#allocation31_spill] sm:$0xff] %v3547_v57  ;;  %v3596_v35 = vld [vmem:[#allocation2 + $0x30] sm:$0xff] }
 0x1ed   :  { %2729 = vpow2.f32 %v808_v19  ;;  %v1691_v19 = vsel %vm177_vm2, %v3504_v44, -inf  ;;  %4594 = vst [vmem:[#allocation25_spill] sm:$0xff] %v3514_v12  ;;  %v1694_v1 = vsel %vm177_vm2, %v3514_v12, -inf  ;;  %v1673_v38 = vsel %vm1657_vm9, %v1649_v52, %v1665_v17 }
 0x1ee   :  { %v3538_v18 = vsel %vm75_vm15, %v1673_v38, -1e+30  ;;  %vm556_vm15 = vcmask 261120  }
 0x1ef   :  { %4599 = vst [vmem:[#allocation30_spill] sm:$0xff] %v3538_v18 }
 0x1f7   :  { %v2730_v61 = vpop.eup %2729 }
 0x1f8   :  { %v817_v13 = vmul.f32 %v2730_v61, %v3062_v60  ;;  %v3522_v61 = vsel %vm73_vm11, %v1671_v31, -1e+30  ;;  %vm1374_vm11 = vcmask 23568   ;;  %v3561_v31 = vld [vmem:[#allocation2 + $0x18] sm:$0xff] }
 0x1f9   :  { %4595 = vst [vmem:[#allocation26_spill] sm:$0xff] %v3522_v61  ;;  %v1697_v0 = vsel %vm177_vm2, %v3522_v61, -inf  ;;  %v4607_v61 = vmov 3  }
 0x1fa   :  { %v855_v16 = vsel %vm177_vm2, %v817_v13, 0.0  ;;  %v934_v3 = vpack.c.bf16 %v817_v13, %v3486_v46  ;;  %v1672_v13 = vsel %vm1656_vm7, %v1648_v58, %v1664_v47  ;;  %v3591_v47 = vld [vmem:[#allocation2 + $0x38] sm:$0xff] }
 0x1fb   :  { %856 = vadd.xlane.f32.xlu1 %v855_v16  ;;  %v3530_v42 = vsel %vm74_vm14, %v1672_v13, -1e+30  ;;  %v3532_v16 = vpop.permute.xlu1 %915  ;;  %v3566_v13 = vld [vmem:[#allocation2 + $0x10] sm:$0xff]  ;;  %vm1882_vm14 = vcmask 31768  }
 0x1fc   :  { %2605 = vmatmul.mubr.msk.bf16.gmra.mrb[4].mxu1 %vm177_vm2, %v934_v3  ;;  %4597 = vst [vmem:[#allocation28_spill] sm:$0xff] %v3530_v42  ;;  %4598 = vst [vmem:[#allocation29_spill] sm:$0xff] %v3532_v16  ;;  %v1700_v3 = vsel %vm177_vm2, %v3530_v42, -inf }
 0x1ff   :  { %1689 = vmax.xlane.f32.xlu1 %v1688_v51  ;;  %v1703_v51 = vsel %vm177_vm2, %v3538_v18, -inf }
 0x203   :  { %1692 = vmax.xlane.f32.xlu1 %v1691_v19 }
 0x207   :  { %1695 = vmax.xlane.f32.xlu1 %v1694_v1 }
 0x20b   :  { %1698 = vmax.xlane.f32.xlu1 %v1697_v0 }
 0x20f   :  { %1701 = vmax.xlane.f32.xlu1 %v1700_v3  ;;  %v3575_v3 = vld [vmem:[#allocation2 + $0x28] sm:$0xff] }
 0x211   :  { %v1176_v41 = vpop.xlane.xlu1 %1175 }
 0x212   :  { %v3545_v58 = vmax.f32 %v3540_v7, %v1176_v41 }
 0x213   :  { %1704 = vmax.xlane.f32.xlu1 %v1703_v51  ;;  %v1179_v33 = vpop.xlane.xlu0 %1178 }
 0x214   :  { %v3550_v19 = vmax.f32 %v3547_v57, %v1179_v33  ;;  %1581 = vst.msk [vmem:[#allocation2] sm:$0xff] %vm1374_vm11, %v3545_v58  ;;  %1248 = vperm.xlu0 %2663, %v3545_v58   ;;  %v3580_v33 = vld [vmem:[#allocation2 + $0x20] sm:$0xff] }
 0x215   :  { %v1185_v1 = vpop.xlane.xlu1 %1184 }
 0x216   :  { %4601 = vst [vmem:[#allocation32_spill] sm:$0xff] %v3550_v19  ;;  %1582 = vst.msk [vmem:[#allocation2 + $0x8] sm:$0xff] %vm1374_vm11, %v3550_v19  ;;  %v3564_v17 = vmax.f32 %v3561_v31, %v1185_v1 }
 0x217   :  { %v1182_v0 = vpop.xlane.xlu0 %1181 }
 0x218   :  { %v3569_v38 = vmax.f32 %v3566_v13, %v1182_v0  ;;  %1584 = vst.msk [vmem:[#allocation2 + $0x18] sm:$0xff] %vm1374_vm11, %v3564_v17 }
 0x219   :  { %v1191_v41 = vpop.xlane.xlu1 %1190 }
 0x21a   :  { %1583 = vst.msk [vmem:[#allocation2 + $0x10] sm:$0xff] %vm1374_vm11, %v3569_v38  ;;  %v3578_v51 = vmax.f32 %v3575_v3, %v1191_v41 }
 0x21b   :  { %v1188_v1 = vpop.xlane.xlu0 %1187  ;;  %v3607_v24 = vld [vmem:[#allocation2] sm:$0xff] }
 0x21c   :  { %v3583_v52 = vmax.f32 %v3580_v33, %v1188_v1  ;;  %1586 = vst.msk [vmem:[#allocation2 + $0x28] sm:$0xff] %vm1374_vm11, %v3578_v51  ;;  %4602 = vst [vmem:[#allocation33_spill] sm:$0xff] %v3607_v24 }
 0x21d   :  { %v1197_v16 = vpop.xlane.xlu1 %1196  ;;  %v3617_v0 = vld [vmem:[#allocation2 + $0x8] sm:$0xff] }
 0x21e   :  { %1585 = vst.msk [vmem:[#allocation2 + $0x20] sm:$0xff] %vm1374_vm11, %v3583_v52  ;;  %v3594_v41 = vmax.f32 %v3591_v47, %v1197_v16  ;;  %4604 = vst [vmem:[#allocation35_spill] sm:$0xff] %v3617_v0 }
 0x21f   :  { %v1194_v11 = vpop.xlane.xlu0 %1193 }
 0x220   :  { %v3599_v1 = vmax.f32 %v3596_v35, %v1194_v11  ;;  %1588 = vst.msk [vmem:[#allocation2 + $0x38] sm:$0xff] %vm1374_vm11, %v3594_v41 }
 0x221   :  { %v1684_v16 = vpop.xlane.xlu1 %1683 }
 0x222   :  { %1587 = vst.msk [vmem:[#allocation2 + $0x30] sm:$0xff] %vm1374_vm11, %v3599_v1  ;;  %v3610_v57 = vmax.f32 %v3607_v24, %v1684_v16  ;;  %v4605_v16 = vsub.f32 %v3186_v63, %v3192_v6  ;;  %v4606_v24 = vsub.f32 %v3195_v5, %v3206_v21  ;;  %v346_v63 = vsel %vm177_vm2, %v3415_v36, 0.0  ;;  %v3642_v5 = vld [vmem:[%s4525_s2] sm:$0xff]   ;;  %v331_v36 = vld [vmem:[#allocation3 + $0x8] sm:$0xff] }
 0x223   :  { %v352_v21 = vsel %vm177_vm2, %v3424_v29, 0.0 }
 0x224   :  { %4603 = vst [vmem:[#allocation34_spill] sm:$0xff] %v3610_v57  ;;  %1253 = vperm.xlu1 %2664, %v3550_v19   ;;  %2089 = vst.msk [vmem:[#allocation2] sm:$0xff] %vm1882_vm14, %v3610_v57  ;;  %v227_v12 = vmax.f32 %v4605_v16, -60.0  ;;  %v230_v19 = vmax.f32 %v4606_v24, -60.0 }
 0x225   :  { %v1687_v18 = vpop.xlane.xlu1 %1686 }
 0x226   :  { %v3620_v42 = vmax.f32 %v3617_v0, %v1687_v18  ;;  %v236_v11 = vmul.f32 1.442695, %v227_v12  ;;  %v242_v18 = vmul.f32 1.442695, %v230_v19  ;;  %v4608_v0 = vsub.f32 %v3211_v25, %v3224_v34 }
 0x227   :  { %v355_v34 = vsel %vm177_vm2, %v3427_v9, 0.0  ;;  %v361_v19 = vsel %vm177_vm2, %v3435_v4, 0.0 }
 0x228   :  { %1268 = vperm.xlu1 %2664, %v3583_v52   ;;  %2090 = vst.msk [vmem:[#allocation2 + $0x8] sm:$0xff] %vm1882_vm14, %v3620_v42  ;;  %2731 = vpow2.f32 %v236_v11  ;;  %v232_v15 = vmax.f32 %v4608_v0, -60.0  ;;  %v334_v0 = vld [vmem:[#allocation3 + $0x20] sm:$0xff] }
 0x229   :  { %2733 = vpow2.f32 %v242_v18  ;;  %v367_v18 = vsel %vm177_vm2, %v3441_v30, 0.0  ;;  %v846_v30 = vsel %vm177_vm2, %v3462_v20, 0.0 }
 0x22a   :  { %v246_v6 = vmul.f32 1.442695, %v232_v15 }
 0x22c   :  { %1278 = vperm.xlu1 %2664, %v3599_v1   ;;  %2735 = vpow2.f32 %v246_v6 }
 0x230   :  { %2665 = vset.pattern.permute.xlu1 %v4607_v61 }
 0x231   :  { %1756 = vperm.xlu1 %2665, %v3610_v57   ;;  %v3771_v57 = vld [vmem:[#allocation2 + $0x38] sm:$0xff] }
 0x232   :  { %v3648_v25 = vpop.eup %2731  ;;  %4619 = vst [vmem:[#allocation46_spill] sm:$0xff] %v3771_v57 }
 0x233   :  { %347 = vadd.xlane.f32.xlu0 %v346_v63  ;;  %4609 = vst [vmem:[#allocation36_spill] sm:$0xff] %v3648_v25  ;;  %v339_v15 = vmul.f32 %v3648_v25, %v331_v36  ;;  %v3653_v24 = vpop.eup %2733  ;;  %v336_v63 = vld [vmem:[#allocation3 + $0x30] sm:$0xff] }
 0x234   :  { %4610 = vst [vmem:[#allocation37_spill] sm:$0xff] %v3653_v24  ;;  %v342_v29 = vmul.f32 %v3653_v24, %v334_v0 }
 0x235   :  { %1443 = vrot.lane.b32.xlu1 %v3642_v5, %s2886_s29 }
 0x236   :  { %v3659_v16 = vpop.eup %2735 }
 0x237   :  { %353 = vadd.xlane.f32.xlu0 %v352_v21  ;;  %4611 = vst [vmem:[#allocation38_spill] sm:$0xff] %v3659_v16  ;;  %v344_v4 = vmul.f32 %v3659_v16, %v336_v63 }
 0x23b   :  { %356 = vadd.xlane.f32.xlu0 %v355_v34  ;;  %v837_v34 = vsel %vm177_vm2, %v3450_v8, 0.0 }
 0x23e   :  { %v351_v12 = vpop.xlane.xlu1 %350 }
 0x23f   :  { %v371_v11 = vadd.f32 %v351_v12, %v339_v15  ;;  %362 = vadd.xlane.f32.xlu0 %v361_v19  ;;  %v840_v15 = vsel %vm177_vm2, %v3456_v32, 0.0  ;;  %v852_v12 = vsel %vm177_vm2, %v3486_v46, 0.0  ;;  %v2874_v19 = vld [vmem:[#allocation4] sm:$0xff] }
 0x240   :  { %v437_v0 = vmul.f32 %v2874_v19, %v3470_v55 }
 0x241   :  { %380 = vst.msk [vmem:[#allocation3 + $0x8] sm:$0xff] %vm378_vm10, %v371_v11  ;;  %v435_v11 = vmul.f32 %v2874_v19, %v3467_v43  ;;  %v3758_v43 = vld [vmem:[#allocation2 + $0x30] sm:$0xff] }
 0x242   :  { %v360_v9 = vpop.xlane.xlu1 %359  ;;  %4617 = vst [vmem:[#allocation44_spill] sm:$0xff] %v3758_v43 }
 0x243   :  { %v374_v6 = vadd.f32 %v360_v9, %v342_v29  ;;  %368 = vadd.xlane.f32.xlu0 %v367_v18  ;;  %v438_v9 = vmul.f32 %v2874_v19, %v3473_v56  ;;  %v3706_v56 = vld [vmem:[#allocation2 + $0x18] sm:$0xff] }
 0x245   :  { %383 = vst.msk [vmem:[#allocation3 + $0x20] sm:$0xff] %vm378_vm10, %v374_v6 }
 0x246   :  { %v366_v21 = vpop.xlane.xlu1 %365 }
 0x247   :  { %v376_v36 = vadd.f32 %v366_v21, %v344_v4  ;;  %838 = vadd.xlane.f32.xlu0 %v837_v34  ;;  %v3691_v34 = vld [vmem:[#allocation2 + $0x10] sm:$0xff] }
 0x249   :  { %385 = vst.msk [vmem:[#allocation3 + $0x30] sm:$0xff] %vm378_vm10, %v376_v36 }
 0x24b   :  { %841 = vadd.xlane.f32.xlu0 %v840_v15  ;;  %v3678_v8 = vpop.xlane.xlu1 %835 }
 0x24f   :  { %847 = vadd.xlane.f32.xlu0 %v846_v30  ;;  %v3682_v32 = vpop.xlane.xlu1 %844 }
 0x253   :  { %853 = vadd.xlane.f32.xlu0 %v852_v12  ;;  %v3684_v20 = vpop.xlane.xlu1 %850 }
 0x269   :  { %1258 = vperm.xlu0 %2663, %v3569_v38  }
 0x26d   :  { %1263 = vperm.xlu0 %2663, %v3564_v17  }
 0x271   :  { %1273 = vperm.xlu0 %2663, %v3578_v51  }
 0x275   :  { %1283 = vperm.xlu0 %2663, %v3594_v41  }
 0x279   :  { %2666 = vset.pattern.permute.xlu0 %v4607_v61 }
 0x27a   :  { %1761 = vperm.xlu0 %2666, %v3620_v42  }
 0x288   :  { %v3686_v46 = vpop.xlane.xlu1 %856 }
 0x28a   :  { %v2586_v29 = vpop.f32.mrb[0].mxu0 }
 0x28b   :  { %v550_v18 = vadd.f32 %v2586_v29, %v437_v0  ;;  %v517_v63 = vpop.f32.mrb[1].mxu0 }
 0x28c   :  { %v548_v6 = vadd.f32 %v517_v63, %v435_v11  ;;  %v2587_v4 = vpop.f32.mrb[2].mxu0  ;;  %v1690_v21 = vpop.xlane.xlu1 %1689  ;;  %v442_v11 = vmul.f32 %v2874_v19, %v3481_v59  ;;  %v440_v63 = vmul.f32 %v2874_v19, %v3477_v50  ;;  %v3738_v50 = vld [vmem:[#allocation2 + $0x28] sm:$0xff] }
 0x28d   :  { %559 = vst.msk [vmem:[#allocation4 + $0x10] sm:$0xff] %vm556_vm15, %v550_v18  ;;  %v551_v36 = vadd.f32 %v2587_v4, %v438_v9  ;;  %v3694_v15 = vpop.f32.mrb[3].mxu0  ;;  %v3697_v55 = vmax.f32 %v3691_v34, %v1690_v21  ;;  %v2875_v18 = vld [vmem:[%s4525_s2 + $0x8] sm:$0xff]   ;;  %4615 = vst [vmem:[#allocation42_spill] sm:$0xff] %v3738_v50 }
 0x28e   :  { %4612 = vst [vmem:[#allocation39_spill] sm:$0xff] %v3694_v15  ;;  %557 = vst.msk [vmem:[#allocation4] sm:$0xff] %vm556_vm15, %v548_v6  ;;  %v4621_v15 = vmov 2  }
 0x28f   :  { %560 = vst.msk [vmem:[#allocation4 + $0x18] sm:$0xff] %vm556_vm15, %v551_v36  ;;  %1766 = vperm.xlu1 %2665, %v3697_v55   ;;  %v3726_v36 = vld [vmem:[#allocation2 + $0x20] sm:$0xff] }
 0x290   :  { %2091 = vst.msk [vmem:[#allocation2 + $0x10] sm:$0xff] %vm1882_vm14, %v3697_v55  ;;  %v1693_v30 = vpop.xlane.xlu1 %1692 }
 0x291   :  { %v3709_v12 = vmax.f32 %v3706_v56, %v1693_v30 }
 0x292   :  { %v3711_v0 = vpop.f32.mrb[4].mxu0 }
 0x293   :  { %4613 = vst [vmem:[#allocation40_spill] sm:$0xff] %v3711_v0  ;;  %2092 = vst.msk [vmem:[#allocation2 + $0x18] sm:$0xff] %vm1882_vm14, %v3709_v12  ;;  %v3718_v9 = vpop.f32.mrb[5].mxu0  ;;  %1771 = vperm.xlu0 %2666, %v3709_v12   ;;  %1445 = vrot.lane.b32.xlu1 %v2875_v18, %s2886_s29 }
 0x294   :  { %4614 = vst [vmem:[#allocation41_spill] sm:$0xff] %v3718_v9  ;;  %v2591_v6 = vpop.f32.mrb[6].mxu0  ;;  %v1696_v21 = vpop.xlane.xlu1 %1695 }
 0x295   :  { %v555_v59 = vadd.f32 %v2591_v6, %v442_v11  ;;  %v536_v4 = vpop.f32.mrb[7].mxu0  ;;  %v3729_v29 = vmax.f32 %v3726_v36, %v1696_v21  ;;  %v2876_v21 = vld [vmem:[%s4525_s2 + $0x10] sm:$0xff]  }
 0x296   :  { %v553_v30 = vadd.f32 %v536_v4, %v440_v63  ;;  %v1249_v63 = vpop.permute.xlu0 %1248 }
 0x297   :  { %564 = vst.msk [vmem:[#allocation4 + $0x38] sm:$0xff] %vm556_vm15, %v555_v59  ;;  %1776 = vperm.xlu0 %2666, %v3729_v29   ;;  %v1286_v59 = vsub.f32 %v3329_v39, %v1249_v63  ;;  %v2877_v63 = vld [vmem:[%s4525_s2 + $0x18] sm:$0xff]  }
 0x298   :  { %562 = vst.msk [vmem:[#allocation4 + $0x28] sm:$0xff] %vm556_vm15, %v553_v30  ;;  %v1699_v19 = vpop.xlane.xlu1 %1698 }
 0x299   :  { %2093 = vst.msk [vmem:[#allocation2 + $0x20] sm:$0xff] %vm1882_vm14, %v3729_v29  ;;  %v3741_v11 = vmax.f32 %v3738_v50, %v1699_v19  ;;  %v1294_v24 = vmax.f32 %v1286_v59, -60.0  ;;  %v330_v50 = vld [vmem:[#allocation3] sm:$0xff] }
 0x29b   :  { %4616 = vst [vmem:[#allocation43_spill] sm:$0xff] %v3741_v11  ;;  %v3743_v6 = vpop.f32.mrb[0].mxu1  ;;  %2094 = vst.msk [vmem:[#allocation2 + $0x28] sm:$0xff] %vm1882_vm14, %v3741_v11  ;;  %1781 = vperm.xlu1 %2665, %v3741_v11   ;;  %1447 = vrot.lane.b32.xlu0 %v2876_v21, %s2886_s29  ;;  %v1302_v59 = vmul.f32 1.442695, %v1294_v24 }
 0x29c   :  { %v3749_v4 = vpop.f32.mrb[1].mxu1  ;;  %v1702_v19 = vpop.xlane.xlu1 %1701 }
 0x29d   :  { %v3756_v30 = vpop.f32.mrb[2].mxu1  ;;  %v3762_v0 = vmax.f32 %v3758_v43, %v1702_v19  ;;  %2737 = vpow2.f32 %v1302_v59 }
 0x29e   :  { %v3764_v9 = vpop.f32.mrb[3].mxu1 }
 0x29f   :  { %4618 = vst [vmem:[#allocation45_spill] sm:$0xff] %v3762_v0  ;;  %2095 = vst.msk [vmem:[#allocation2 + $0x30] sm:$0xff] %vm1882_vm14, %v3762_v0  ;;  %1786 = vperm.xlu1 %2665, %v3762_v0  }
 0x2a0   :  { %v1705_v16 = vpop.xlane.xlu1 %1704 }
 0x2a1   :  { %v3774_v11 = vmax.f32 %v3771_v57, %v1705_v16 }
 0x2a3   :  { %4620 = vst [vmem:[#allocation47_spill] sm:$0xff] %v3774_v11  ;;  %2096 = vst.msk [vmem:[#allocation2 + $0x38] sm:$0xff] %vm1882_vm14, %v3774_v11  ;;  %1791 = vperm.xlu0 %2666, %v3774_v11   ;;  %1449 = vrot.lane.b32.xlu1 %v2877_v63, %s2886_s29  ;;  %v4622_v11 = vmov 0  }
 0x2a4   :  { %v1254_v19 = vpop.permute.xlu1 %1253  ;;  %2667 = vset.pattern.permute.xlu1 %v4621_v15 }
 0x2a5   :  { %v1287_v16 = vsub.f32 %v3325_v40, %v1254_v19 }
 0x2a7   :  { %v1295_v0 = vmax.f32 %v1287_v16, -60.0  ;;  %1951 = vrot.lane.b32.xlu0 %v3642_v5, %s2887_s11  ;;  %1953 = vrot.lane.b32.xlu1 %v2875_v18, %s2887_s11  ;;  %v2738_v40 = vpop.eup %2737 }
 0x2a8   :  { %v1269_v39 = vpop.permute.xlu1 %1268  ;;  %2668 = vset.pattern.permute.xlu0 %v4622_v11  ;;  %v1318_v18 = vmul.f32 %v2738_v40, %v3008_v22  ;;  %v4624_v40 = vsub.f32 %v3243_v54, %v3252_v2  ;;  %v4628_v54 = vld [vmem:[#allocation7_spill] sm:$0xff] }
 0x2a9   :  { %v1304_v57 = vmul.f32 1.442695, %v1295_v0  ;;  %v1290_v5 = vsub.f32 %v3356_v14, %v1269_v39  ;;  %v338_v39 = vmul.f32 %v3278_v10, %v330_v50 }
 0x2ab   :  { %2739 = vpow2.f32 %v1304_v57  ;;  %1955 = vrot.lane.b32.xlu0 %v2876_v21, %s2887_s11  ;;  %1957 = vrot.lane.b32.xlu1 %v2877_v63, %s2887_s11  ;;  %v4623_v57 = vsub.f32 %v3236_v48, %v3239_v49  ;;  %v1298_v63 = vmax.f32 %v1290_v5, -60.0  ;;  %v332_v48 = vld [vmem:[#allocation3 + $0x10] sm:$0xff] }
 0x2ac   :  { %v1279_v24 = vpop.permute.xlu1 %1278 }
 0x2ad   :  { %v714_v0 = vmax.f32 %v4623_v57, -60.0  ;;  %v1292_v59 = vsub.f32 %v3374_v62, %v1279_v24  ;;  %v1310_v25 = vmul.f32 1.442695, %v1298_v63  ;;  %v340_v62 = vmul.f32 %v3282_v26, %v332_v48  ;;  %v4625_v57 = vld [vmem:[#allocation5_spill] sm:$0xff] }
 0x2ae   :  { %v1342_v48 = vsel %vm177_vm2, %v1318_v18, 0.0 }
 0x2af   :  { %v722_v43 = vmul.f32 1.442695, %v714_v0  ;;  %v1300_v14 = vmax.f32 %v1292_v59, -60.0  ;;  %v4626_v0 = vld [vmem:[#allocation6_spill] sm:$0xff] }
 0x2b0   :  { %v3793_v15 = vpop.permute.xlu1 %1756  ;;  %v4629_v59 = vld [vmem:[#allocation14_spill] sm:$0xff] }
 0x2b1   :  { %2741 = vpow2.f32 %v722_v43  ;;  %v1314_v49 = vmul.f32 1.442695, %v1300_v14  ;;  %v333_v43 = vld [vmem:[#allocation3 + $0x18] sm:$0xff]  ;;  %v4630_v14 = vld [vmem:[#allocation15_spill] sm:$0xff] }
 0x2b2   :  { %2743 = vpow2.f32 %v1310_v25  ;;  %v341_v2 = vmul.f32 %v4628_v54, %v333_v43 }
 0x2b3   :  { %2745 = vpow2.f32 %v1314_v49 }
 0x2b4   :  { %v1444_v19 = vpop.permute.xlu1 %1443 }
 0x2b5   :  { %v2740_v16 = vpop.eup %2739  ;;  %2608 = vmatprep.subr.bf16.mxu0 %v1444_v19 }
 0x2b6   :  { %v1319_v11 = vmul.f32 %v2740_v16, %v3012_v27  ;;  %2609 = vmatpush3.bf16.msra.mxu0 %v1444_v19  ;;  %v717_v19 = vmax.f32 %v4624_v40, -60.0 }
 0x2b8   :  { %v1439_v21 = vpack.c.bf16 %v1319_v11, %v1318_v18  ;;  %v728_v24 = vmul.f32 1.442695, %v717_v19  ;;  %v335_v19 = vld [vmem:[#allocation3 + $0x28] sm:$0xff]  ;;  %v1345_v18 = vsel %vm177_vm2, %v1319_v11, 0.0 }
 0x2ba   :  { %2616 = vmatprep.mubr.msk.bf16.mxu0 %vm177_vm2, %v1439_v21  ;;  %v4627_v21 = vsub.f32 %v4625_v57, %v4626_v0  ;;  %2747 = vpow2.f32 %v728_v24  ;;  %v4632_v57 = vld [vmem:[#allocation8_spill] sm:$0xff] }
 0x2bb   :  { %v343_v0 = vmul.f32 %v4632_v57, %v335_v19  ;;  %v4634_v57 = vld [vmem:[#allocation10_spill] sm:$0xff] }
 0x2bc   :  { %v719_v63 = vmax.f32 %v4627_v21, -60.0 }
 0x2be   :  { %v732_v25 = vmul.f32 1.442695, %v719_v63 }
 0x2c0   :  { %v348_v16 = vpop.xlane.xlu0 %347  ;;  %2749 = vpow2.f32 %v732_v25  ;;  %v4633_v25 = vld [vmem:[#allocation9_spill] sm:$0xff] }
 0x2c1   :  { %v370_v5 = vadd.f32 %v348_v16, %v338_v39  ;;  %v4631_v39 = vsub.f32 %v4629_v59, %v4630_v14 }
 0x2c3   :  { %379 = vst.msk [vmem:[#allocation3] sm:$0xff] %vm378_vm10, %v370_v5  ;;  %v721_v40 = vmax.f32 %v4631_v39, -60.0  ;;  %v3818_v5 = vpop.eup %2741 }
 0x2c4   :  { %v354_v10 = vpop.xlane.xlu0 %353 }
 0x2c5   :  { %v372_v50 = vadd.f32 %v354_v10, %v340_v62  ;;  %v2744_v62 = vpop.eup %2743  ;;  %v736_v21 = vmul.f32 1.442695, %v721_v40  ;;  %v337_v10 = vld [vmem:[#allocation3 + $0x38] sm:$0xff] }
 0x2c6   :  { %v2746_v59 = vpop.eup %2745  ;;  %v345_v39 = vmul.f32 %v4633_v25, %v337_v10 }
 0x2c7   :  { %381 = vst.msk [vmem:[#allocation3 + $0x10] sm:$0xff] %vm378_vm10, %v372_v50  ;;  %2751 = vpow2.f32 %v736_v21  ;;  %v4635_v21 = vsub.f32 %v3540_v7, %v3545_v58 }
 0x2c8   :  { %v357_v26 = vpop.xlane.xlu0 %356 }
 0x2c9   :  { %v373_v16 = vadd.f32 %v357_v26, %v341_v2  ;;  %v3828_v2 = vmul.f32 %v2744_v62, %v3029_v37  ;;  %v819_v26 = vld [vmem:[#allocation3 + $0x8] sm:$0xff] }
 0x2ca   :  { %1343 = vadd.xlane.f32.xlu0 %v1342_v48  ;;  %v818_v49 = vld [vmem:[#allocation3] sm:$0xff] }
 0x2cb   :  { %382 = vst.msk [vmem:[#allocation3 + $0x18] sm:$0xff] %vm378_vm10, %v373_v16  ;;  %v826_v24 = vmul.f32 %v3818_v5, %v818_v49  ;;  %v3839_v16 = vpop.eup %2747  ;;  %v1354_v48 = vsel %vm177_vm2, %v3828_v2, 0.0  ;;  %v3844_v49 = vmul.f32 %v2746_v59, %v3049_v53 }
 0x2cc   :  { %v363_v63 = vpop.xlane.xlu0 %362  ;;  %v3855_v25 = vpop.eup %2749 }
 0x2cd   :  { %v375_v43 = vadd.f32 %v363_v63, %v343_v0  ;;  %v858_v50 = vadd.f32 %v3678_v8, %v826_v24  ;;  %v827_v0 = vmul.f32 %v4634_v57, %v819_v26  ;;  %v1222_v63 = vmax.f32 %v4635_v21, -60.0  ;;  %v4636_v26 = vld [vmem:[#allocation11_spill] sm:$0xff]  ;;  %v4637_v21 = vld [vmem:[#allocation12_spill] sm:$0xff] }
 0x2cf   :  { %v3824_v54 = vpop.f32.mrb[4].mxu1  ;;  %384 = vst.msk [vmem:[#allocation3 + $0x28] sm:$0xff] %vm378_vm10, %v375_v43  ;;  %1346 = vadd.xlane.f32.xlu1 %v1345_v18  ;;  %v820_v43 = vld [vmem:[#allocation3 + $0x10] sm:$0xff] }
 0x2d0   :  { %v3831_v14 = vpop.f32.mrb[5].mxu1  ;;  %867 = vst.msk [vmem:[#allocation3] sm:$0xff] %vm866_vm12, %v858_v50  ;;  %v369_v40 = vpop.xlane.xlu0 %368  ;;  %v1216_v50 = vsub.f32 %v3566_v13, %v3569_v38  ;;  %v828_v7 = vmul.f32 %v4636_v26, %v820_v43  ;;  %v822_v38 = vld [vmem:[#allocation3 + $0x20] sm:$0xff] }
 0x2d1   :  { %v3835_v8 = vpop.f32.mrb[6].mxu1  ;;  %v377_v19 = vadd.f32 %v369_v40, %v345_v39  ;;  %v1360_v39 = vsel %vm177_vm2, %v3844_v49, 0.0 }
 0x2d2   :  { %v3837_v11 = vpop.f32.mrb[7].mxu1  ;;  %v821_v62 = vld [vmem:[#allocation3 + $0x18] sm:$0xff] }
 0x2d3   :  { %386 = vst.msk [vmem:[#allocation3 + $0x38] sm:$0xff] %vm378_vm10, %v377_v19  ;;  %1355 = vadd.xlane.f32.xlu1 %v1354_v48  ;;  %v829_v24 = vmul.f32 %v3839_v16, %v821_v62  ;;  %v1230_v19 = vmul.f32 1.442695, %v1222_v63  ;;  %v1224_v48 = vmax.f32 %v1216_v50, -60.0  ;;  %vm1064_vm10 = vcmask 523520  }
 0x2d4   :  { %v839_v10 = vpop.xlane.xlu0 %838 }
 0x2d5   :  { %v859_v18 = vadd.f32 %v839_v10, %v827_v0  ;;  %v861_v59 = vadd.f32 %v3682_v32, %v829_v24  ;;  %v1217_v32 = vsub.f32 %v3561_v31, %v3564_v17  ;;  %v3866_v0 = vpop.eup %2751  ;;  %v830_v10 = vmul.f32 %v4637_v21, %v822_v38 }
 0x2d6   :  { %v823_v40 = vld [vmem:[#allocation3 + $0x28] sm:$0xff]  ;;  %2753 = vpow2.f32 %v1230_v19  ;;  %v1234_v31 = vmul.f32 1.442695, %v1224_v48 }
 0x2d7   :  { %868 = vst.msk [vmem:[#allocation3 + $0x8] sm:$0xff] %vm866_vm12, %v859_v18  ;;  %1361 = vadd.xlane.f32.xlu1 %v1360_v39  ;;  %870 = vst.msk [vmem:[#allocation3 + $0x18] sm:$0xff] %vm866_vm12, %v861_v59  ;;  %v831_v58 = vmul.f32 %v3855_v25, %v823_v40  ;;  %v824_v18 = vld [vmem:[#allocation3 + $0x30] sm:$0xff]  ;;  %v1225_v59 = vmax.f32 %v1217_v32, -60.0  ;;  %v1219_v40 = vsub.f32 %v3575_v3, %v3578_v51 }
 0x2d8   :  { %v842_v13 = vpop.xlane.xlu0 %841  ;;  %2755 = vpow2.f32 %v1234_v31  ;;  %v1221_v3 = vsub.f32 %v3591_v47, %v3594_v41 }
 0x2d9   :  { %v860_v62 = vadd.f32 %v842_v13, %v828_v7  ;;  %v863_v57 = vadd.f32 %v3684_v20, %v831_v58  ;;  %v4638_v20 = vld [vmem:[#allocation13_spill] sm:$0xff]  ;;  %v1236_v7 = vmul.f32 1.442695, %v1225_v59  ;;  %v4639_v58 = vsub.f32 %v3580_v33, %v3583_v52  ;;  %v4642_v59 = vld [vmem:[#allocation16_spill] sm:$0xff] }
 0x2da   :  { %v825_v24 = vld [vmem:[#allocation3 + $0x38] sm:$0xff]  ;;  %v832_v39 = vmul.f32 %v4638_v20, %v824_v18  ;;  %v4640_v52 = vsub.f32 %v3596_v35, %v3599_v1  ;;  %v4641_v33 = vld [vmem:[#allocation17_spill] sm:$0xff] }
 0x2db   :  { %869 = vst.msk [vmem:[#allocation3 + $0x10] sm:$0xff] %vm866_vm12, %v860_v62  ;;  %872 = vst.msk [vmem:[#allocation3 + $0x28] sm:$0xff] %vm866_vm12, %v863_v57  ;;  %v833_v63 = vmul.f32 %v3866_v0, %v825_v24  ;;  %v1226_v19 = vmax.f32 %v4639_v58, -60.0  ;;  %2757 = vpow2.f32 %v1236_v7 }
 0x2dc   :  { %v848_v43 = vpop.xlane.xlu0 %847  ;;  %v1228_v51 = vmax.f32 %v4640_v52, -60.0 }
 0x2dd   :  { %v862_v17 = vadd.f32 %v848_v43, %v830_v10  ;;  %v865_v50 = vadd.f32 %v3686_v46, %v833_v63  ;;  %v1227_v46 = vmax.f32 %v1219_v40, -60.0  ;;  %v1238_v38 = vmul.f32 1.442695, %v1226_v19 }
 0x2de   :  { %v1229_v63 = vmax.f32 %v1221_v3, -60.0  ;;  %v1242_v43 = vmul.f32 1.442695, %v1228_v51 }
 0x2df   :  { %871 = vst.msk [vmem:[#allocation3 + $0x20] sm:$0xff] %vm866_vm12, %v862_v17  ;;  %874 = vst.msk [vmem:[#allocation3 + $0x38] sm:$0xff] %vm866_vm12, %v865_v50  ;;  %v1240_v48 = vmul.f32 1.442695, %v1227_v46  ;;  %2759 = vpow2.f32 %v1238_v38  ;;  %v4643_v50 = vld [vmem:[#allocation18_spill] sm:$0xff] }
 0x2e0   :  { %v854_v26 = vpop.xlane.xlu0 %853  ;;  %v3882_v32 = vpop.eup %2753  ;;  %v1244_v41 = vmul.f32 1.442695, %v1229_v63 }
 0x2e1   :  { %v864_v13 = vadd.f32 %v854_v26, %v832_v39  ;;  %2761 = vpow2.f32 %v1240_v48  ;;  %v4644_v39 = vld [vmem:[#allocation20_spill] sm:$0xff] }
 0x2e2   :  { %v3891_v24 = vpop.eup %2755  ;;  %v1794_v40 = vsub.f32 %v4644_v39, %v3793_v15 }
 0x2e3   :  { %873 = vst.msk [vmem:[#allocation3 + $0x30] sm:$0xff] %vm866_vm12, %v864_v13  ;;  %v4645_v13 = vld [vmem:[#allocation19_spill] sm:$0xff]  ;;  %vm2080_vm12 = vcmask 1048320  }
 0x2e4   :  { %v1802_v48 = vmax.f32 %v1794_v40, -60.0 }
 0x2e5   :  { %v3895_v17 = vpop.eup %2757 }
 0x2e6   :  { %v1810_v51 = vmul.f32 1.442695, %v1802_v48 }
 0x2e8   :  { %1393 = vperm.xlu1 %2667, %v3882_v32   ;;  %v1259_v62 = vpop.permute.xlu0 %1258 }
 0x2e9   :  { %v1288_v57 = vsub.f32 %v4641_v33, %v1259_v62  ;;  %v3901_v26 = vpop.eup %2759  ;;  %v4646_v33 = vld [vmem:[#allocation21_spill] sm:$0xff] }
 0x2eb   :  { %v1296_v21 = vmax.f32 %v1288_v57, -60.0  ;;  %v3905_v38 = vpop.eup %2761 }
 0x2ec   :  { %1403 = vperm.xlu1 %2667, %v3891_v24   ;;  %v1264_v10 = vpop.permute.xlu0 %1263 }
 0x2ed   :  { %v1306_v18 = vmul.f32 1.442695, %v1296_v21  ;;  %v1289_v31 = vsub.f32 %v4642_v59, %v1264_v10 }
 0x2ef   :  { %2763 = vpow2.f32 %v1306_v18  ;;  %v1297_v47 = vmax.f32 %v1289_v31, -60.0 }
 0x2f0   :  { %1408 = vperm.xlu1 %2667, %v3895_v17   ;;  %v1274_v35 = vpop.permute.xlu0 %1273  ;;  %2765 = vpow2.f32 %v1242_v43 }
 0x2f1   :  { %v1308_v1 = vmul.f32 1.442695, %v1297_v47  ;;  %v1291_v20 = vsub.f32 %v4643_v50, %v1274_v35 }
 0x2f3   :  { %2767 = vpow2.f32 %v1308_v1  ;;  %v1299_v7 = vmax.f32 %v1291_v20, -60.0 }
 0x2f4   :  { %1413 = vperm.xlu1 %2667, %v3901_v26   ;;  %v1284_v58 = vpop.permute.xlu0 %1283  ;;  %2769 = vpow2.f32 %v1244_v41 }
 0x2f5   :  { %v1312_v19 = vmul.f32 1.442695, %v1299_v7  ;;  %v1293_v46 = vsub.f32 %v4645_v13, %v1284_v58 }
 0x2f7   :  { %2771 = vpow2.f32 %v1312_v19  ;;  %v1301_v62 = vmax.f32 %v1293_v46, -60.0 }
 0x2f8   :  { %1418 = vperm.xlu1 %2667, %v3905_v38  }
 0x2f9   :  { %v2764_v3 = vpop.eup %2763  ;;  %v1316_v15 = vmul.f32 1.442695, %v1301_v62  ;;  %v1762_v52 = vpop.permute.xlu0 %1761 }
 0x2fa   :  { %v1795_v57 = vsub.f32 %v4646_v33, %v1762_v52  ;;  %v3910_v21 = vmul.f32 %v2764_v3, %v3010_v23  ;;  %v3912_v10 = vpop.eup %2765  ;;  %v4648_v52 = vld [vmem:[#allocation26_spill] sm:$0xff]  ;;  %v4649_v33 = vld [vmem:[#allocation25_spill] sm:$0xff] }
 0x2fb   :  { %2773 = vpow2.f32 %v1316_v15  ;;  %v4647_v15 = vld [vmem:[#allocation22_spill] sm:$0xff] }
 0x2fc   :  { %v1803_v63 = vmax.f32 %v1795_v57, -60.0  ;;  %1423 = vperm.xlu1 %2667, %v3912_v10   ;;  %v1348_v43 = vsel %vm177_vm2, %v3910_v21, 0.0  ;;  %2775 = vpow2.f32 %v1810_v51 }
 0x2fd   :  { %v2768_v18 = vpop.eup %2767  ;;  %1349 = vadd.xlane.f32.xlu0 %v1348_v43 }
 0x2fe   :  { %v1812_v59 = vmul.f32 1.442695, %v1803_v63  ;;  %v3918_v31 = vmul.f32 %v2768_v18, %v3014_v28  ;;  %v3920_v47 = vpop.eup %2769 }
 0x300   :  { %2777 = vpow2.f32 %v1812_v59  ;;  %1428 = vperm.xlu1 %2667, %v3920_v47   ;;  %v1351_v35 = vsel %vm177_vm2, %v3918_v31, 0.0 }
 0x301   :  { %v2772_v41 = vpop.eup %2771  ;;  %1352 = vadd.xlane.f32.xlu0 %v1351_v35 }
 0x302   :  { %v3926_v1 = vmul.f32 %v2772_v41, %v3042_v45 }
 0x304   :  { %1036 = vrot.lane.b32.xlu1 %v3743_v6, %s2887_s11  ;;  %v1357_v50 = vsel %vm177_vm2, %v3926_v1, 0.0 }
 0x305   :  { %v2774_v20 = vpop.eup %2773  ;;  %1358 = vadd.xlane.f32.xlu0 %v1357_v50  ;;  %2669 = vset.pattern.permute.xlu1 %v4607_v61 }
 0x306   :  { %v3934_v39 = vmul.f32 %v2774_v20, %v3062_v60  ;;  %v2776_v40 = vpop.eup %2775 }
 0x307   :  { %v3941_v6 = vmul.f32 %v2776_v40, %v3008_v22  ;;  %v4650_v40 = vld [vmem:[#allocation28_spill] sm:$0xff] }
 0x308   :  { %1032 = vrot.lane.b32.xlu1 %v3749_v4, %s2887_s11  ;;  %v1363_v7 = vsel %vm177_vm2, %v3934_v39, 0.0 }
 0x309   :  { %1364 = vadd.xlane.f32.xlu0 %v1363_v7 }
 0x30a   :  { %v2778_v58 = vpop.eup %2777 }
 0x30b   :  { %v3944_v19 = vmul.f32 %v2778_v58, %v3012_v27  ;;  %v4651_v58 = vld [vmem:[#allocation30_spill] sm:$0xff] }
 0x30c   :  { %1044 = vrot.lane.b32.xlu1 %v3824_v54, %s2887_s11 }
 0x30d   :  { %v1947_v46 = vpack.c.bf16 %v3944_v19, %v3941_v6 }
 0x30e   :  { %v1767_v13 = vpop.permute.xlu1 %1766 }
 0x30f   :  { %2632 = vmatprep.mubr.msk.bf16.mxu1 %vm177_vm2, %v1947_v46  ;;  %v1796_v54 = vsub.f32 %v4647_v15, %v1767_v13 }
 0x310   :  { %1040 = vrot.lane.b32.xlu1 %v3831_v14, %s2887_s11 }
 0x311   :  { %v1804_v18 = vmax.f32 %v1796_v54, -60.0 }
 0x312   :  { %v1446_v4 = vpop.permute.xlu1 %1445  ;;  %v1772_v48 = vpop.permute.xlu0 %1771 }
 0x313   :  { %2610 = vmatprep.subr.bf16.mxu0 %v1446_v4  ;;  %v1797_v27 = vsub.f32 %v3504_v44, %v1772_v48  ;;  %v1814_v20 = vmul.f32 1.442695, %v1804_v18  ;;  %v1441_v48 = vpack.c.bf16 %v3926_v1, %v3828_v2  ;;  %v1442_v1 = vpack.c.bf16 %v3934_v39, %v3844_v49 }
 0x314   :  { %2611 = vmatpush3.bf16.msra.mxu0 %v1446_v4  ;;  %v1440_v4 = vpack.c.bf16 %v3918_v31, %v3910_v21 }
 0x315   :  { %v1805_v63 = vmax.f32 %v1797_v27, -60.0 }
 0x316   :  { %v1777_v22 = vpop.permute.xlu0 %1776 }
 0x317   :  { %v1798_v57 = vsub.f32 %v4649_v33, %v1777_v22  ;;  %v1816_v35 = vmul.f32 1.442695, %v1805_v63  ;;  %v4652_v63 = vld [vmem:[#allocation31_spill] sm:$0xff] }
 0x319   :  { %v1806_v59 = vmax.f32 %v1798_v57, -60.0  ;;  %2779 = vpow2.f32 %v1816_v35  ;;  %v1326_v35 = vld [vmem:[#allocation3] sm:$0xff] }
 0x31a   :  { %v1782_v62 = vpop.permute.xlu1 %1781  ;;  %v1448_v3 = vpop.permute.xlu0 %1447 }
 0x31b   :  { %v1799_v51 = vsub.f32 %v4648_v52, %v1782_v62  ;;  %2612 = vmatprep.subr.bf16.mxu0 %v1448_v3  ;;  %v1818_v46 = vmul.f32 1.442695, %v1806_v59 }
 0x31c   :  { %2613 = vmatpush3.bf16.msra.mxu0 %v1448_v3 }
 0x31d   :  { %v1807_v43 = vmax.f32 %v1799_v51, -60.0 }
 0x31e   :  { %v1787_v14 = vpop.permute.xlu1 %1786 }
 0x31f   :  { %1038 = vrot.lane.b32.xlu0 %v3756_v30, %s2887_s11  ;;  %v1820_v44 = vmul.f32 1.442695, %v1807_v43  ;;  %v1800_v7 = vsub.f32 %v4650_v40, %v1787_v14  ;;  %v4653_v43 = vld [vmem:[#allocation32_spill] sm:$0xff] }
 0x320   :  { %v4654_v14 = vsub.f32 %v4652_v63, %v4653_v43  ;;  %v1331_v43 = vld [vmem:[#allocation3 + $0x28] sm:$0xff] }
 0x321   :  { %2781 = vpow2.f32 %v1820_v44  ;;  %v1808_v27 = vmax.f32 %v1800_v7, -60.0  ;;  %v1334_v44 = vmul.f32 %v3882_v32, %v1326_v35  ;;  %v1330_v7 = vld [vmem:[#allocation3 + $0x20] sm:$0xff]  ;;  %v1333_v35 = vld [vmem:[#allocation3 + $0x38] sm:$0xff] }
 0x322   :  { %v1450_v41 = vpop.permute.xlu1 %1449  ;;  %v1792_v50 = vpop.permute.xlu0 %1791  ;;  %2783 = vpow2.f32 %v1814_v20  ;;  %v1223_v18 = vmax.f32 %v4654_v14, -60.0 }
 0x323   :  { %v1801_v13 = vsub.f32 %v4651_v58, %v1792_v50  ;;  %1034 = vrot.lane.b32.xlu0 %v3764_v9, %s2887_s11  ;;  %2614 = vmatprep.subr.bf16.mxu0 %v1450_v41  ;;  %2785 = vpow2.f32 %v1818_v46  ;;  %v1822_v31 = vmul.f32 1.442695, %v1808_v27  ;;  %v1327_v50 = vld [vmem:[#allocation3 + $0x8] sm:$0xff] }
 0x324   :  { %2615 = vmatpush3.bf16.msra.mxu0 %v1450_v41  ;;  %v1232_v59 = vmul.f32 1.442695, %v1223_v18  ;;  %v1339_v18 = vmul.f32 %v3905_v38, %v1331_v43 }
 0x325   :  { %v1809_v30 = vmax.f32 %v1801_v13, -60.0  ;;  %v1338_v13 = vmul.f32 %v3901_v26, %v1330_v7 }
 0x326   :  { %v1952_v22 = vpop.permute.xlu0 %1951  ;;  %v1954_v9 = vpop.permute.xlu1 %1953 }
 0x327   :  { %1046 = vrot.lane.b32.xlu0 %v3835_v8, %s2887_s11  ;;  %2617 = vmatmul.mubr.msk.bf16.vlgmr.msra.gmra.mrb[8].mxu0 %vm177_vm2, %v1440_v4  ;;  %v1824_v21 = vmul.f32 1.442695, %v1809_v30  ;;  %v2780_v8 = vpop.eup %2779  ;;  %v1332_v4 = vld [vmem:[#allocation3 + $0x30] sm:$0xff] }
 0x328   :  { %2624 = vmatprep.subr.bf16.mxu1 %v1952_v22  ;;  %2620 = vmatprep.mubr.msk.bf16.mxu0 %vm177_vm2, %v1441_v48  ;;  %v3977_v52 = vmul.f32 %v2780_v8, %v3014_v28  ;;  %v1340_v32 = vmul.f32 %v3912_v10, %v1332_v4  ;;  %v877_v8 = vld [vmem:[#allocation4 + $0x10] sm:$0xff]  ;;  %v4655_v10 = vld [vmem:[#allocation24_spill] sm:$0xff] }
 0x329   :  { %2625 = vmatpush3.bf16.msra.mxu1 %v1952_v22  ;;  %2787 = vpow2.f32 %v1824_v21 }
 0x32a   :  { %2626 = vmatprep.subr.bf16.mxu1 %v1954_v9  ;;  %v1956_v2 = vpop.permute.xlu0 %1955  ;;  %2789 = vpow2.f32 %v1822_v31  ;;  %v1958_v62 = vpop.permute.xlu1 %1957 }
 0x32b   :  { %1042 = vrot.lane.b32.xlu0 %v3837_v11, %s2887_s11  ;;  %v2782_v3 = vpop.eup %2781  ;;  %2791 = vpow2.f32 %v1232_v59 }
 0x32c   :  { %v2784_v15 = vpop.eup %2783  ;;  %v3980_v11 = vmul.f32 %v2782_v3, %v3042_v45 }
 0x32d   :  { %2627 = vmatpush3.bf16.msra.mxu1 %v1954_v9  ;;  %v2786_v54 = vpop.eup %2785  ;;  %v3983_v49 = vmul.f32 %v2784_v15, %v3010_v23 }
 0x32e   :  { %2628 = vmatprep.subr.bf16.mxu1 %v1956_v2  ;;  %v3986_v39 = vmul.f32 %v2786_v54, %v3029_v37  ;;  %v1328_v54 = vld [vmem:[#allocation3 + $0x10] sm:$0xff] }
 0x32f   :  { %2621 = vmatmul.mubr.msk.bf16.gmra.mrb[12].mxu0 %vm177_vm2, %v1442_v1  ;;  %v1948_v51 = vpack.c.bf16 %v3977_v52, %v3983_v49 }
 0x330   :  { %v1949_v57 = vpack.c.bf16 %v3980_v11, %v3986_v39 }
 0x331   :  { %2629 = vmatpush3.bf16.msra.mxu1 %v1956_v2 }
 0x332   :  { %2630 = vmatprep.subr.bf16.mxu1 %v1958_v62 }
 0x333   :  { %v2788_v33 = vpop.eup %2787 }
 0x334   :  { %v2790_v28 = vpop.eup %2789  ;;  %v3995_v45 = vmul.f32 %v2788_v33, %v3062_v60 }
 0x335   :  { %2631 = vmatpush3.bf16.msra.mxu1 %v1958_v62  ;;  %v3998_v23 = vmul.f32 %v2790_v28, %v3049_v53  ;;  %v4007_v20 = vpop.eup %2791  ;;  %v925_v62 = vmul.f32 %v4655_v10, %v877_v8  ;;  %v1853_v10 = vsel %vm177_vm2, %v3944_v19, 0.0  ;;  %v1859_v19 = vsel %vm177_vm2, %v3977_v52, 0.0 }
 0x336   :  { %v1335_v53 = vmul.f32 %v4007_v20, %v1327_v50 }
 0x337   :  { %v1950_v37 = vpack.c.bf16 %v3995_v45, %v3998_v23 }
 0x338   :  { %2633 = vmatmul.mubr.msk.bf16.vlgmr.msra.gmra.mrb[8].mxu1 %vm177_vm2, %v1948_v51  ;;  %v1336_v51 = vmul.f32 %v3891_v24, %v1328_v54  ;;  %v1341_v24 = vmul.f32 %v3920_v47, %v1333_v35  ;;  %v1868_v54 = vsel %vm177_vm2, %v3998_v23, 0.0  ;;  %v4657_v23 = vsub.f32 %v3691_v34, %v3697_v55  ;;  %v4664_v35 = vld [vmem:[#allocation37_spill] sm:$0xff] }
 0x339   :  { %2636 = vmatprep.mubr.msk.bf16.mxu1 %vm177_vm2, %v1949_v57  ;;  %v1329_v57 = vld [vmem:[#allocation3 + $0x18] sm:$0xff] }
 0x340   :  { %2637 = vmatmul.mubr.msk.bf16.gmra.mrb[12].mxu1 %vm177_vm2, %v1950_v37  ;;  %v1337_v37 = vmul.f32 %v3895_v17, %v1329_v57 }
 0x357   :  { %v1344_v41 = vpop.xlane.xlu0 %1343 }
 0x358   :  { %v1366_v60 = vadd.f32 %v1344_v41, %v1334_v44 }
 0x35a   :  { %1375 = vst.msk [vmem:[#allocation3] sm:$0xff] %vm1374_vm11, %v1366_v60 }
 0x35c   :  { %v1347_v40 = vpop.xlane.xlu1 %1346 }
 0x35d   :  { %v1367_v58 = vadd.f32 %v1347_v40, %v1335_v53 }
 0x35f   :  { %1376 = vst.msk [vmem:[#allocation3 + $0x8] sm:$0xff] %vm1374_vm11, %v1367_v58 }
 0x360   :  { %v1356_v46 = vpop.xlane.xlu1 %1355 }
 0x361   :  { %v1370_v30 = vadd.f32 %v1356_v46, %v1338_v13 }
 0x363   :  { %1379 = vst.msk [vmem:[#allocation3 + $0x20] sm:$0xff] %vm1374_vm11, %v1370_v30 }
 0x364   :  { %v1362_v48 = vpop.xlane.xlu1 %1361 }
 0x365   :  { %v1372_v22 = vadd.f32 %v1362_v48, %v1340_v32 }
 0x367   :  { %1381 = vst.msk [vmem:[#allocation3 + $0x30] sm:$0xff] %vm1374_vm11, %v1372_v22 }
 0x368   :  { %v4016_v27 = vpop.permute.xlu1 %1393 }
 0x36c   :  { %v4018_v9 = vpop.permute.xlu1 %1403 }
 0x370   :  { %v4020_v21 = vpop.permute.xlu1 %1408 }
 0x374   :  { %v4022_v31 = vpop.permute.xlu1 %1413 }
 0x378   :  { %v4024_v26 = vpop.permute.xlu1 %1418 }
 0x37c   :  { %v4026_v2 = vpop.permute.xlu1 %1423 }
 0x380   :  { %v4028_v1 = vpop.permute.xlu1 %1428 }
 0x384   :  { %v1037_v3 = vpop.permute.xlu1 %1036 }
 0x385   :  { %v1058_v15 = vadd.f32 %v1037_v3, %v925_v62  ;;  %v1856_v62 = vsel %vm177_vm2, %v3983_v49, 0.0  ;;  %v1862_v3 = vsel %vm177_vm2, %v3986_v39, 0.0 }
 0x387   :  { %1067 = vst.msk [vmem:[#allocation4 + $0x10] sm:$0xff] %vm1064_vm10, %v1058_v15  ;;  %v1850_v15 = vsel %vm177_vm2, %v3941_v6, 0.0  ;;  %v1871_v6 = vsel %vm177_vm2, %v3995_v45, 0.0 }
 0x38a   :  { %v1350_v33 = vpop.xlane.xlu0 %1349 }
 0x38b   :  { %v1368_v28 = vadd.f32 %v1350_v33, %v1336_v51  ;;  %v4656_v51 = vld [vmem:[#allocation35_spill] sm:$0xff]  ;;  %v1865_v33 = vsel %vm177_vm2, %v3980_v11, 0.0  ;;  %v4659_v11 = vsub.f32 %v3726_v36, %v3729_v29  ;;  %v4668_v29 = vld [vmem:[#allocation38_spill] sm:$0xff]  ;;  %vm1572_vm2 = vcmask 785920  }
 0x38c   :  { %v1723_v49 = vsub.f32 %v4656_v51, %v3620_v42 }
 0x38d   :  { %1377 = vst.msk [vmem:[#allocation3 + $0x10] sm:$0xff] %vm1374_vm11, %v1368_v28  ;;  %v1732_v28 = vmax.f32 %v4657_v23, -60.0  ;;  %v1734_v43 = vmax.f32 %v4659_v11, -60.0 }
 0x38e   :  { %v1353_v63 = vpop.xlane.xlu0 %1352  ;;  %v1731_v39 = vmax.f32 %v1723_v49, -60.0 }
 0x38f   :  { %v1369_v14 = vadd.f32 %v1353_v63, %v1337_v37  ;;  %v1742_v52 = vmul.f32 1.442695, %v1732_v28  ;;  %v4658_v37 = vsub.f32 %v3706_v56, %v3709_v12  ;;  %v1746_v45 = vmul.f32 1.442695, %v1734_v43  ;;  %v4665_v12 = vld [vmem:[#allocation44_spill] sm:$0xff] }
 0x390   :  { %v1740_v57 = vmul.f32 1.442695, %v1731_v39 }
 0x391   :  { %1378 = vst.msk [vmem:[#allocation3 + $0x18] sm:$0xff] %vm1374_vm11, %v1369_v14  ;;  %v1733_v42 = vmax.f32 %v4658_v37, -60.0  ;;  %v4660_v14 = vld [vmem:[#allocation36_spill] sm:$0xff] }
 0x392   :  { %v1359_v59 = vpop.xlane.xlu0 %1358  ;;  %2793 = vpow2.f32 %v1740_v57 }
 0x393   :  { %v1371_v44 = vadd.f32 %v1359_v59, %v1339_v18  ;;  %2795 = vpow2.f32 %v1742_v52  ;;  %v1744_v63 = vmul.f32 1.442695, %v1733_v42  ;;  %v4661_v18 = vld [vmem:[#allocation42_spill] sm:$0xff]  ;;  %v4662_v59 = vld [vmem:[#allocation43_spill] sm:$0xff] }
 0x394   :  { %v4663_v34 = vsub.f32 %v4661_v18, %v4662_v59  ;;  %v1836_v43 = vld [vmem:[#allocation3 + $0x10] sm:$0xff] }
 0x395   :  { %1380 = vst.msk [vmem:[#allocation3 + $0x28] sm:$0xff] %vm1374_vm11, %v1371_v44  ;;  %2797 = vpow2.f32 %v1744_v63 }
 0x396   :  { %v1365_v41 = vpop.xlane.xlu0 %1364  ;;  %v1735_v55 = vmax.f32 %v4663_v34, -60.0  ;;  %2799 = vpow2.f32 %v1746_v45  ;;  %v1838_v34 = vld [vmem:[#allocation3 + $0x20] sm:$0xff] }
 0x397   :  { %v1373_v60 = vadd.f32 %v1365_v41, %v1341_v24  ;;  %v4666_v24 = vld [vmem:[#allocation45_spill] sm:$0xff] }
 0x398   :  { %v1748_v56 = vmul.f32 1.442695, %v1735_v55  ;;  %v4667_v41 = vsub.f32 %v4665_v12, %v4666_v24  ;;  %v1834_v12 = vld [vmem:[#allocation3] sm:$0xff] }
 0x399   :  { %1382 = vst.msk [vmem:[#allocation3 + $0x38] sm:$0xff] %vm1374_vm11, %v1373_v60 }
 0x39a   :  { %v1736_v60 = vmax.f32 %v4667_v41, -60.0  ;;  %2801 = vpow2.f32 %v1748_v56  ;;  %v1840_v41 = vld [vmem:[#allocation3 + $0x30] sm:$0xff] }
 0x39c   :  { %v2794_v44 = vpop.eup %2793 }
 0x39d   :  { %v2796_v36 = vpop.eup %2795 }
 0x39e   :  { %v1844_v18 = vmul.f32 %v2796_v36, %v1836_v43 }
 0x3fa   :  { %v2618_v50 = vpop.f32.mrb[8].mxu0 }
 0x3fb   :  { %1544 = vrot.lane.b32.xlu1 %v2618_v50, %s2886_s29  ;;  %v1501_v17 = vpop.f32.mrb[9].mxu0  ;;  %v1750_v50 = vmul.f32 1.442695, %v1736_v60 }
 0x3fc   :  { %v2619_v53 = vpop.f32.mrb[10].mxu0 }
 0x3fd   :  { %1546 = vrot.lane.b32.xlu0 %v2619_v53, %s2886_s29  ;;  %v1504_v40 = vpop.f32.mrb[11].mxu0  ;;  %v4670_v53 = vld [vmem:[#allocation47_spill] sm:$0xff]  ;;  %2803 = vpow2.f32 %v1750_v50 }
 0x3ff   :  { %1540 = vrot.lane.b32.xlu1 %v1501_v17, %s2886_s29  ;;  %v4669_v17 = vld [vmem:[#allocation46_spill] sm:$0xff] }
 0x401   :  { %1542 = vrot.lane.b32.xlu0 %v1504_v40, %s2886_s29  ;;  %v4671_v40 = vsub.f32 %v4669_v17, %v4670_v53  ;;  %v1837_v53 = vld [vmem:[#allocation3 + $0x18] sm:$0xff] }
 0x402   :  { %v2622_v38 = vpop.f32.mrb[12].mxu0 }
 0x403   :  { %1552 = vrot.lane.b32.xlu1 %v2622_v38, %s2886_s29  ;;  %v1517_v47 = vpop.f32.mrb[13].mxu0  ;;  %v1737_v38 = vmax.f32 %v4671_v40, -60.0 }
 0x404   :  { %v2623_v7 = vpop.f32.mrb[14].mxu0 }
 0x405   :  { %v1520_v58 = vpop.f32.mrb[15].mxu0 }
 0x407   :  { %1548 = vrot.lane.b32.xlu1 %v1517_v47, %s2886_s29  ;;  %v4098_v47 = vpop.eup %2797 }
 0x40b   :  { %v4046_v13 = vpop.f32.mrb[8].mxu1 }
 0x40c   :  { %v4048_v46 = vpop.f32.mrb[9].mxu1 }
 0x40d   :  { %v2635_v4 = vpop.f32.mrb[10].mxu1 }
 0x40e   :  { %v2012_v30 = vpop.f32.mrb[11].mxu1 }
 0x413   :  { %v4050_v32 = vpop.f32.mrb[12].mxu1 }
 0x414   :  { %v4052_v48 = vpop.f32.mrb[13].mxu1 }
 0x415   :  { %v4054_v22 = vpop.f32.mrb[14].mxu1 }
 0x416   :  { %v4056_v8 = vpop.f32.mrb[15].mxu1 }
 0x420   :  { %1854 = vadd.xlane.f32.xlu0 %v1853_v10  ;;  %v1752_v10 = vmul.f32 1.442695, %v1737_v38 }
 0x422   :  { %2805 = vpow2.f32 %v1752_v10 }
 0x424   :  { %1857 = vadd.xlane.f32.xlu0 %v1856_v62  ;;  %v2800_v62 = vpop.eup %2799 }
 0x425   :  { %v1846_v56 = vmul.f32 %v2800_v62, %v1838_v34 }
 0x428   :  { %1863 = vadd.xlane.f32.xlu0 %v1862_v3  ;;  %v4103_v3 = vpop.eup %2801 }
 0x42b   :  { %1851 = vadd.xlane.f32.xlu1 %v1850_v15  ;;  %v4107_v15 = vpop.permute.xlu1 %1032 }
 0x42c   :  { %1869 = vadd.xlane.f32.xlu0 %v1868_v54 }
 0x42f   :  { %1860 = vadd.xlane.f32.xlu1 %v1859_v19 }
 0x433   :  { %1866 = vadd.xlane.f32.xlu1 %v1865_v33 }
 0x437   :  { %1872 = vadd.xlane.f32.xlu1 %v1871_v6 }
 0x442   :  { %402 = vperm.xlu0 %2668, %v4660_v14  }
 0x446   :  { %417 = vperm.xlu0 %2668, %v4664_v35  }
 0x448   :  { %1906 = vperm.xlu1 %2669, %v2794_v44  }
 0x44a   :  { %427 = vperm.xlu0 %2668, %v4668_v29  }
 0x44c   :  { %1911 = vperm.xlu1 %2669, %v2796_v36  }
 0x44e   :  { %1554 = vrot.lane.b32.xlu0 %v2623_v7, %s2886_s29  ;;  %v2804_v7 = vpop.eup %2803 }
 0x44f   :  { %v4109_v54 = vpop.eup %2805  ;;  %v1848_v17 = vmul.f32 %v2804_v7, %v1840_v41 }
 0x450   :  { %1916 = vperm.xlu1 %2669, %v4098_v47  }
 0x452   :  { %1550 = vrot.lane.b32.xlu0 %v1520_v58, %s2886_s29  ;;  %v4112_v58 = vpop.permute.xlu1 %1044 }
 0x454   :  { %1921 = vperm.xlu1 %2669, %v2800_v62   ;;  %v1845_v62 = vmul.f32 %v4098_v47, %v1837_v53 }
 0x456   :  { %2054 = vrot.lane.b32.xlu0 %v2635_v4, %s2881_s1  ;;  %v4672_v4 = vmov 0   ;;  %v4119_v19 = vpop.permute.xlu1 %1040 }
 0x458   :  { %1926 = vperm.xlu1 %2669, %v4103_v3  }
 0x45a   :  { %2050 = vrot.lane.b32.xlu0 %v2012_v30, %s2881_s1  ;;  %v1385_v30 = vld [vmem:[#allocation4 + $0x10] sm:$0xff] }
 0x45b   :  { %v1433_v51 = vmul.f32 %v4018_v9, %v1385_v30  ;;  %v4674_v9 = vld [vmem:[#allocation34_spill] sm:$0xff] }
 0x45c   :  { %1931 = vperm.xlu1 %2669, %v2804_v7   ;;  %v1839_v30 = vld [vmem:[#allocation3 + $0x28] sm:$0xff] }
 0x460   :  { %1936 = vperm.xlu1 %2669, %v4109_v54  }
 0x464   :  { %2048 = vrot.lane.b32.xlu1 %v4048_v46, %s2881_s1  ;;  %v4127_v46 = vpop.permute.xlu0 %1038 }
 0x465   :  { %2670 = vset.pattern.permute.xlu1 %v4672_v4 }
 0x468   :  { %2052 = vrot.lane.b32.xlu1 %v4046_v13, %s2881_s1  ;;  %v4129_v39 = vpop.permute.xlu0 %1034 }
 0x46c   :  { %2056 = vrot.lane.b32.xlu1 %v4052_v48, %s2881_s1  ;;  %v4131_v13 = vpop.permute.xlu0 %1046  ;;  %v4673_v48 = vld [vmem:[#allocation33_spill] sm:$0xff] }
 0x46d   :  { %v1545_v49 = vpop.permute.xlu1 %1544  ;;  %v4675_v23 = vsub.f32 %v4673_v48, %v4674_v9  ;;  %v1841_v48 = vld [vmem:[#allocation3 + $0x38] sm:$0xff] }
 0x46e   :  { %v1566_v33 = vadd.f32 %v1545_v49, %v1433_v51  ;;  %v1847_v49 = vmul.f32 %v4103_v3, %v1839_v30  ;;  %v4676_v3 = vld [vmem:[#allocation39_spill] sm:$0xff] }
 0x46f   :  { %v1730_v28 = vmax.f32 %v4675_v23, -60.0  ;;  %v4681_v30 = vld [vmem:[#allocation27_spill] sm:$0xff] }
 0x470   :  { %1575 = vst.msk [vmem:[#allocation4 + $0x10] sm:$0xff] %vm1572_vm2, %v1566_v33  ;;  %2060 = vrot.lane.b32.xlu1 %v4050_v32, %s2881_s1  ;;  %v4133_v6 = vpop.permute.xlu0 %1042  ;;  %v1835_v32 = vld [vmem:[#allocation3 + $0x8] sm:$0xff] }
 0x471   :  { %v1738_v52 = vmul.f32 1.442695, %v1730_v28  ;;  %v4140_v37 = vpop.permute.xlu1 %1540  ;;  %v1843_v63 = vmul.f32 %v2794_v44, %v1835_v32  ;;  %v2878_v28 = vld [vmem:[#allocation4 + $0x8] sm:$0xff]  ;;  %v1849_v32 = vmul.f32 %v4109_v54, %v1841_v48 }
 0x473   :  { %2807 = vpow2.f32 %v1738_v52 }
 0x474   :  { %v4135_v57 = vpop.permute.xlu0 %1546 }
 0x475   :  { %v4144_v14 = vpop.permute.xlu1 %1552 }
 0x478   :  { %v4142_v42 = vpop.permute.xlu0 %1542 }
 0x479   :  { %v4147_v35 = vpop.permute.xlu1 %1548 }
 0x47d   :  { %v4150_v44 = vpop.eup %2807 }
 0x47e   :  { %v1842_v29 = vmul.f32 %v4150_v44, %v1834_v12  ;;  %v4678_v12 = vmov 1  }
 0x4ad   :  { %v1855_v11 = vpop.xlane.xlu0 %1854 }
 0x4ae   :  { %v1875_v45 = vadd.f32 %v1855_v11, %v1843_v63 }
 0x4b0   :  { %1884 = vst.msk [vmem:[#allocation3 + $0x8] sm:$0xff] %vm1882_vm14, %v1875_v45 }
 0x4b1   :  { %v1858_v59 = vpop.xlane.xlu0 %1857 }
 0x4b2   :  { %v1876_v55 = vadd.f32 %v1858_v59, %v1844_v18 }
 0x4b4   :  { %1885 = vst.msk [vmem:[#allocation3 + $0x10] sm:$0xff] %vm1882_vm14, %v1876_v55  ;;  %v4677_v55 = vld [vmem:[#allocation41_spill] sm:$0xff] }
 0x4b5   :  { %v1864_v24 = vpop.xlane.xlu0 %1863 }
 0x4b6   :  { %v1878_v60 = vadd.f32 %v1864_v24, %v1846_v56 }
 0x4b7   :  { %v4153_v50 = vld [vmem:[#allocation3 + $0x8] sm:$0xff] }
 0x4b8   :  { %1887 = vst.msk [vmem:[#allocation3 + $0x20] sm:$0xff] %vm1882_vm14, %v1878_v60  ;;  %v1852_v36 = vpop.xlane.xlu1 %1851  ;;  %2123 = vperm.xlu0 %2668, %v4153_v50  }
 0x4b9   :  { %v1874_v40 = vadd.f32 %v1852_v36, %v1842_v29  ;;  %v1870_v38 = vpop.xlane.xlu0 %1869  ;;  %v4679_v29 = vld [vmem:[#allocation40_spill] sm:$0xff] }
 0x4ba   :  { %v1880_v10 = vadd.f32 %v1870_v38, %v1848_v17  ;;  %v4680_v38 = vld [vmem:[#allocation23_spill] sm:$0xff] }
 0x4bb   :  { %1883 = vst.msk [vmem:[#allocation3] sm:$0xff] %vm1882_vm14, %v1874_v40  ;;  %v4175_v34 = vld [vmem:[#allocation3 + $0x10] sm:$0xff] }
 0x4bc   :  { %1889 = vst.msk [vmem:[#allocation3 + $0x30] sm:$0xff] %vm1882_vm14, %v1880_v10  ;;  %v1861_v4 = vpop.xlane.xlu1 %1860 }
 0x4bd   :  { %v1877_v51 = vadd.f32 %v1861_v4, %v1845_v62 }
 0x4bf   :  { %1886 = vst.msk [vmem:[#allocation3 + $0x18] sm:$0xff] %vm1882_vm14, %v1877_v51  ;;  %v4162_v33 = vld [vmem:[#allocation3 + $0x20] sm:$0xff] }
 0x4c0   :  { %v1867_v7 = vpop.xlane.xlu1 %1866  ;;  %2138 = vperm.xlu0 %2668, %v4162_v33  }
 0x4c1   :  { %v1879_v9 = vadd.f32 %v1867_v7, %v1847_v49  ;;  %v403_v23 = vpop.permute.xlu0 %402 }
 0x4c2   :  { %v436_v52 = vmul.f32 %v2878_v28, %v403_v23  ;;  %v4165_v47 = vld [vmem:[#allocation3] sm:$0xff] }
 0x4c3   :  { %1888 = vst.msk [vmem:[#allocation3 + $0x28] sm:$0xff] %vm1882_vm14, %v1879_v9  ;;  %2118 = vperm.xlu1 %2670, %v4165_v47   ;;  %v4170_v63 = vld [vmem:[#allocation3 + $0x30] sm:$0xff] }
 0x4c4   :  { %v549_v11 = vadd.f32 %v4676_v3, %v436_v52  ;;  %v1873_v43 = vpop.xlane.xlu1 %1872  ;;  %2148 = vperm.xlu0 %2668, %v4170_v63  }
 0x4c5   :  { %v1881_v45 = vadd.f32 %v1873_v43, %v1849_v32  ;;  %v418_v18 = vpop.permute.xlu0 %417 }
 0x4c6   :  { %558 = vst.msk [vmem:[#allocation4 + $0x8] sm:$0xff] %vm556_vm15, %v549_v11  ;;  %v439_v59 = vmul.f32 %v2878_v28, %v418_v18  ;;  %v4185_v60 = vld [vmem:[#allocation3 + $0x18] sm:$0xff] }
 0x4c7   :  { %1890 = vst.msk [vmem:[#allocation3 + $0x38] sm:$0xff] %vm1882_vm14, %v1881_v45  ;;  %2128 = vperm.xlu1 %2670, %v4175_v34   ;;  %v4683_v45 = vmov 2  }
 0x4c8   :  { %v552_v54 = vadd.f32 %v4677_v55, %v439_v59  ;;  %v4180_v56 = vpop.permute.xlu1 %1906  ;;  %2671 = vset.pattern.permute.xlu0 %v4678_v12 }
 0x4c9   :  { %885 = vperm.xlu0 %2671, %v3818_v5   ;;  %v428_v24 = vpop.permute.xlu0 %427 }
 0x4ca   :  { %561 = vst.msk [vmem:[#allocation4 + $0x20] sm:$0xff] %vm556_vm15, %v552_v54  ;;  %v441_v41 = vmul.f32 %v2878_v28, %v428_v24  ;;  %v4191_v40 = vld [vmem:[#allocation3 + $0x28] sm:$0xff] }
 0x4cb   :  { %2133 = vperm.xlu1 %2670, %v4185_v60  }
 0x4cc   :  { %v554_v36 = vadd.f32 %v4679_v29, %v441_v41  ;;  %v1912_v17 = vpop.permute.xlu1 %1911 }
 0x4cd   :  { %900 = vperm.xlu0 %2671, %v3839_v16   ;;  %v876_v53 = vld [vmem:[#allocation4 + $0x8] sm:$0xff] }
 0x4ce   :  { %563 = vst.msk [vmem:[#allocation4 + $0x30] sm:$0xff] %vm556_vm15, %v554_v36  ;;  %v924_v5 = vmul.f32 %v4680_v38, %v876_v53  ;;  %v4200_v49 = vld [vmem:[#allocation3 + $0x38] sm:$0xff] }
 0x4cf   :  { %2143 = vperm.xlu1 %2670, %v4191_v40  }
 0x4d0   :  { %v4195_v10 = vpop.permute.xlu1 %1916  ;;  %v1057_v62 = vadd.f32 %v4129_v39, %v924_v5  ;;  %v4682_v39 = vld [vmem:[#allocation29_spill] sm:$0xff] }
 0x4d1   :  { %v879_v4 = vld [vmem:[#allocation4 + $0x20] sm:$0xff]  ;;  %910 = vperm.xlu0 %2671, %v3855_v25  }
 0x4d2   :  { %v927_v51 = vmul.f32 %v4681_v30, %v879_v4  ;;  %1066 = vst.msk [vmem:[#allocation4 + $0x8] sm:$0xff] %vm1064_vm10, %v1057_v62  ;;  %v878_v4 = vld [vmem:[#allocation4 + $0x18] sm:$0xff] }
 0x4d3   :  { %2153 = vperm.xlu1 %2670, %v4200_v49  }
 0x4d4   :  { %v1060_v16 = vadd.f32 %v4119_v19, %v927_v51  ;;  %v1922_v7 = vpop.permute.xlu1 %1921 }
 0x4d5   :  { %v881_v48 = vld [vmem:[#allocation4 + $0x30] sm:$0xff]  ;;  %920 = vperm.xlu0 %2671, %v3866_v0  }
 0x4d6   :  { %1069 = vst.msk [vmem:[#allocation4 + $0x20] sm:$0xff] %vm1064_vm10, %v1060_v16  ;;  %v929_v9 = vmul.f32 %v4682_v39, %v881_v48 }
 0x4d7   :  { %2672 = vset.pattern.permute.xlu1 %v4678_v12 }
 0x4d8   :  { %v1062_v25 = vadd.f32 %v4112_v58, %v929_v9  ;;  %v4210_v23 = vpop.permute.xlu1 %1926  ;;  %2226 = vperm.xlu1 %2672, %v4153_v50  }
 0x4d9   :  { %2221 = vperm.xlu0 %2671, %v4165_v47  }
 0x4da   :  { %1071 = vst.msk [vmem:[#allocation4 + $0x30] sm:$0xff] %vm1064_vm10, %v1062_v25 }
 0x4dc   :  { %v1932_v19 = vpop.permute.xlu1 %1931  ;;  %2231 = vperm.xlu1 %2672, %v4175_v34  }
 0x4dd   :  { %v1387_v0 = vld [vmem:[#allocation4 + $0x20] sm:$0xff]  ;;  %2062 = vrot.lane.b32.xlu0 %v4054_v22, %s2881_s1 }
 0x4de   :  { %v1435_v28 = vmul.f32 %v4022_v31, %v1387_v0  ;;  %v1893_v31 = vld [vmem:[#allocation4 + $0x10] sm:$0xff] }
 0x4df   :  { %v1941_v22 = vmul.f32 %v1912_v17, %v1893_v31 }
 0x4e0   :  { %v1568_v52 = vadd.f32 %v4147_v35, %v1435_v28  ;;  %v4220_v58 = vpop.permute.xlu1 %1936  ;;  %2241 = vperm.xlu1 %2672, %v4162_v33  }
 0x4e1   :  { %v1389_v32 = vld [vmem:[#allocation4 + $0x30] sm:$0xff]  ;;  %2058 = vrot.lane.b32.xlu0 %v4056_v8, %s2881_s1 }
 0x4e2   :  { %1577 = vst.msk [vmem:[#allocation4 + $0x20] sm:$0xff] %vm1572_vm2, %v1568_v52  ;;  %v1437_v3 = vmul.f32 %v4026_v2, %v1389_v32 }
 0x4e4   :  { %v1570_v11 = vadd.f32 %v4144_v14, %v1437_v3  ;;  %v4228_v43 = vpop.permute.xlu1 %2048  ;;  %2251 = vperm.xlu1 %2672, %v4170_v63  }
 0x4e5   :  { %2236 = vperm.xlu0 %2671, %v4185_v60  }
 0x4e6   :  { %1579 = vst.msk [vmem:[#allocation4 + $0x30] sm:$0xff] %vm1572_vm2, %v1570_v11 }
 0x4e8   :  { %v2053_v35 = vpop.permute.xlu1 %2052  ;;  %2674 = vset.pattern.permute.xlu1 %v4683_v45 }
 0x4e9   :  { %v1895_v8 = vld [vmem:[#allocation4 + $0x20] sm:$0xff]  ;;  %v2074_v18 = vadd.f32 %v2053_v35, %v1941_v22  ;;  %2324 = vperm.xlu1 %2674, %v4165_v47   ;;  %2246 = vperm.xlu0 %2671, %v4191_v40   ;;  %v882_v35 = vld [vmem:[#allocation4 + $0x38] sm:$0xff] }
 0x4ea   :  { %v1943_v2 = vmul.f32 %v1922_v7, %v1895_v8 }
 0x4eb   :  { %2083 = vst.msk [vmem:[#allocation4 + $0x10] sm:$0xff] %vm2080_vm12, %v2074_v18 }
 0x4ec   :  { %v2057_v14 = vpop.permute.xlu1 %2056 }
 0x4ed   :  { %v1897_v59 = vld [vmem:[#allocation4 + $0x30] sm:$0xff]  ;;  %v2076_v55 = vadd.f32 %v2057_v14, %v1943_v2  ;;  %2334 = vperm.xlu1 %2674, %v4175_v34   ;;  %2256 = vperm.xlu0 %2671, %v4200_v49  }
 0x4ee   :  { %v1945_v54 = vmul.f32 %v1932_v19, %v1897_v59  ;;  %v880_v19 = vld [vmem:[#allocation4 + $0x28] sm:$0xff] }
 0x4ef   :  { %2085 = vst.msk [vmem:[#allocation4 + $0x20] sm:$0xff] %vm2080_vm12, %v2076_v55 }
 0x4f0   :  { %v2061_v12 = vpop.permute.xlu1 %2060 }
 0x4f1   :  { %v2078_v24 = vadd.f32 %v2061_v12, %v1945_v54  ;;  %2339 = vperm.xlu1 %2674, %v4185_v60   ;;  %2673 = vset.pattern.permute.xlu0 %v4683_v45 }
 0x4f2   :  { %1398 = vperm.xlu0 %2673, %v4007_v20   ;;  %v4260_v20 = vpop.permute.xlu0 %1554  ;;  %v4296_v52 = vld [vmem:[#allocation4 + $0x10] sm:$0xff] }
 0x4f3   :  { %2087 = vst.msk [vmem:[#allocation4 + $0x30] sm:$0xff] %vm2080_vm12, %v2078_v24 }
 0x4f5   :  { %2349 = vperm.xlu1 %2674, %v4191_v40  }
 0x4f6   :  { %2329 = vperm.xlu0 %2673, %v4153_v50   ;;  %v4272_v53 = vld [vmem:[#allocation4 + $0x20] sm:$0xff] }
 0x4f9   :  { %2359 = vperm.xlu1 %2674, %v4200_v49  }
 0x4fa   :  { %2344 = vperm.xlu0 %2673, %v4162_v33   ;;  %v4285_v7 = vld [vmem:[#allocation4 + $0x30] sm:$0xff] }
 0x4fd   :  { %2676 = vset.pattern.permute.xlu1 %v4607_v61 }
 0x4fe   :  { %2432 = vperm.xlu1 %2676, %v4153_v50   ;;  %2354 = vperm.xlu0 %2673, %v4170_v63   ;;  %v4262_v50 = vpop.permute.xlu0 %1550 }
 0x502   :  { %2437 = vperm.xlu1 %2676, %v4175_v34   ;;  %2675 = vset.pattern.permute.xlu0 %v4607_v61  ;;  %v4264_v34 = vpop.permute.xlu0 %2054 }
 0x503   :  { %1901 = vperm.xlu0 %2675, %v4150_v44  }
 0x506   :  { %2447 = vperm.xlu1 %2676, %v4162_v33   ;;  %v4266_v61 = vpop.permute.xlu0 %2050 }
 0x507   :  { %2427 = vperm.xlu0 %2675, %v4165_v47  }
 0x50a   :  { %2457 = vperm.xlu1 %2676, %v4170_v63  }
 0x50b   :  { %2442 = vperm.xlu0 %2675, %v4185_v60   ;;  %v875_v60 = vld [vmem:[#allocation4] sm:$0xff] }
 0x50f   :  { %2452 = vperm.xlu0 %2675, %v4191_v40   ;;  %v4277_v40 = vld [vmem:[%s4528_s4] ss:$0 sm:$0xff] }
 0x513   :  { %2462 = vperm.xlu0 %2675, %v4200_v49  }
 0x537   :  { %v4268_v44 = vpop.permute.xlu0 %2123 }
 0x53f   :  { %v2139_v33 = vpop.permute.xlu0 %2138 }
 0x540   :  { %2809 = vrcp.f32 %v2139_v33 }
 0x542   :  { %v4270_v47 = vpop.permute.xlu1 %2118 }
 0x543   :  { %v2149_v63 = vpop.permute.xlu0 %2148 }
 0x544   :  { %2811 = vrcp.f32 %v2149_v63 }
 0x546   :  { %v2129_v41 = vpop.permute.xlu1 %2128 }
 0x547   :  { %2813 = vrcp.f32 %v2129_v41 }
 0x548   :  { %v886_v29 = vpop.permute.xlu0 %885 }
 0x549   :  { %v923_v36 = vmul.f32 %v886_v29, %v875_v60 }
 0x54a   :  { %v2810_v17 = vpop.eup %2809  ;;  %v4279_v38 = vpop.permute.xlu1 %2133 }
 0x54b   :  { %v2165_v5 = vmul.f32 %v2810_v17, %v4272_v53  ;;  %v1056_v62 = vadd.f32 %v4107_v15, %v923_v36 }
 0x54c   :  { %v901_v30 = vpop.permute.xlu0 %900 }
 0x54d   :  { %v2183_v51 = vadd.f32 %v4277_v40, %v2165_v5  ;;  %1065 = vst.msk [vmem:[#allocation4] sm:$0xff] %vm1064_vm10, %v1056_v62  ;;  %v926_v49 = vmul.f32 %v901_v30, %v878_v4 }
 0x54e   :  { %v2812_v16 = vpop.eup %2811  ;;  %v4287_v48 = vpop.permute.xlu1 %2143 }
 0x54f   :  { %v2191_v39 = vmax.f32 %v2183_v51, 0.0  ;;  %v2169_v9 = vmul.f32 %v2812_v16, %v4285_v7  ;;  %v1059_v25 = vadd.f32 %v4127_v46, %v926_v49 }
 0x550   :  { %v911_v0 = vpop.permute.xlu0 %910 }
 0x551   :  { %v2814_v15 = vpop.eup %2813  ;;  %2199 = vst.msk [vmem:[%s4529_s5 + $0x20] sm:$0xff] %vm556_vm15, %v2191_v39  ;;  %v2185_v28 = vadd.f32 %v4277_v40, %v2169_v9  ;;  %v928_v32 = vmul.f32 %v911_v0, %v880_v19 }
 0x552   :  { %1068 = vst.msk [vmem:[#allocation4 + $0x18] sm:$0xff] %vm1064_vm10, %v1059_v25  ;;  %v2161_v3 = vmul.f32 %v2814_v15, %v4296_v52  ;;  %v2154_v11 = vpop.permute.xlu1 %2153 }
 0x553   :  { %v2193_v31 = vmax.f32 %v2185_v28, 0.0  ;;  %v1061_v46 = vadd.f32 %v4133_v6, %v928_v32 }
 0x554   :  { %v2181_v22 = vadd.f32 %v4277_v40, %v2161_v3  ;;  %v921_v45 = vpop.permute.xlu0 %920  ;;  %v1383_v8 = vld [vmem:[#allocation4] sm:$0xff] }
 0x555   :  { %2201 = vst.msk [vmem:[%s4529_s5 + $0x30] sm:$0xff] %vm556_vm15, %v2193_v31  ;;  %v930_v18 = vmul.f32 %v921_v45, %v882_v35  ;;  %v1431_v2 = vmul.f32 %v4016_v27, %v1383_v8  ;;  %v1384_v45 = vld [vmem:[#allocation4 + $0x8] sm:$0xff] }
 0x556   :  { %1070 = vst.msk [vmem:[#allocation4 + $0x28] sm:$0xff] %vm1064_vm10, %v1061_v46  ;;  %v2189_v14 = vmax.f32 %v2181_v22, 0.0 }
 0x557   :  { %v1063_v59 = vadd.f32 %v4131_v13, %v930_v18  ;;  %v4309_v55 = vpop.permute.xlu1 %2226  ;;  %v1564_v6 = vadd.f32 %v4140_v37, %v1431_v2 }
 0x558   :  { %2197 = vst.msk [vmem:[%s4529_s5 + $0x10] sm:$0xff] %vm556_vm15, %v2189_v14  ;;  %v4316_v12 = vpop.permute.xlu0 %2221 }
 0x559   :  { %v1386_v54 = vld [vmem:[#allocation4 + $0x18] sm:$0xff]  ;;  %1072 = vst.msk [vmem:[#allocation4 + $0x38] sm:$0xff] %vm1064_vm10, %v1063_v59 }
 0x55a   :  { %v1434_v24 = vmul.f32 %v4020_v21, %v1386_v54  ;;  %1573 = vst.msk [vmem:[#allocation4] sm:$0xff] %vm1572_vm2, %v1564_v6 }
 0x55b   :  { %v2232_v13 = vpop.permute.xlu1 %2231 }
 0x55c   :  { %v1567_v27 = vadd.f32 %v4135_v57, %v1434_v24  ;;  %2815 = vrcp.f32 %v2232_v13  ;;  %v2063_v37 = vpop.permute.xlu0 %2062 }
 0x55d   :  { %v1388_v33 = vld [vmem:[#allocation4 + $0x28] sm:$0xff] }
 0x55e   :  { %1576 = vst.msk [vmem:[#allocation4 + $0x18] sm:$0xff] %vm1572_vm2, %v1567_v27  ;;  %v1436_v63 = vmul.f32 %v4024_v26, %v1388_v33 }
 0x55f   :  { %v2242_v60 = vpop.permute.xlu1 %2241 }
 0x560   :  { %v1569_v41 = vadd.f32 %v4262_v50, %v1436_v63  ;;  %v1390_v29 = vld [vmem:[#allocation4 + $0x38] sm:$0xff]  ;;  %2817 = vrcp.f32 %v2242_v60  ;;  %v2059_v21 = vpop.permute.xlu0 %2058 }
 0x561   :  { %v1438_v36 = vmul.f32 %v4028_v1, %v1390_v29 }
 0x562   :  { %1578 = vst.msk [vmem:[#allocation4 + $0x28] sm:$0xff] %vm1572_vm2, %v1569_v41 }
 0x563   :  { %v1571_v57 = vadd.f32 %v4260_v20, %v1438_v36  ;;  %v2252_v17 = vpop.permute.xlu1 %2251 }
 0x564   :  { %2819 = vrcp.f32 %v2252_v17  ;;  %v2237_v62 = vpop.permute.xlu0 %2236 }
 0x565   :  { %v1894_v5 = vld [vmem:[#allocation4 + $0x18] sm:$0xff]  ;;  %1580 = vst.msk [vmem:[#allocation4 + $0x38] sm:$0xff] %vm1572_vm2, %v1571_v57  ;;  %2821 = vrcp.f32 %v2237_v62 }
 0x566   :  { %v1942_v4 = vmul.f32 %v4195_v10, %v1894_v5  ;;  %v2816_v26 = vpop.eup %2815  ;;  %2823 = vrcp.f32 %v4279_v38 }
 0x567   :  { %v2264_v30 = vmul.f32 %v2816_v26, %v4296_v52  ;;  %2825 = vrcp.f32 %v4287_v48 }
 0x568   :  { %v2075_v50 = vadd.f32 %v4264_v34, %v1942_v4  ;;  %v4333_v1 = vpop.permute.xlu1 %2324  ;;  %v2247_v20 = vpop.permute.xlu0 %2246 }
 0x569   :  { %v1896_v51 = vld [vmem:[#allocation4 + $0x28] sm:$0xff]  ;;  %v2284_v10 = vadd.f32 %v4277_v40, %v2264_v30  ;;  %2827 = vrcp.f32 %v2247_v20 }
 0x56a   :  { %2084 = vst.msk [vmem:[#allocation4 + $0x18] sm:$0xff] %vm2080_vm12, %v2075_v50  ;;  %v1944_v49 = vmul.f32 %v4210_v23, %v1896_v51  ;;  %v2818_v16 = vpop.eup %2817  ;;  %2829 = vrcp.f32 %v2154_v11 }
 0x56b   :  { %v2292_v39 = vmax.f32 %v2284_v10, 0.0  ;;  %v2268_v38 = vmul.f32 %v2818_v16, %v4272_v53 }
 0x56c   :  { %v2077_v34 = vadd.f32 %v2059_v21, %v1944_v49  ;;  %v1898_v9 = vld [vmem:[#allocation4 + $0x38] sm:$0xff]  ;;  %v2335_v25 = vpop.permute.xlu1 %2334  ;;  %v2257_v19 = vpop.permute.xlu0 %2256 }
 0x56d   :  { %2300 = vst.msk [vmem:[%s4529_s5 + $0x10] sm:$0xff] %vm1064_vm10, %v2292_v39  ;;  %v1946_v48 = vmul.f32 %v4220_v58, %v1898_v9  ;;  %v2286_v0 = vadd.f32 %v4277_v40, %v2268_v38  ;;  %2831 = vrcp.f32 %v2335_v25 }
 0x56e   :  { %2086 = vst.msk [vmem:[#allocation4 + $0x28] sm:$0xff] %vm2080_vm12, %v2077_v34  ;;  %v2820_v23 = vpop.eup %2819  ;;  %2833 = vrcp.f32 %v2257_v19 }
 0x56f   :  { %v2822_v15 = vpop.eup %2821  ;;  %v2079_v28 = vadd.f32 %v2063_v37, %v1946_v48  ;;  %v2294_v32 = vmax.f32 %v2286_v0, 0.0  ;;  %v2272_v3 = vmul.f32 %v2820_v23, %v4285_v7 }
 0x570   :  { %v2824_v11 = vpop.eup %2823  ;;  %v2340_v46 = vpop.permute.xlu1 %2339 }
 0x571   :  { %v4348_v31 = vld [vmem:[#allocation4 + $0x18] sm:$0xff]  ;;  %2088 = vst.msk [vmem:[#allocation4 + $0x38] sm:$0xff] %vm2080_vm12, %v2079_v28  ;;  %v2288_v58 = vadd.f32 %v4277_v40, %v2272_v3  ;;  %2835 = vrcp.f32 %v2340_v46  ;;  %v1399_v8 = vpop.permute.xlu0 %1398  ;;  %v2826_v2 = vpop.eup %2825  ;;  %v1891_v3 = vld [vmem:[#allocation4] sm:$0xff] }
 0x572   :  { %2302 = vst.msk [vmem:[%s4529_s5 + $0x20] sm:$0xff] %vm1064_vm10, %v2294_v32  ;;  %v2163_v22 = vmul.f32 %v2824_v11, %v4348_v31  ;;  %v2266_v35 = vmul.f32 %v2822_v15, %v4348_v31  ;;  %v1432_v18 = vmul.f32 %v1399_v8, %v1384_v45 }
 0x573   :  { %v2296_v14 = vmax.f32 %v2288_v58, 0.0  ;;  %v2828_v54 = vpop.eup %2827 }
 0x574   :  { %v2182_v59 = vadd.f32 %v4277_v40, %v2163_v22  ;;  %v2285_v6 = vadd.f32 %v4277_v40, %v2266_v35  ;;  %v1565_v27 = vadd.f32 %v4142_v42, %v1432_v18  ;;  %v2350_v13 = vpop.permute.xlu1 %2349  ;;  %v2830_v29 = vpop.eup %2829 }
 0x575   :  { %v4360_v24 = vld [vmem:[#allocation4 + $0x28] sm:$0xff]  ;;  %2304 = vst.msk [vmem:[%s4529_s5 + $0x30] sm:$0xff] %vm1064_vm10, %v2296_v14  ;;  %v2330_v60 = vpop.permute.xlu0 %2329  ;;  %2837 = vrcp.f32 %v2350_v13 }
 0x576   :  { %v2190_v33 = vmax.f32 %v2182_v59, 0.0  ;;  %v2293_v37 = vmax.f32 %v2285_v6, 0.0  ;;  %v2167_v63 = vmul.f32 %v2826_v2, %v4360_v24  ;;  %v2270_v41 = vmul.f32 %v2828_v54, %v4360_v24  ;;  %1574 = vst.msk [vmem:[#allocation4 + $0x8] sm:$0xff] %vm1572_vm2, %v1565_v27 }
 0x577   :  { %v2832_v21 = vpop.eup %2831  ;;  %2839 = vrcp.f32 %v4268_v44 }
 0x578   :  { %2198 = vst.msk [vmem:[%s4529_s5 + $0x18] sm:$0xff] %vm556_vm15, %v2190_v33  ;;  %v2184_v42 = vadd.f32 %v4277_v40, %v2167_v63  ;;  %v2287_v36 = vadd.f32 %v4277_v40, %v2270_v41  ;;  %v2834_v57 = vpop.eup %2833  ;;  %v2367_v17 = vmul.f32 %v2832_v21, %v4296_v52  ;;  %v4382_v5 = vld [vmem:[#allocation4 + $0x38] sm:$0xff]  ;;  %v2360_v62 = vpop.permute.xlu1 %2359 }
 0x579   :  { %2301 = vst.msk [vmem:[%s4529_s5 + $0x18] sm:$0xff] %vm1064_vm10, %v2293_v37  ;;  %v2171_v50 = vmul.f32 %v2830_v29, %v4382_v5  ;;  %v2274_v30 = vmul.f32 %v2834_v57, %v4382_v5  ;;  %v2345_v51 = vpop.permute.xlu0 %2344  ;;  %2841 = vrcp.f32 %v2360_v62 }
 0x57a   :  { %v2192_v4 = vmax.f32 %v2184_v42, 0.0  ;;  %v2295_v26 = vmax.f32 %v2287_v36, 0.0  ;;  %v2387_v20 = vadd.f32 %v4277_v40, %v2367_v17  ;;  %2843 = vrcp.f32 %v2345_v51 }
 0x57b   :  { %v2836_v44 = vpop.eup %2835  ;;  %v2186_v10 = vadd.f32 %v4277_v40, %v2171_v50  ;;  %v2289_v49 = vadd.f32 %v4277_v40, %v2274_v30  ;;  %2845 = vrcp.f32 %v4309_v55 }
 0x57c   :  { %2200 = vst.msk [vmem:[%s4529_s5 + $0x28] sm:$0xff] %vm556_vm15, %v2192_v4  ;;  %v2395_v16 = vmax.f32 %v2387_v20, 0.0  ;;  %v2369_v39 = vmul.f32 %v2836_v44, %v4348_v31  ;;  %2847 = vrcp.f32 %v2330_v60 }
 0x57d   :  { %2303 = vst.msk [vmem:[%s4529_s5 + $0x28] sm:$0xff] %vm1064_vm10, %v2295_v26  ;;  %v2194_v38 = vmax.f32 %v2186_v10, 0.0  ;;  %v2297_v34 = vmax.f32 %v2289_v49, 0.0  ;;  %v1892_v9 = vld [vmem:[#allocation4 + $0x8] sm:$0xff]  ;;  %v2433_v25 = vpop.permute.xlu1 %2432  ;;  %v2355_v19 = vpop.permute.xlu0 %2354 }
 0x57e   :  { %2403 = vst.msk [vmem:[%s4529_s5 + $0x10] sm:$0xff] %vm1572_vm2, %v2395_v16  ;;  %v2388_v55 = vadd.f32 %v4277_v40, %v2369_v39  ;;  %v1940_v48 = vmul.f32 %v4180_v56, %v1892_v9  ;;  %2849 = vrcp.f32 %v2433_v25 }
 0x57f   :  { %2202 = vst.msk [vmem:[%s4529_s5 + $0x38] sm:$0xff] %vm556_vm15, %v2194_v38  ;;  %2851 = vrcp.f32 %v2355_v19  ;;  %v2838_v0 = vpop.eup %2837 }
 0x580   :  { %2305 = vst.msk [vmem:[%s4529_s5 + $0x38] sm:$0xff] %vm1064_vm10, %v2297_v34  ;;  %v2396_v23 = vmax.f32 %v2388_v55, 0.0  ;;  %v2073_v15 = vadd.f32 %v4266_v61, %v1940_v48  ;;  %v2373_v28 = vmul.f32 %v2838_v0, %v4360_v24 }
 0x581   :  { %v2438_v32 = vpop.permute.xlu1 %2437  ;;  %v2840_v56 = vpop.eup %2839 }
 0x582   :  { %2404 = vst.msk [vmem:[%s4529_s5 + $0x18] sm:$0xff] %vm1572_vm2, %v2396_v23  ;;  %2853 = vrcp.f32 %v2438_v32  ;;  %v1902_v11 = vpop.permute.xlu0 %1901  ;;  %v2390_v46 = vadd.f32 %v4277_v40, %v2373_v28 }
 0x583   :  { %2082 = vst.msk [vmem:[#allocation4 + $0x8] sm:$0xff] %vm2080_vm12, %v2073_v15  ;;  %2855 = vrcp.f32 %v4270_v47  ;;  %v1939_v58 = vmul.f32 %v1902_v11, %v1891_v3  ;;  %v2842_v61 = vpop.eup %2841 }
 0x584   :  { %2857 = vrcp.f32 %v4316_v12  ;;  %v2844_v22 = vpop.eup %2843  ;;  %v2398_v35 = vmax.f32 %v2390_v46, 0.0  ;;  %v2377_v45 = vmul.f32 %v2842_v61, %v4382_v5 }
 0x585   :  { %2859 = vrcp.f32 %v4333_v1  ;;  %v2072_v8 = vadd.f32 %v4228_v43, %v1939_v58  ;;  %v2448_v18 = vpop.permute.xlu1 %2447  ;;  %v2846_v2 = vpop.eup %2845  ;;  %v2371_v14 = vmul.f32 %v2844_v22, %v4272_v53 }
 0x586   :  { %2861 = vrcp.f32 %v2448_v18  ;;  %v2428_v47 = vpop.permute.xlu0 %2427  ;;  %v2848_v59 = vpop.eup %2847  ;;  %2406 = vst.msk [vmem:[%s4529_s5 + $0x28] sm:$0xff] %vm1572_vm2, %v2398_v35  ;;  %v2392_v12 = vadd.f32 %v4277_v40, %v2377_v45 }
 0x587   :  { %2081 = vst.msk [vmem:[#allocation4] sm:$0xff] %vm2080_vm12, %v2072_v8  ;;  %2863 = vrcp.f32 %v2428_v47  ;;  %v2389_v43 = vadd.f32 %v4277_v40, %v2371_v14 }
 0x588   :  { %v2850_v1 = vpop.eup %2849  ;;  %v2400_v27 = vmax.f32 %v2392_v12, 0.0 }
 0x589   :  { %v2852_v6 = vpop.eup %2851  ;;  %v2458_v13 = vpop.permute.xlu1 %2457  ;;  %v2397_v41 = vmax.f32 %v2389_v43, 0.0 }
 0x58a   :  { %v2101_v54 = vld [vmem:[#allocation4 + $0x8] sm:$0xff]  ;;  %v2443_v60 = vpop.permute.xlu0 %2442  ;;  %2408 = vst.msk [vmem:[%s4529_s5 + $0x38] sm:$0xff] %vm1572_vm2, %v2400_v27  ;;  %v2375_v21 = vmul.f32 %v2852_v6, %v4285_v7  ;;  %2865 = vrcp.f32 %v2458_v13 }
 0x58b   :  { %v2159_v33 = vmul.f32 %v2840_v56, %v2101_v54  ;;  %v2262_v37 = vmul.f32 %v2846_v2, %v2101_v54  ;;  %v2365_v63 = vmul.f32 %v2848_v59, %v2101_v54  ;;  %v2468_v29 = vmul.f32 %v2850_v1, %v2101_v54  ;;  %2405 = vst.msk [vmem:[%s4529_s5 + $0x20] sm:$0xff] %vm1572_vm2, %v2397_v41 }
 0x58c   :  { %v2854_v42 = vpop.eup %2853  ;;  %2867 = vrcp.f32 %v2443_v60  ;;  %v2391_v26 = vadd.f32 %v4277_v40, %v2375_v21 }
 0x58d   :  { %v2180_v36 = vadd.f32 %v4277_v40, %v2159_v33  ;;  %v2283_v57 = vadd.f32 %v4277_v40, %v2262_v37  ;;  %v2386_v17 = vadd.f32 %v4277_v40, %v2365_v63  ;;  %v2856_v62 = vpop.eup %2855  ;;  %v2489_v4 = vadd.f32 %v4277_v40, %v2468_v29 }
 0x58e   :  { %v2470_v50 = vmul.f32 %v2854_v42, %v4296_v52  ;;  %v2858_v30 = vpop.eup %2857  ;;  %v2100_v44 = vld [vmem:[#allocation4] sm:$0xff]  ;;  %v2453_v10 = vpop.permute.xlu0 %2452  ;;  %v2399_v16 = vmax.f32 %v2391_v26, 0.0 }
 0x58f   :  { %v2188_v51 = vmax.f32 %v2180_v36, 0.0  ;;  %v2291_v20 = vmax.f32 %v2283_v57, 0.0  ;;  %v2860_v49 = vpop.eup %2859  ;;  %v2157_v38 = vmul.f32 %v2856_v62, %v2100_v44  ;;  %v2394_v9 = vmax.f32 %v2386_v17, 0.0 }
 0x590   :  { %v2490_v39 = vadd.f32 %v4277_v40, %v2470_v50  ;;  %v2862_v34 = vpop.eup %2861  ;;  %v2260_v25 = vmul.f32 %v2858_v30, %v2100_v44  ;;  %v2363_v19 = vmul.f32 %v2860_v49, %v2100_v44  ;;  %2869 = vrcp.f32 %v2453_v10  ;;  %2407 = vst.msk [vmem:[%s4529_s5 + $0x30] sm:$0xff] %vm1572_vm2, %v2399_v16 }
 0x591   :  { %2196 = vst.msk [vmem:[%s4529_s5 + $0x8] sm:$0xff] %vm556_vm15, %v2188_v51  ;;  %v2864_v52 = vpop.eup %2863  ;;  %v2497_v55 = vmax.f32 %v2489_v4, 0.0  ;;  %v2474_v0 = vmul.f32 %v2862_v34, %v4272_v53  ;;  %v2179_v23 = vadd.f32 %v4277_v40, %v2157_v38 }
 0x592   :  { %2299 = vst.msk [vmem:[%s4529_s5 + $0x8] sm:$0xff] %vm1064_vm10, %v2291_v20  ;;  %v2498_v48 = vmax.f32 %v2490_v39, 0.0  ;;  %v2282_v15 = vadd.f32 %v4277_v40, %v2260_v25  ;;  %v2385_v28 = vadd.f32 %v4277_v40, %v2363_v19  ;;  %v2466_v32 = vmul.f32 %v2864_v52, %v2100_v44  ;;  %v2463_v56 = vpop.permute.xlu0 %2462 }
 0x593   :  { %2402 = vst.msk [vmem:[%s4529_s5 + $0x8] sm:$0xff] %vm1572_vm2, %v2394_v9  ;;  %v2492_v53 = vadd.f32 %v4277_v40, %v2474_v0  ;;  %v2187_v3 = vmax.f32 %v2179_v23, 0.0  ;;  %2871 = vrcp.f32 %v2463_v56 }
 0x594   :  { %2505 = vst.msk [vmem:[%s4529_s5 + $0x8] sm:$0xff] %vm2080_vm12, %v2497_v55  ;;  %2506 = vst.msk [vmem:[%s4529_s5 + $0x10] sm:$0xff] %vm2080_vm12, %v2498_v48  ;;  %v2290_v11 = vmax.f32 %v2282_v15, 0.0  ;;  %v2488_v46 = vadd.f32 %v4277_v40, %v2466_v32  ;;  %v2866_v58 = vpop.eup %2865  ;;  %v2393_v22 = vmax.f32 %v2385_v28, 0.0 }
 0x595   :  { %v2500_v61 = vmax.f32 %v2492_v53, 0.0  ;;  %2195 = vst.msk [vmem:[%s4529_s5] sm:$0xff] %vm556_vm15, %v2187_v3  ;;  %v2478_v8 = vmul.f32 %v2866_v58, %v4285_v7 }
 0x596   :  { %v2868_v35 = vpop.eup %2867  ;;  %2298 = vst.msk [vmem:[%s4529_s5] sm:$0xff] %vm1064_vm10, %v2290_v11  ;;  %v2496_v45 = vmax.f32 %v2488_v46, 0.0 }
 0x597   :  { %2508 = vst.msk [vmem:[%s4529_s5 + $0x20] sm:$0xff] %vm2080_vm12, %v2500_v61  ;;  %v2472_v18 = vmul.f32 %v2868_v35, %v4348_v31  ;;  %v2494_v2 = vadd.f32 %v4277_v40, %v2478_v8 }
 0x598   :  { %2401 = vst.msk [vmem:[%s4529_s5] sm:$0xff] %vm1572_vm2, %v2393_v22 }
 0x599   :  { %2504 = vst.msk [vmem:[%s4529_s5] sm:$0xff] %vm2080_vm12, %v2496_v45  ;;  %v2491_v7 = vadd.f32 %v4277_v40, %v2472_v18  ;;  %v2502_v47 = vmax.f32 %v2494_v2, 0.0 }
 0x59a   :  { %v2870_v14 = vpop.eup %2869 }
 0x59b   :  { %v2499_v59 = vmax.f32 %v2491_v7, 0.0  ;;  %v2476_v12 = vmul.f32 %v2870_v14, %v4360_v24  ;;  %2510 = vst.msk [vmem:[%s4529_s5 + $0x30] sm:$0xff] %vm2080_vm12, %v2502_v47 }
 0x59d   :  { %v2872_v31 = vpop.eup %2871  ;;  %2507 = vst.msk [vmem:[%s4529_s5 + $0x18] sm:$0xff] %vm2080_vm12, %v2499_v59  ;;  %v2493_v1 = vadd.f32 %v4277_v40, %v2476_v12 }
 0x59e   :  { %v2480_v43 = vmul.f32 %v2872_v31, %v4382_v5 }
 0x59f   :  { %v2501_v6 = vmax.f32 %v2493_v1, 0.0 }
 0x5a0   :  { %v2495_v54 = vadd.f32 %v4277_v40, %v2480_v43 }
 0x5a1   :  { %2509 = vst.msk [vmem:[%s4529_s5 + $0x28] sm:$0xff] %vm2080_vm12, %v2501_v6 }
 0x5a2   :  { %v2503_v24 = vmax.f32 %v2495_v54, 0.0 }
 0x5a4   :  { %2511 = vst.msk [vmem:[%s4529_s5 + $0x38] sm:$0xff] %vm2080_vm12, %v2503_v24 }

// kernel: gnn_routing_forward.5
= control target key start
LH: loop header
LB: loop body
LE: loop exit
PB: predicated region body
PF: predicated region fallthrough
CT: control target
= control target key end

     0   :  { %s860_s27 = smov 0   ;;  %s918_s0 = inlined_call_operand.vmem [shape: bf16[4,16,16], index: 0, kind: input, shape index: {}]   ;;  %s919_s1 = inlined_call_operand.vmem [shape: bf16[4,16,8], index: 1, kind: input, shape index: {}]   ;;  %s920_s2 = inlined_call_operand.vmem [shape: bf16[8,32], index: 2, kind: input, shape index: {}]   ;;  %s921_s3 = inlined_call_operand.vmem [shape: f32[1,32], index: 3, kind: input, shape index: {}]   ;;  %s922_s4 = inlined_call_operand.vmem [shape: bf16[32,32], index: 4, kind: input, shape index: {}]   ;;  %s923_s5 = inlined_call_operand.vmem [shape: f32[1,32], index: 5, kind: input, shape index: {}]   ;;  %s924_s6 = inlined_call_operand.vmem [shape: bf16[32,128], index: 6, kind: input, shape index: {}]   ;;  %s925_s7 = inlined_call_operand.vmem [shape: f32[1,128], index: 7, kind: input, shape index: {}]   ;;  %s926_s8 = inlined_call_operand.vmem [shape: bf16[4,16,128], index: 8, kind: output, shape index: {}]  }
   0x1 LB: > { %s704_s28 = sadd.s32 4294967295, %s811_s27   ;;  %p708_p0 = scmp.ge.s32.totalorder %s811_s27, 1  ;;  %s811_s27 = sphi %s860_s27, %s18_s27  }
   0x2   : > { %p272_p1 = scmp.lt.s32.totalorder %s811_s27, 5 }
   0x4   : > { %p273_p2 = pnand %p708_p0, %p272_p1 }
   0x5   : > { %v331_v0 = vld [vmem:[%s920_s2] sm:$0xf] (!%p273_p2)  ;;  %vm341_vm0 = vcmask (!%p273_p2), 1043456   ;;  %p311_p3 = scmp.lt.s32.totalorder (!%p273_p2), %s704_s28, 3  ;;  %v813_v1 = vmov (!%p273_p2), 0.0   ;;  %vm814_vm1 = vmmov (!%p273_p2), 0  }
   0x6   : > { %276 = sbr.rel (%p273_p2) target bundleno = 1114 (0x45a), region = 52  ;;  %755 = vmatprep.subr.bf16.mxu0 (!%p273_p2), %v813_v1  ;;  %v343_v2 = vsel (!%p273_p2), %vm341_vm0, %v331_v0, 0  ;;  %757 = vmatprep.mubr.msk.bf16.mxu0 (!%p273_p2), %vm814_vm1, %v813_v1  ;;  %vm337_vm2 = vcmask (!%p273_p2), 64512   ;;  %vm399_vm3 = vcmask (!%p273_p2), 130048   ;;  %v801_v10 = vld [vmem:[%s922_s4] sm:$0xff] (!%p273_p2)   ;;  %v802_v11 = vld [vmem:[%s922_s4 + $0x8] sm:$0xff] (!%p273_p2)  }
   0x7   : > { %756 = vmatpush3.bf16.msra.mxu0 (!%p273_p2), %v343_v2  ;;  %761 = vmatprep.subr.bf16.mxu1 (!%p273_p2), %v813_v1  ;;  %v717_v12 = vld [vmem:[%s921_s3] ss:$0 sm:$0xff] (!%p273_p2)  ;;  %vm463_vm4 = vcmask (!%p273_p2), 261120   ;;  %v804_v28 = vld [vmem:[%s924_s6 + $0x8] sm:$0xff] (!%p273_p2)  }
   0x8   : > { %763 = vmatprep.mubr.msk.bf16.mxu1 (!%p273_p2), %vm814_vm1, %v813_v1  ;;  %767 = vmatprep.subr.bf16.mxu0 (!%p273_p2), %v813_v1  ;;  %v803_v27 = vld [vmem:[%s924_s6] sm:$0xff] (!%p273_p2)  }
   0x9   : > { %v723_v29 = vld [vmem:[%s923_s5] ss:$0 sm:$0xff] (!%p273_p2) }
   0xa   : > { %v725_v39 = vld [vmem:[%s925_s7] ss:$0 sm:$0xff] (!%p273_p2) }
   0xd   : > { %s928_s28 = smov (!%p311_p3, %s704_s28), 3 }
   0xe   : > { %s873_s9 = sshll.u32 %s928_s28, 3 }
   0xf   : > { %s320_s12 = scalar_lea.vmem %s919_s1, %s873_s9  ;;  %s315_s15 = scalar_lea.vmem %s918_s0, %s873_s9 }
  0x10   : > { %v799_v3 = vld [vmem:[%s320_s12] sm:$0xff]   ;;  %s325_s12 = scalar_lea.vmem %s926_s8, %s873_s9 }
  0x11   : > { %758 = vmatmul.mubr.msk.bf16.vlgmr.msra.gmra.mrb[0].mxu0 %vm337_vm2, %v799_v3  ;;  %v800_v9 = vld [vmem:[%s315_s15] sm:$0xff]  }
  0x12   : > { %771 = vmatprep.mubr.msk.bf16.mxu0 %vm814_vm1, %v813_v1  ;;  %768 = vmatpush3.bf16.msra.mxu0 %v801_v10 }
  0x13   : > { %769 = vmatprep.subr.bf16.mxu0 %v813_v1 }
  0x16   : > { %770 = vmatpush3.bf16.msra.mxu0 %v802_v11 }
  0x17   : > { %781 = vmatprep.subr.bf16.mxu0 %v813_v1 }
  0xe4   : > { %v379_v4 = vpop.f32.mrb[0].mxu0 }
  0xe5   : > { %v759_v5 = vpop.f32.mrb[1].mxu0 }
  0xe6   : > { %v382_v6 = vpop.f32.mrb[2].mxu0 }
  0xe7   : > { %v386_v7 = vpack.c.bf16 %v382_v6, %v379_v4  ;;  %v760_v8 = vpop.f32.mrb[3].mxu0 }
  0xe9   : > { %762 = vmatpush3.bf16.msra.mxu1 %v386_v7 }
  0xea   : > { %775 = vmatprep.subr.bf16.mxu1 %v813_v1 }
  0xec   : > { %764 = vmatmul.mubr.msk.bf16.vlgmr.msra.gmra.mrb[0].mxu1 %vm399_vm3, %v800_v9 }
  0xed   : > { %777 = vmatprep.mubr.msk.bf16.mxu1 %vm814_vm1, %v813_v1 }
 0x1bf   : > { %v437_v13 = vpop.f32.mrb[0].mxu1 }
 0x1c0   : > { %v438_v14 = vadd.f32 %v717_v12, %v437_v13  ;;  %v765_v15 = vpop.f32.mrb[1].mxu1 }
 0x1c1   : > { %v440_v16 = vpop.f32.mrb[2].mxu1 }
 0x1c2   : > { %v441_v17 = vadd.f32 %v717_v12, %v440_v16  ;;  %v766_v18 = vpop.f32.mrb[3].mxu1  ;;  %v444_v19 = vmax.f32 %v438_v14, 0.0 }
 0x1c4   : > { %v445_v20 = vmax.f32 %v441_v17, 0.0 }
 0x1c6   : > { %v446_v21 = vpack.c.bf16 %v445_v20, %v444_v19 }
 0x1c8   : > { %772 = vmatmul.mubr.msk.bf16.vlgmr.msra.gmra.mrb[4].mxu0 %vm463_vm4, %v446_v21 }
 0x1c9   : > { %785 = vmatprep.mubr.msk.bf16.mxu0 %vm814_vm1, %v813_v1  ;;  %782 = vmatpush3.bf16.msra.mxu0 %v803_v27 }
 0x1ca   : > { %783 = vmatprep.subr.bf16.mxu0 %v813_v1 }
 0x1cd   : > { %784 = vmatpush3.bf16.msra.mxu0 %v804_v28 }
 0x29b   : > { %v501_v22 = vpop.f32.mrb[4].mxu0 }
 0x29c   : > { %v773_v23 = vpop.f32.mrb[5].mxu0 }
 0x29d   : > { %v504_v24 = vpop.f32.mrb[6].mxu0 }
 0x29e   : > { %v508_v25 = vpack.c.bf16 %v504_v24, %v501_v22  ;;  %v774_v26 = vpop.f32.mrb[7].mxu0 }
 0x2a0   : > { %776 = vmatpush3.bf16.msra.mxu1 %v508_v25 }
 0x2a3   : > { %778 = vmatmul.mubr.msk.bf16.vlgmr.msra.gmra.mrb[4].mxu1 %vm399_vm3, %v800_v9 }
 0x376   : > { %v550_v30 = vpop.f32.mrb[4].mxu1 }
 0x377   : > { %v551_v31 = vadd.f32 %v723_v29, %v550_v30  ;;  %v779_v32 = vpop.f32.mrb[5].mxu1 }
 0x378   : > { %v553_v33 = vpop.f32.mrb[6].mxu1 }
 0x379   : > { %v554_v34 = vadd.f32 %v723_v29, %v553_v33  ;;  %v780_v35 = vpop.f32.mrb[7].mxu1  ;;  %v557_v36 = vmax.f32 %v551_v31, 0.0 }
 0x37b   : > { %v558_v37 = vmax.f32 %v554_v34, 0.0 }
 0x37d   : > { %v559_v38 = vpack.c.bf16 %v558_v37, %v557_v36 }
 0x37f   : > { %786 = vmatmul.mubr.msk.bf16.vlgmr.msra.gmra.mrb[8].mxu0 %vm463_vm4, %v559_v38 }
 0x452   : > { %v620_v40 = vpop.f32.mrb[8].mxu0 }
 0x453   : > { %v787_v41 = vpop.f32.mrb[9].mxu0  ;;  %v621_v43 = vadd.f32 %v725_v39, %v620_v40 }
 0x454   : > { %v623_v42 = vpop.f32.mrb[10].mxu0 }
 0x455   : > { %v624_v44 = vadd.f32 %v725_v39, %v623_v42  ;;  %v788_v45 = vpop.f32.mrb[11].mxu0 }
 0x457   : > { %v741_v46 = vpack.c.bf16 %v624_v44, %v621_v43 }
 0x459   : > { %742 = vst [vmem:[%s325_s12] sm:$0xff] %v741_v46  }
 0x45a PF: > { %s18_s27 = sadd.s32 1, %s811_s27  }
 0x45b   : > { %p15_p4 = scmp.ge.s32.totalorder %s18_s27, 6  }
 0x45d   :  { %17 = sbr.rel (!%p15_p4) target bundleno = 1 (0x1), region = 85 }

</bundles_post_ra>
